<compile_context>
chip_gen: v7x
topology: tpu7x:2x2x1
jax: 0.10.0
libtpu: 0.0.40
codegen_flags: <defaults>
</compile_context>

<pallas_src>
import jax
import jax.numpy as jnp
from jax.experimental import pallas as pl
from jax.experimental.pallas import tpu as pltpu


def se_pass1_kernel(xse_ref, w1_ref, b1_ref, x_ref, w2_ref,
                    y_ref, sum_ref, ssq_ref):
    # --- conv2d92 (1x1, bias) + sigmoid18: SE gate for this sample -> [Cmid, 1].
    # Cse (=40) is tiny and MXU-unfriendly, so do it as a VPU multiply + lane
    # reduction; this yields the gate directly in channel-on-sublane layout so
    # it broadcasts over the spatial lane dim with no transpose.
    logits = jnp.sum(w1_ref[...] * xse_ref[...], axis=1, keepdims=True) + b1_ref[...]
    gate = jax.nn.sigmoid(logits)                              # [Cmid, 1] f32

    # --- operator.mul: scale the feature map by the SE gate (lane broadcast).
    xg = x_ref[...] * gate                                     # [Cmid, S] f32

    # --- conv2d93 (1x1, no bias): [Cout, Cmid] @ [Cmid, S] -> [Cout, S].
    # bf16 MXU inputs, f32 accumulation; BN statistics stay in f32.
    y = jnp.dot(w2_ref[...], xg.astype(jnp.bfloat16),
                preferred_element_type=jnp.float32)            # [Cout, S] f32

    y_ref[...] = y

    # --- BatchNorm batch statistics: accumulate per-channel sum / sum-of-squares
    # across the whole grid (global reduction over N*H*W).
    @pl.when(pl.program_id(0) == 0)
    def _():
        sum_ref[...] = jnp.zeros_like(sum_ref)
        ssq_ref[...] = jnp.zeros_like(ssq_ref)

    sum_ref[...] += jnp.sum(y, axis=1, keepdims=True)          # [Cout, 1]
    ssq_ref[...] += jnp.sum(y * y, axis=1, keepdims=True)      # [Cout, 1]


def bn_apply_kernel(scale_ref, shift_ref, y_ref, o_ref):
    # Folded BN affine: one FMA per element, lane-dense output block.
    o_ref[...] = y_ref[...] * scale_ref[...] + shift_ref[...]


def se_conv_bn(x284_nchw, x281_nchw, w1, b1, w2, gamma, beta, eps=1e-5):
    N, Cse = x284_nchw.shape[0], x284_nchw.shape[1]
    _, Cmid, H, W = x281_nchw.shape
    Cout = w2.shape[0]
    S = H * W

    # Free (metadata-only) reshapes -- everything stays NCHW in HBM.
    xse = x284_nchw.reshape(N, 1, Cse)                  # [N, 1, Cse]
    x = x281_nchw.reshape(N, Cmid, S)                   # [N, Cmid, S]
    w1m = w1.reshape(Cmid, Cse)                         # [Cmid, Cse]
    b1c = b1.reshape(Cmid, 1)                           # [Cmid, 1]
    w2m = w2.reshape(Cout, Cmid).astype(jnp.bfloat16)   # [Cout, Cmid] bf16 for MXU

    cost1 = pl.CostEstimate(
        flops=2 * N * S * Cmid * Cout + 4 * N * Cmid * (Cse + S),
        transcendentals=N * Cmid,
        bytes_accessed=(x.size + N * Cout * S + 2 * Cout) * 4 + w2m.size * 2 + w1m.size * 4,
    )

    # Pass 1: per-sample SE gate + second 1x1 conv, plus global BN stat accumulation.
    y, ssum, ssq = pl.pallas_call(
        se_pass1_kernel,
        grid=(N,),
        in_specs=[
            pl.BlockSpec((None, 1, Cse), lambda n: (n, 0, 0)),    # xse   (per-sample)
            pl.BlockSpec((Cmid, Cse), lambda n: (0, 0)),          # w1    (resident)
            pl.BlockSpec((Cmid, 1), lambda n: (0, 0)),            # b1    (resident)
            pl.BlockSpec((None, Cmid, S), lambda n: (n, 0, 0)),   # x     (per-sample, pipelined)
            pl.BlockSpec((Cout, Cmid), lambda n: (0, 0)),         # w2    (resident)
        ],
        out_specs=(
            pl.BlockSpec((None, Cout, S), lambda n: (n, 0, 0)),   # y     (per-sample)
            pl.BlockSpec((Cout, 1), lambda n: (0, 0)),            # sum   (accumulator)
            pl.BlockSpec((Cout, 1), lambda n: (0, 0)),            # sumsq (accumulator)
        ),
        out_shape=(
            jax.ShapeDtypeStruct((N, Cout, S), jnp.float32),
            jax.ShapeDtypeStruct((Cout, 1), jnp.float32),
            jax.ShapeDtypeStruct((Cout, 1), jnp.float32),
        ),
        compiler_params=pltpu.CompilerParams(
            dimension_semantics=("arbitrary",),   # stat accumulators revisit their block
            vmem_limit_bytes=32 * 1024 * 1024,
        ),
        cost_estimate=cost1,
    )(xse, w1m, b1c, x, w2m)

    # BatchNorm (training mode): batch statistics, biased variance; fold the
    # affine into a single per-channel scale/shift (tiny [Cout] host-side ops).
    cnt = jnp.float32(N * S)
    mean = ssum / cnt                                    # [Cout, 1]
    var = ssq / cnt - mean * mean                        # [Cout, 1]
    scale = gamma.reshape(Cout, 1) * jax.lax.rsqrt(var + eps)
    shift = beta.reshape(Cout, 1) - mean * scale

    cost2 = pl.CostEstimate(
        flops=2 * N * Cout * S,
        transcendentals=0,
        bytes_accessed=2 * N * Cout * S * 4,
    )

    # Pass 2: normalize (independent per sample -> "parallel" for megacore on v7x).
    out = pl.pallas_call(
        bn_apply_kernel,
        grid=(N,),
        in_specs=[
            pl.BlockSpec((Cout, 1), lambda n: (0, 0)),            # scale (resident)
            pl.BlockSpec((Cout, 1), lambda n: (0, 0)),            # shift (resident)
            pl.BlockSpec((None, Cout, S), lambda n: (n, 0, 0)),   # y     (per-sample)
        ],
        out_specs=pl.BlockSpec((None, Cout, S), lambda n: (n, 0, 0)),
        out_shape=jax.ShapeDtypeStruct((N, Cout, S), jnp.float32),
        compiler_params=pltpu.CompilerParams(
            dimension_semantics=("parallel",),
            vmem_limit_bytes=32 * 1024 * 1024,
        ),
        cost_estimate=cost2,
    )(scale, shift, y)

    # Free reshape back to NCHW.
    return out.reshape(N, Cout, H, W)


def reference(x284, x281, w1, b1, w2, gamma, beta, eps=1e-5):
    # Pure-JAX f32 reference with identical (training-mode BN) semantics.
    Cmid, Cse = w1.shape[0], w1.shape[1]
    Cout = w2.shape[0]
    logits = jnp.einsum('nkij,ck->ncij', x284, w1.reshape(Cmid, Cse)) \
        + b1[None, :, None, None]
    gate = jax.nn.sigmoid(logits)
    xg = gate * x281
    y = jnp.einsum('ncij,oc->noij', xg, w2.reshape(Cout, Cmid))
    mean = y.mean(axis=(0, 2, 3), keepdims=True)
    var = ((y - mean) ** 2).mean(axis=(0, 2, 3), keepdims=True)
    return (y - mean) * jax.lax.rsqrt(var + eps) \
        * gamma[None, :, None, None] + beta[None, :, None, None]


if __name__ == "__main__":
    # Channel sizes match the module (Conv2d(40->960), Conv2d(960->160), BN(160));
    # batch=2 so BatchNorm batch statistics / the grid accumulation are exercised.
    N, Cse, Cmid, Cout, H, W = 2, 40, 960, 160, 14, 14

    key = jax.random.PRNGKey(0)
    k1, k2, k3, k4, k5, k6, k7 = jax.random.split(key, 7)

    x284 = jax.random.normal(k1, (N, Cse, 1, 1), jnp.float32)
    x281 = jax.random.normal(k2, (N, Cmid, H, W), jnp.float32)

    # conv2d92: Conv2d(40, 960, 1, 1) with bias
    w1 = jax.random.normal(k3, (Cmid, Cse, 1, 1), jnp.float32) * 0.1
    b1 = jax.random.normal(k4, (Cmid,), jnp.float32) * 0.1
    # conv2d93: Conv2d(960, 160, 1, 1, bias=False)
    w2 = jax.random.normal(k5, (Cout, Cmid, 1, 1), jnp.float32) * 0.05
    # batchnorm2d55 affine params
    gamma = 1.0 + 0.1 * jax.random.normal(k6, (Cout,), jnp.float32)
    beta = 0.1 * jax.random.normal(k7, (Cout,), jnp.float32)

    out = jax.block_until_ready(
        jax.jit(se_conv_bn)(x284, x281, w1, b1, w2, gamma, beta))
    ref = jax.block_until_ready(reference(x284, x281, w1, b1, w2, gamma, beta))

    assert out.shape == (N, Cout, H, W)
    # bf16 MXU inputs (f32 accumulation / f32 BN stats) -> slightly looser tolerance.
    assert jnp.allclose(out, ref, rtol=3e-2, atol=3e-2), "mismatch vs reference"

    print("KERNEL_OK")
</pallas_src>

<mosaic_0001>
module attributes {stable_mosaic.version = 11 : i64} {
  func.func @se_pass1_kernel(%arg0: i32, %arg1: memref<1x1x40xf32, #tpu.memory_space<vmem>>, %arg2: memref<960x40xf32, #tpu.memory_space<vmem>>, %arg3: memref<960x1xf32, #tpu.memory_space<vmem>>, %arg4: memref<1x960x196xf32, #tpu.memory_space<vmem>>, %arg5: memref<160x960xbf16, #tpu.memory_space<vmem>>, %arg6: memref<1x160x196xf32, #tpu.memory_space<vmem>>, %arg7: memref<160x1xf32, #tpu.memory_space<vmem>>, %arg8: memref<160x1xf32, #tpu.memory_space<vmem>>) attributes {dimension_semantics = [#tpu.dimension_semantics<arbitrary>], iteration_bounds = array<i64: 2>, scalar_prefetch = 0 : i64, scratch_operands = 0 : i64, tpu.core_type = #tpu.core_type<tc>, window_params = [{transform_indices = @transform_0, window_bounds = array<i64: 1, 1, 40>}, {pipeline_mode = #tpu.pipeline_mode<synchronous>, transform_indices = @transform_1, window_bounds = array<i64: 960, 40>}, {pipeline_mode = #tpu.pipeline_mode<synchronous>, transform_indices = @transform_2, window_bounds = array<i64: 960, 1>}, {transform_indices = @transform_3, window_bounds = array<i64: 1, 960, 196>}, {pipeline_mode = #tpu.pipeline_mode<synchronous>, transform_indices = @transform_4, window_bounds = array<i64: 160, 960>}, {transform_indices = @transform_5, window_bounds = array<i64: 1, 160, 196>}, {pipeline_mode = #tpu.pipeline_mode<synchronous>, transform_indices = @transform_6, window_bounds = array<i64: 160, 1>}, {pipeline_mode = #tpu.pipeline_mode<synchronous>, transform_indices = @transform_7, window_bounds = array<i64: 160, 1>}]} {
    %c0 = arith.constant 0 : index
    %c0_0 = arith.constant 0 : index
    %0 = vector.load %arg2[%c0, %c0_0] : memref<960x40xf32, #tpu.memory_space<vmem>>, vector<960x40xf32>
    %c0_1 = arith.constant 0 : index
    %c0_2 = arith.constant 0 : index
    %c0_3 = arith.constant 0 : index
    %1 = vector.load %arg1[%c0_1, %c0_2, %c0_3] : memref<1x1x40xf32, #tpu.memory_space<vmem>>, vector<1x1x40xf32>
    %2 = vector.shape_cast %1 : vector<1x1x40xf32> to vector<1x40xf32>
    %3 = vector.broadcast %2 : vector<1x40xf32> to vector<960x40xf32>
    %4 = arith.mulf %0, %3 : vector<960x40xf32>
    %cst = arith.constant dense<0.000000e+00> : vector<960xf32>
    %5 = vector.multi_reduction <add>, %4, %cst [1] : vector<960x40xf32> to vector<960xf32>
    %6 = vector.shape_cast %5 : vector<960xf32> to vector<960x1xf32>
    %c0_4 = arith.constant 0 : index
    %c0_5 = arith.constant 0 : index
    %7 = vector.load %arg3[%c0_4, %c0_5] : memref<960x1xf32, #tpu.memory_space<vmem>>, vector<960x1xf32>
    %8 = arith.addf %6, %7 : vector<960x1xf32>
    %9 = arith.negf %8 : vector<960x1xf32>
    %10 = math.exp %9 : vector<960x1xf32>
    %cst_6 = arith.constant 1.000000e+00 : f32
    %11 = vector.broadcast %cst_6 : f32 to vector<960x1xf32>
    %12 = arith.addf %11, %10 : vector<960x1xf32>
    %13 = arith.divf %11, %12 : vector<960x1xf32>
    %c0_7 = arith.constant 0 : index
    %c0_8 = arith.constant 0 : index
    %c0_9 = arith.constant 0 : index
    %14 = vector.load %arg4[%c0_7, %c0_8, %c0_9] : memref<1x960x196xf32, #tpu.memory_space<vmem>>, vector<1x960x196xf32>
    %15 = vector.shape_cast %14 : vector<1x960x196xf32> to vector<960x196xf32>
    %16 = vector.broadcast %13 : vector<960x1xf32> to vector<960x196xf32>
    %17 = arith.mulf %15, %16 : vector<960x196xf32>
    %c0_10 = arith.constant 0 : index
    %c0_11 = arith.constant 0 : index
    %18 = vector.load %arg5[%c0_10, %c0_11] : memref<160x960xbf16, #tpu.memory_space<vmem>>, vector<160x960xbf16>
    %19 = arith.truncf %17 : vector<960x196xf32> to vector<960x196xbf16>
    %cst_12 = arith.constant dense<0.000000e+00> : vector<160x196xf32>
    %20 = tpu.matmul %18, %19, %cst_12 {dimension_numbers = #tpu.dot_dimension_numbers<[1], [0], [0], [1], [0, 0, 1, 1], [], []>} : vector<160x960xbf16>, vector<960x196xbf16>, vector<160x196xf32> -> vector<160x196xf32>
    %c0_13 = arith.constant 0 : index
    %c0_14 = arith.constant 0 : index
    %c0_15 = arith.constant 0 : index
    %21 = vector.load %arg6[%c0_13, %c0_14, %c0_15] : memref<1x160x196xf32, #tpu.memory_space<vmem>>, vector<1x160x196xf32>
    %22 = vector.shape_cast %21 : vector<1x160x196xf32> to vector<160x196xf32>
    %23 = vector.shape_cast %20 : vector<160x196xf32> to vector<1x160x196xf32>
    tpu.vector_store %arg6[%c0_13, %c0_14, %c0_15], %23 {strides = array<i32>} : memref<1x160x196xf32, #tpu.memory_space<vmem>>, vector<1x160x196xf32>,
    %c0_i32 = arith.constant 0 : i32
    %24 = arith.cmpi eq, %arg0, %c0_i32 : i32
    %25 = arith.extui %24 : i1 to i32
    %c0_i32_16 = arith.constant 0 : i32
    %26 = arith.cmpi ne, %25, %c0_i32_16 : i32
    scf.if %26 {
      %cst_27 = arith.constant 0.000000e+00 : f32
      %38 = vector.broadcast %cst_27 : f32 to vector<160x1xf32>
      %c0_28 = arith.constant 0 : index
      %c0_29 = arith.constant 0 : index
      %39 = vector.load %arg7[%c0_28, %c0_29] : memref<160x1xf32, #tpu.memory_space<vmem>>, vector<160x1xf32>
      tpu.vector_store %arg7[%c0_28, %c0_29], %38 {strides = array<i32>} : memref<160x1xf32, #tpu.memory_space<vmem>>, vector<160x1xf32>,
      %cst_30 = arith.constant 0.000000e+00 : f32
      %40 = vector.broadcast %cst_30 : f32 to vector<160x1xf32>
      %c0_31 = arith.constant 0 : index
      %c0_32 = arith.constant 0 : index
      %41 = vector.load %arg8[%c0_31, %c0_32] : memref<160x1xf32, #tpu.memory_space<vmem>>, vector<160x1xf32>
      tpu.vector_store %arg8[%c0_31, %c0_32], %40 {strides = array<i32>} : memref<160x1xf32, #tpu.memory_space<vmem>>, vector<160x1xf32>,
    } else {
    }
    %c0_17 = arith.constant 0 : index
    %c0_18 = arith.constant 0 : index
    %27 = vector.load %arg7[%c0_17, %c0_18] : memref<160x1xf32, #tpu.memory_space<vmem>>, vector<160x1xf32>
    %cst_19 = arith.constant dense<0.000000e+00> : vector<160xf32>
    %28 = vector.multi_reduction <add>, %20, %cst_19 [1] : vector<160x196xf32> to vector<160xf32>
    %29 = vector.shape_cast %28 : vector<160xf32> to vector<160x1xf32>
    %30 = arith.addf %27, %29 : vector<160x1xf32>
    %c0_20 = arith.constant 0 : index
    %c0_21 = arith.constant 0 : index
    %31 = vector.load %arg7[%c0_20, %c0_21] : memref<160x1xf32, #tpu.memory_space<vmem>>, vector<160x1xf32>
    tpu.vector_store %arg7[%c0_20, %c0_21], %30 {strides = array<i32>} : memref<160x1xf32, #tpu.memory_space<vmem>>, vector<160x1xf32>,
    %c0_22 = arith.constant 0 : index
    %c0_23 = arith.constant 0 : index
    %32 = vector.load %arg8[%c0_22, %c0_23] : memref<160x1xf32, #tpu.memory_space<vmem>>, vector<160x1xf32>
    %33 = arith.mulf %20, %20 : vector<160x196xf32>
    %cst_24 = arith.constant dense<0.000000e+00> : vector<160xf32>
    %34 = vector.multi_reduction <add>, %33, %cst_24 [1] : vector<160x196xf32> to vector<160xf32>
    %35 = vector.shape_cast %34 : vector<160xf32> to vector<160x1xf32>
    %36 = arith.addf %32, %35 : vector<160x1xf32>
    %c0_25 = arith.constant 0 : index
    %c0_26 = arith.constant 0 : index
    %37 = vector.load %arg8[%c0_25, %c0_26] : memref<160x1xf32, #tpu.memory_space<vmem>>, vector<160x1xf32>
    tpu.vector_store %arg8[%c0_25, %c0_26], %36 {strides = array<i32>} : memref<160x1xf32, #tpu.memory_space<vmem>>, vector<160x1xf32>,
    return
  }
  func.func @transform_0(%arg0: i32) -> (i32, i32, i32) {
    %c0_i32 = arith.constant 0 : i32
    %c0_i32_0 = arith.constant 0 : i32
    %c0_i32_1 = arith.constant 0 : i32
    return %arg0, %c0_i32, %c0_i32_0 : i32, i32, i32
  }
  func.func @transform_1(%arg0: i32) -> (i32, i32) {
    %c0_i32 = arith.constant 0 : i32
    %c0_i32_0 = arith.constant 0 : i32
    %c0_i32_1 = arith.constant 0 : i32
    return %c0_i32, %c0_i32_0 : i32, i32
  }
  func.func @transform_2(%arg0: i32) -> (i32, i32) {
    %c0_i32 = arith.constant 0 : i32
    %c0_i32_0 = arith.constant 0 : i32
    %c0_i32_1 = arith.constant 0 : i32
    return %c0_i32, %c0_i32_0 : i32, i32
  }
  func.func @transform_3(%arg0: i32) -> (i32, i32, i32) {
    %c0_i32 = arith.constant 0 : i32
    %c0_i32_0 = arith.constant 0 : i32
    %c0_i32_1 = arith.constant 0 : i32
    return %arg0, %c0_i32, %c0_i32_0 : i32, i32, i32
  }
  func.func @transform_4(%arg0: i32) -> (i32, i32) {
    %c0_i32 = arith.constant 0 : i32
    %c0_i32_0 = arith.constant 0 : i32
    %c0_i32_1 = arith.constant 0 : i32
    return %c0_i32, %c0_i32_0 : i32, i32
  }
  func.func @transform_5(%arg0: i32) -> (i32, i32, i32) {
    %c0_i32 = arith.constant 0 : i32
    %c0_i32_0 = arith.constant 0 : i32
    %c0_i32_1 = arith.constant 0 : i32
    return %arg0, %c0_i32, %c0_i32_0 : i32, i32, i32
  }
  func.func @transform_6(%arg0: i32) -> (i32, i32) {
    %c0_i32 = arith.constant 0 : i32
    %c0_i32_0 = arith.constant 0 : i32
    %c0_i32_1 = arith.constant 0 : i32
    return %c0_i32, %c0_i32_0 : i32, i32
  }
  func.func @transform_7(%arg0: i32) -> (i32, i32) {
    %c0_i32 = arith.constant 0 : i32
    %c0_i32_0 = arith.constant 0 : i32
    %c0_i32_1 = arith.constant 0 : i32
    return %c0_i32, %c0_i32_0 : i32, i32
  }
}

module attributes {stable_mosaic.version = 11 : i64} {
  func.func @bn_apply_kernel(%arg0: i32, %arg1: memref<160x1xf32, #tpu.memory_space<vmem>>, %arg2: memref<160x1xf32, #tpu.memory_space<vmem>>, %arg3: memref<1x160x196xf32, #tpu.memory_space<vmem>>, %arg4: memref<1x160x196xf32, #tpu.memory_space<vmem>>) attributes {dimension_semantics = [#tpu.dimension_semantics<parallel>], iteration_bounds = array<i64: 2>, scalar_prefetch = 0 : i64, scratch_operands = 0 : i64, tpu.core_type = #tpu.core_type<tc>, window_params = [{pipeline_mode = #tpu.pipeline_mode<synchronous>, transform_indices = @transform_0, window_bounds = array<i64: 160, 1>}, {pipeline_mode = #tpu.pipeline_mode<synchronous>, transform_indices = @transform_1, window_bounds = array<i64: 160, 1>}, {transform_indices = @transform_2, window_bounds = array<i64: 1, 160, 196>}, {transform_indices = @transform_3, window_bounds = array<i64: 1, 160, 196>}]} {
    %c0 = arith.constant 0 : index
    %c0_0 = arith.constant 0 : index
    %c0_1 = arith.constant 0 : index
    %0 = vector.load %arg3[%c0, %c0_0, %c0_1] : memref<1x160x196xf32, #tpu.memory_space<vmem>>, vector<1x160x196xf32>
    %1 = vector.shape_cast %0 : vector<1x160x196xf32> to vector<160x196xf32>
    %c0_2 = arith.constant 0 : index
    %c0_3 = arith.constant 0 : index
    %2 = vector.load %arg1[%c0_2, %c0_3] : memref<160x1xf32, #tpu.memory_space<vmem>>, vector<160x1xf32>
    %3 = vector.broadcast %2 : vector<160x1xf32> to vector<160x196xf32>
    %4 = arith.mulf %1, %3 : vector<160x196xf32>
    %c0_4 = arith.constant 0 : index
    %c0_5 = arith.constant 0 : index
    %5 = vector.load %arg2[%c0_4, %c0_5] : memref<160x1xf32, #tpu.memory_space<vmem>>, vector<160x1xf32>
    %6 = vector.broadcast %5 : vector<160x1xf32> to vector<160x196xf32>
    %7 = arith.addf %4, %6 : vector<160x196xf32>
    %c0_6 = arith.constant 0 : index
    %c0_7 = arith.constant 0 : index
    %c0_8 = arith.constant 0 : index
    %8 = vector.load %arg4[%c0_6, %c0_7, %c0_8] : memref<1x160x196xf32, #tpu.memory_space<vmem>>, vector<1x160x196xf32>
    %9 = vector.shape_cast %8 : vector<1x160x196xf32> to vector<160x196xf32>
    %10 = vector.shape_cast %7 : vector<160x196xf32> to vector<1x160x196xf32>
    tpu.vector_store %arg4[%c0_6, %c0_7, %c0_8], %10 {strides = array<i32>} : memref<1x160x196xf32, #tpu.memory_space<vmem>>, vector<1x160x196xf32>,
    return
  }
  func.func @transform_0(%arg0: i32) -> (i32, i32) {
    %c0_i32 = arith.constant 0 : i32
    %c0_i32_0 = arith.constant 0 : i32
    %c0_i32_1 = arith.constant 0 : i32
    return %c0_i32, %c0_i32_0 : i32, i32
  }
  func.func @transform_1(%arg0: i32) -> (i32, i32) {
    %c0_i32 = arith.constant 0 : i32
    %c0_i32_0 = arith.constant 0 : i32
    %c0_i32_1 = arith.constant 0 : i32
    return %c0_i32, %c0_i32_0 : i32, i32
  }
  func.func @transform_2(%arg0: i32) -> (i32, i32, i32) {
    %c0_i32 = arith.constant 0 : i32
    %c0_i32_0 = arith.constant 0 : i32
    %c0_i32_1 = arith.constant 0 : i32
    return %arg0, %c0_i32, %c0_i32_0 : i32, i32, i32
  }
  func.func @transform_3(%arg0: i32) -> (i32, i32, i32) {
    %c0_i32 = arith.constant 0 : i32
    %c0_i32_0 = arith.constant 0 : i32
    %c0_i32_1 = arith.constant 0 : i32
    return %arg0, %c0_i32, %c0_i32_0 : i32, i32, i32
  }
}

</mosaic_0001>

<bundles_post_ra>
// kernel: se_conv_bn.3
= control target key start
LH: loop header
LB: loop body
LE: loop exit
PB: predicated region body
PF: predicated region fallthrough
CT: control target
= control target key end

     0   :  { %s677_s12 = smov 0   ;;  %s978_s0 = inlined_call_operand.vmem [shape: f32[160,1], index: 0, kind: input, shape index: {}]   ;;  %s979_s1 = inlined_call_operand.vmem [shape: f32[160,1], index: 1, kind: input, shape index: {}]   ;;  %s980_s2 = inlined_call_operand.vmem [shape: f32[2,160,196], index: 2, kind: input, shape index: {}]   ;;  %s981_s3 = inlined_call_operand.vmem [shape: f32[2,160,196], index: 3, kind: output, shape index: {}]  }
   0x1 LB: > { %s627_s13 = sadd.s32 4294967295, %s654_s12   ;;  %p631_p0 = scmp.ge.s32.totalorder %s654_s12, 1  ;;  %s654_s12 = sphi %s677_s12, %s13_s12  }
   0x2   : > { %p137_p1 = scmp.lt.s32.totalorder %s654_s12, 3 }
   0x4   : > { %p138_p2 = pnand %p631_p0, %p137_p1 }
   0x5   : > { %v213_v0 = vld [vmem:[%s978_s0 + $0x10] sm:$0xff] (!%p138_p2)  ;;  %v211_v1 = vld [vmem:[%s978_s0] sm:$0xff] (!%p138_p2)  ;;  %v656_v2 = vmov (!%p138_p2), 0   ;;  %v214_v3 = vld [vmem:[%s978_s0 + $0x18] sm:$0xff] (!%p138_p2)  ;;  %p161_p3 = scmp.lt.s32.totalorder (!%p138_p2), %s627_s13, 1  ;;  %vm532_vm0 = vcmask (!%p138_p2), 556032  }
   0x6   : > { %141 = sbr.rel (%p138_p2) target bundleno = 215 (0xd7), region = 32  ;;  %647 = vset.pattern.permute.xlu1 (!%p138_p2), %v656_v2  ;;  %646 = vset.pattern.permute.xlu0 (!%p138_p2), %v656_v2  ;;  %v212_v4 = vld [vmem:[%s978_s0 + $0x8] sm:$0xff] (!%p138_p2)  ;;  %v215_v6 = vld [vmem:[%s978_s0 + $0x20] sm:$0xff] (!%p138_p2)  ;;  %v218_v7 = vld [vmem:[%s978_s0 + $0x38] sm:$0xff] (!%p138_p2) }
   0x7   : > { %243 = vperm.xlu1 (!%p138_p2), %647, %v213_v0   ;;  %233 = vperm.xlu0 (!%p138_p2), %646, %v211_v1   ;;  %v216_v5 = vld [vmem:[%s978_s0 + $0x28] sm:$0xff] (!%p138_p2)  ;;  %v217_v8 = vld [vmem:[%s978_s0 + $0x30] sm:$0xff] (!%p138_p2)  ;;  %v219_v10 = vld [vmem:[%s978_s0 + $0x40] sm:$0xff] (!%p138_p2) }
   0x8   : > { %v220_v9 = vld [vmem:[%s978_s0 + $0x48] sm:$0xff] (!%p138_p2)  ;;  %v222_v11 = vld [vmem:[%s978_s0 + $0x58] sm:$0xff] (!%p138_p2)  ;;  %v221_v12 = vld [vmem:[%s978_s0 + $0x50] sm:$0xff] (!%p138_p2) }
   0x9   : > { %v224_v13 = vld [vmem:[%s978_s0 + $0x68] sm:$0xff] (!%p138_p2)  ;;  %v223_v14 = vld [vmem:[%s978_s0 + $0x60] sm:$0xff] (!%p138_p2)  ;;  %v226_v15 = vld [vmem:[%s978_s0 + $0x78] sm:$0xff] (!%p138_p2) }
   0xa   : > { %v225_v16 = vld [vmem:[%s978_s0 + $0x70] sm:$0xff] (!%p138_p2)  ;;  %v228_v17 = vld [vmem:[%s978_s0 + $0x88] sm:$0xff] (!%p138_p2)  ;;  %v227_v18 = vld [vmem:[%s978_s0 + $0x80] sm:$0xff] (!%p138_p2) }
   0xb   : > { %248 = vperm.xlu1 (!%p138_p2), %647, %v214_v3   ;;  %238 = vperm.xlu0 (!%p138_p2), %646, %v212_v4   ;;  %v230_v19 = vld [vmem:[%s978_s0 + $0x98] sm:$0xff] (!%p138_p2)  ;;  %v229_v20 = vld [vmem:[%s978_s0 + $0x90] sm:$0xff] (!%p138_p2)  ;;  %v372_v21 = vld [vmem:[%s979_s1 + $0x8] sm:$0xff] (!%p138_p2) }
   0xc   : > { %v371_v22 = vld [vmem:[%s979_s1] sm:$0xff] (!%p138_p2)  ;;  %v374_v23 = vld [vmem:[%s979_s1 + $0x18] sm:$0xff] (!%p138_p2)  ;;  %v373_v24 = vld [vmem:[%s979_s1 + $0x10] sm:$0xff] (!%p138_p2) }
   0xd   : > { %v376_v25 = vld [vmem:[%s979_s1 + $0x28] sm:$0xff]  ;;  %v375_v26 = vld [vmem:[%s979_s1 + $0x20] sm:$0xff]  ;;  %v378_v27 = vld [vmem:[%s979_s1 + $0x38] sm:$0xff]  ;;  %s983_s13 = smov (!%p161_p3, %s627_s13), 1 }
   0xe   : > { %v377_v28 = vld [vmem:[%s979_s1 + $0x30] sm:$0xff]  ;;  %v380_v29 = vld [vmem:[%s979_s1 + $0x48] sm:$0xff]  ;;  %v379_v30 = vld [vmem:[%s979_s1 + $0x40] sm:$0xff]  ;;  %s636_s19 = smul.u32 320, %s983_s13 }
   0xf   : > { %258 = vperm.xlu1 %647, %v216_v5   ;;  %253 = vperm.xlu0 %646, %v215_v6   ;;  %v382_v31 = vld [vmem:[%s979_s1 + $0x58] sm:$0xff]  ;;  %v381_v32 = vld [vmem:[%s979_s1 + $0x50] sm:$0xff]  ;;  %v384_v33 = vld [vmem:[%s979_s1 + $0x68] sm:$0xff] }
  0x10   : > { %v383_v34 = vld [vmem:[%s979_s1 + $0x60] sm:$0xff]  ;;  %v386_v35 = vld [vmem:[%s979_s1 + $0x78] sm:$0xff]  ;;  %v385_v36 = vld [vmem:[%s979_s1 + $0x70] sm:$0xff]  ;;  %s832_s22 = scalar_lea.vmem %s980_s2, %s636_s19  ;;  %s853_s24 = scalar_lea.vmem %s981_s3, %s636_s19 }
  0x11   : > { %v388_v37 = vld [vmem:[%s979_s1 + $0x88] sm:$0xff]  ;;  %v387_v38 = vld [vmem:[%s979_s1 + $0x80] sm:$0xff]  ;;  %v390_v39 = vld [vmem:[%s979_s1 + $0x98] sm:$0xff] }
  0x12   : > { %v389_v40 = vld [vmem:[%s979_s1 + $0x90] sm:$0xff]  ;;  %v171_v59 = vld [vmem:[%s832_s22] sm:$0xff]  ;;  %v172_v60 = vld [vmem:[%s832_s22 + $0x8] sm:$0xff] }
  0x13   : > { %268 = vperm.xlu1 %647, %v218_v7   ;;  %263 = vperm.xlu0 %646, %v217_v8   ;;  %v173_v61 = vld [vmem:[%s832_s22 + $0x10] sm:$0xff]  ;;  %v174_v62 = vld [vmem:[%s832_s22 + $0x18] sm:$0xff]  ;;  %v175_v1 = vld [vmem:[%s832_s22 + $0x20] sm:$0xff] }
  0x14   : > { %v176_v6 = vld [vmem:[%s832_s22 + $0x28] sm:$0xff]  ;;  %v177_v7 = vld [vmem:[%s832_s22 + $0x30] sm:$0xff]  ;;  %v178_v8 = vld [vmem:[%s832_s22 + $0x38] sm:$0xff] }
  0x17   : > { %278 = vperm.xlu1 %647, %v220_v9   ;;  %273 = vperm.xlu0 %646, %v219_v10  }
  0x1b   : > { %288 = vperm.xlu1 %647, %v222_v11   ;;  %283 = vperm.xlu0 %646, %v221_v12  }
  0x1f   : > { %298 = vperm.xlu1 %647, %v224_v13   ;;  %293 = vperm.xlu0 %646, %v223_v14  }
  0x23   : > { %308 = vperm.xlu1 %647, %v226_v15   ;;  %303 = vperm.xlu0 %646, %v225_v16  }
  0x27   : > { %318 = vperm.xlu1 %647, %v228_v17   ;;  %313 = vperm.xlu0 %646, %v227_v18  }
  0x2b   : > { %328 = vperm.xlu1 %647, %v230_v19   ;;  %323 = vperm.xlu0 %646, %v229_v20   ;;  %v181_v19 = vld [vmem:[%s832_s22 + $0x50] sm:$0xff]  ;;  %v182_v20 = vld [vmem:[%s832_s22 + $0x58] sm:$0xff] }
  0x2f   : > { %398 = vperm.xlu1 %647, %v372_v21   ;;  %393 = vperm.xlu0 %646, %v371_v22   ;;  %v179_v21 = vld [vmem:[%s832_s22 + $0x40] sm:$0xff]  ;;  %v180_v22 = vld [vmem:[%s832_s22 + $0x48] sm:$0xff] }
  0x33   : > { %408 = vperm.xlu1 %647, %v374_v23   ;;  %403 = vperm.xlu0 %646, %v373_v24  }
  0x37   : > { %418 = vperm.xlu1 %647, %v376_v25   ;;  %413 = vperm.xlu0 %646, %v375_v26  }
  0x3b   : > { %428 = vperm.xlu1 %647, %v378_v27   ;;  %423 = vperm.xlu0 %646, %v377_v28  }
  0x3f   : > { %438 = vperm.xlu1 %647, %v380_v29   ;;  %433 = vperm.xlu0 %646, %v379_v30  }
  0x43   : > { %448 = vperm.xlu1 %647, %v382_v31   ;;  %443 = vperm.xlu0 %646, %v381_v32  }
  0x47   : > { %458 = vperm.xlu1 %647, %v384_v33   ;;  %453 = vperm.xlu0 %646, %v383_v34   ;;  %v185_v33 = vld [vmem:[%s832_s22 + $0x70] sm:$0xff]  ;;  %v186_v34 = vld [vmem:[%s832_s22 + $0x78] sm:$0xff] }
  0x4b   : > { %468 = vperm.xlu1 %647, %v386_v35   ;;  %463 = vperm.xlu0 %646, %v385_v36   ;;  %v183_v35 = vld [vmem:[%s832_s22 + $0x60] sm:$0xff]  ;;  %v184_v36 = vld [vmem:[%s832_s22 + $0x68] sm:$0xff] }
  0x4f   : > { %478 = vperm.xlu1 %647, %v388_v37   ;;  %473 = vperm.xlu0 %646, %v387_v38  }
  0x53   : > { %488 = vperm.xlu1 %647, %v390_v39   ;;  %483 = vperm.xlu0 %646, %v389_v40  }
  0x86   : > { %v244_v41 = vpop.permute.xlu1 %243  ;;  %v234_v42 = vpop.permute.xlu0 %233 }
  0x87   : > { %v331_v2 = vmul.f32 %v234_v42, %v171_v59  ;;  %v332_v3 = vmul.f32 %v234_v42, %v172_v60  ;;  %v335_v15 = vmul.f32 %v244_v41, %v175_v1  ;;  %v336_v16 = vmul.f32 %v244_v41, %v176_v6  ;;  %v189_v59 = vld [vmem:[%s832_s22 + $0x90] sm:$0xff]  ;;  %v190_v60 = vld [vmem:[%s832_s22 + $0x98] sm:$0xff] }
  0x8a   : > { %v249_v43 = vpop.permute.xlu1 %248  ;;  %v239_v44 = vpop.permute.xlu0 %238 }
  0x8b   : > { %v333_v4 = vmul.f32 %v239_v44, %v173_v61  ;;  %v334_v5 = vmul.f32 %v239_v44, %v174_v62  ;;  %v337_v17 = vmul.f32 %v249_v43, %v177_v7  ;;  %v338_v18 = vmul.f32 %v249_v43, %v178_v8  ;;  %v187_v61 = vld [vmem:[%s832_s22 + $0x80] sm:$0xff]  ;;  %v188_v62 = vld [vmem:[%s832_s22 + $0x88] sm:$0xff] }
  0x8e   : > { %v259_v45 = vpop.permute.xlu1 %258  ;;  %v254_v46 = vpop.permute.xlu0 %253 }
  0x8f   : > { %v341_v29 = vmul.f32 %v259_v45, %v181_v19  ;;  %v342_v30 = vmul.f32 %v259_v45, %v182_v20  ;;  %v339_v31 = vmul.f32 %v254_v46, %v179_v21  ;;  %v340_v32 = vmul.f32 %v254_v46, %v180_v22  ;;  %v197_v21 = vld [vmem:[%s832_s22 + $0xd0] sm:$0xff]  ;;  %v198_v22 = vld [vmem:[%s832_s22 + $0xd8] sm:$0xff] }
  0x92   : > { %v805_v47 = vpop.permute.xlu1 %268  ;;  %v807_v48 = vpop.permute.xlu0 %263 }
  0x93   : > { %v345_v43 = vmul.f32 %v805_v47, %v185_v33  ;;  %v346_v44 = vmul.f32 %v805_v47, %v186_v34  ;;  %v343_v45 = vmul.f32 %v807_v48, %v183_v35  ;;  %v344_v46 = vmul.f32 %v807_v48, %v184_v36  ;;  %v201_v33 = vld [vmem:[%s832_s22 + $0xf0] sm:$0xff]  ;;  %v202_v34 = vld [vmem:[%s832_s22 + $0xf8] sm:$0xff]  ;;  %v199_v35 = vld [vmem:[%s832_s22 + $0xe0] sm:$0xff] }
  0x94   : > { %v200_v36 = vld [vmem:[%s832_s22 + $0xe8] sm:$0xff] }
  0x96   : > { %v809_v49 = vpop.permute.xlu1 %278  ;;  %v811_v50 = vpop.permute.xlu0 %273 }
  0x97   : > { %v350_v6 = vmul.f32 %v809_v49, %v190_v60  ;;  %v347_v7 = vmul.f32 %v811_v50, %v187_v61  ;;  %v348_v8 = vmul.f32 %v811_v50, %v188_v62  ;;  %v204_v60 = vld [vmem:[%s832_s22 + $0x108] sm:$0xff] }
  0x9a   : > { %v815_v51 = vpop.permute.xlu1 %288  ;;  %v817_v52 = vpop.permute.xlu0 %283 }
  0x9e   : > { %v821_v53 = vpop.permute.xlu1 %298  ;;  %v823_v54 = vpop.permute.xlu0 %293 }
  0xa2   : > { %v825_v55 = vpop.permute.xlu1 %308  ;;  %v827_v56 = vpop.permute.xlu0 %303 }
  0xa6   : > { %v834_v57 = vpop.permute.xlu1 %318  ;;  %v836_v58 = vpop.permute.xlu0 %313 }
  0xaa   : > { %v842_v63 = vpop.permute.xlu1 %328  ;;  %v844_v0 = vpop.permute.xlu0 %323 }
  0xae   : > { %v399_v9 = vpop.permute.xlu1 %398  ;;  %v394_v10 = vpop.permute.xlu0 %393 }
  0xaf   : > { %v493_v11 = vadd.f32 %v399_v9, %v333_v4  ;;  %v494_v12 = vadd.f32 %v399_v9, %v334_v5  ;;  %v491_v13 = vadd.f32 %v394_v10, %v331_v2  ;;  %v492_v14 = vadd.f32 %v394_v10, %v332_v3  ;;  %v193_v9 = vld [vmem:[%s832_s22 + $0xb0] sm:$0xff]  ;;  %v194_v10 = vld [vmem:[%s832_s22 + $0xb8] sm:$0xff] }
  0xb0   : > { %v349_v5 = vmul.f32 %v809_v49, %v189_v59  ;;  %v203_v59 = vld [vmem:[%s832_s22 + $0x100] sm:$0xff] }
  0xb1   : > { %534 = vst [vmem:[%s853_s24 + $0x10] sm:$0xff] %v493_v11  ;;  %535 = vst.msk [vmem:[%s853_s24 + $0x18] sm:$0xff] %vm532_vm0, %v494_v12  ;;  %v191_v11 = vld [vmem:[%s832_s22 + $0xa0] sm:$0xff]  ;;  %v192_v12 = vld [vmem:[%s832_s22 + $0xa8] sm:$0xff] }
  0xb2   : > { %531 = vst [vmem:[%s853_s24] sm:$0xff] %v491_v13  ;;  %533 = vst.msk [vmem:[%s853_s24 + $0x8] sm:$0xff] %vm532_vm0, %v492_v14  ;;  %v409_v23 = vpop.permute.xlu1 %408  ;;  %v404_v24 = vpop.permute.xlu0 %403  ;;  %v351_v19 = vmul.f32 %v817_v52, %v191_v11  ;;  %v352_v20 = vmul.f32 %v817_v52, %v192_v12 }
  0xb3   : > { %v497_v25 = vadd.f32 %v409_v23, %v337_v17  ;;  %v498_v26 = vadd.f32 %v409_v23, %v338_v18  ;;  %v495_v27 = vadd.f32 %v404_v24, %v335_v15  ;;  %v496_v28 = vadd.f32 %v404_v24, %v336_v16  ;;  %v195_v23 = vld [vmem:[%s832_s22 + $0xc0] sm:$0xff]  ;;  %v196_v24 = vld [vmem:[%s832_s22 + $0xc8] sm:$0xff] }
  0xb4   : > { %v353_v17 = vmul.f32 %v815_v51, %v193_v9  ;;  %v354_v18 = vmul.f32 %v815_v51, %v194_v10 }
  0xb5   : > { %538 = vst [vmem:[%s853_s24 + $0x30] sm:$0xff] %v497_v25  ;;  %539 = vst.msk [vmem:[%s853_s24 + $0x38] sm:$0xff] %vm532_vm0, %v498_v26 }
  0xb6   : > { %536 = vst [vmem:[%s853_s24 + $0x20] sm:$0xff] %v495_v27  ;;  %537 = vst.msk [vmem:[%s853_s24 + $0x28] sm:$0xff] %vm532_vm0, %v496_v28  ;;  %v419_v37 = vpop.permute.xlu1 %418  ;;  %v414_v38 = vpop.permute.xlu0 %413 }
  0xb7   : > { %v501_v39 = vadd.f32 %v419_v37, %v341_v29  ;;  %v502_v40 = vadd.f32 %v419_v37, %v342_v30  ;;  %v499_v41 = vadd.f32 %v414_v38, %v339_v31  ;;  %v500_v42 = vadd.f32 %v414_v38, %v340_v32 }
  0xb8   : > { %v357_v29 = vmul.f32 %v821_v53, %v197_v21  ;;  %v358_v30 = vmul.f32 %v821_v53, %v198_v22  ;;  %v355_v31 = vmul.f32 %v823_v54, %v195_v23  ;;  %v356_v32 = vmul.f32 %v823_v54, %v196_v24 }
  0xb9   : > { %542 = vst [vmem:[%s853_s24 + $0x50] sm:$0xff] %v501_v39  ;;  %543 = vst.msk [vmem:[%s853_s24 + $0x58] sm:$0xff] %vm532_vm0, %v502_v40 }
  0xba   : > { %540 = vst [vmem:[%s853_s24 + $0x40] sm:$0xff] %v499_v41  ;;  %541 = vst.msk [vmem:[%s853_s24 + $0x48] sm:$0xff] %vm532_vm0, %v500_v42  ;;  %v429_v47 = vpop.permute.xlu1 %428  ;;  %v424_v1 = vpop.permute.xlu0 %423  ;;  %v361_v41 = vmul.f32 %v825_v55, %v201_v33  ;;  %v362_v42 = vmul.f32 %v825_v55, %v202_v34 }
  0xbb   : > { %v505_v48 = vadd.f32 %v429_v47, %v345_v43  ;;  %v506_v2 = vadd.f32 %v429_v47, %v346_v44  ;;  %v503_v3 = vadd.f32 %v424_v1, %v343_v45  ;;  %v504_v4 = vadd.f32 %v424_v1, %v344_v46  ;;  %v205_v45 = vld [vmem:[%s832_s22 + $0x110] sm:$0xff]  ;;  %v206_v46 = vld [vmem:[%s832_s22 + $0x118] sm:$0xff] }
  0xbc   : > { %v359_v43 = vmul.f32 %v827_v56, %v199_v35  ;;  %v360_v44 = vmul.f32 %v827_v56, %v200_v36 }
  0xbd   : > { %546 = vst [vmem:[%s853_s24 + $0x70] sm:$0xff] %v505_v48  ;;  %547 = vst.msk [vmem:[%s853_s24 + $0x78] sm:$0xff] %vm532_vm0, %v506_v2  ;;  %v365_v48 = vmul.f32 %v834_v57, %v205_v45  ;;  %v366_v2 = vmul.f32 %v834_v57, %v206_v46 }
  0xbe   : > { %544 = vst [vmem:[%s853_s24 + $0x60] sm:$0xff] %v503_v3  ;;  %545 = vst.msk [vmem:[%s853_s24 + $0x68] sm:$0xff] %vm532_vm0, %v504_v4  ;;  %v439_v49 = vpop.permute.xlu1 %438  ;;  %v434_v13 = vpop.permute.xlu0 %433  ;;  %v363_v3 = vmul.f32 %v836_v58, %v203_v59  ;;  %v364_v4 = vmul.f32 %v836_v58, %v204_v60 }
  0xbf   : > { %v509_v50 = vadd.f32 %v439_v49, %v349_v5  ;;  %v510_v14 = vadd.f32 %v439_v49, %v350_v6  ;;  %v507_v15 = vadd.f32 %v434_v13, %v347_v7  ;;  %v508_v16 = vadd.f32 %v434_v13, %v348_v8  ;;  %v209_v5 = vld [vmem:[%s832_s22 + $0x130] sm:$0xff]  ;;  %v210_v6 = vld [vmem:[%s832_s22 + $0x138] sm:$0xff]  ;;  %v207_v7 = vld [vmem:[%s832_s22 + $0x120] sm:$0xff] }
  0xc0   : > { %v208_v8 = vld [vmem:[%s832_s22 + $0x128] sm:$0xff]  ;;  %v369_v49 = vmul.f32 %v842_v63, %v209_v5  ;;  %v370_v13 = vmul.f32 %v842_v63, %v210_v6 }
  0xc1   : > { %550 = vst [vmem:[%s853_s24 + $0x90] sm:$0xff] %v509_v50  ;;  %551 = vst.msk [vmem:[%s853_s24 + $0x98] sm:$0xff] %vm532_vm0, %v510_v14  ;;  %v367_v50 = vmul.f32 %v844_v0, %v207_v7  ;;  %v368_v14 = vmul.f32 %v844_v0, %v208_v8 }
  0xc2   : > { %548 = vst [vmem:[%s853_s24 + $0x80] sm:$0xff] %v507_v15  ;;  %549 = vst.msk [vmem:[%s853_s24 + $0x88] sm:$0xff] %vm532_vm0, %v508_v16  ;;  %v449_v51 = vpop.permute.xlu1 %448  ;;  %v444_v25 = vpop.permute.xlu0 %443 }
  0xc3   : > { %v513_v52 = vadd.f32 %v449_v51, %v353_v17  ;;  %v514_v26 = vadd.f32 %v449_v51, %v354_v18  ;;  %v511_v27 = vadd.f32 %v444_v25, %v351_v19  ;;  %v512_v28 = vadd.f32 %v444_v25, %v352_v20 }
  0xc5   : > { %554 = vst [vmem:[%s853_s24 + $0xb0] sm:$0xff] %v513_v52  ;;  %555 = vst.msk [vmem:[%s853_s24 + $0xb8] sm:$0xff] %vm532_vm0, %v514_v26 }
  0xc6   : > { %552 = vst [vmem:[%s853_s24 + $0xa0] sm:$0xff] %v511_v27  ;;  %553 = vst.msk [vmem:[%s853_s24 + $0xa8] sm:$0xff] %vm532_vm0, %v512_v28  ;;  %v459_v53 = vpop.permute.xlu1 %458  ;;  %v454_v37 = vpop.permute.xlu0 %453 }
  0xc7   : > { %v517_v54 = vadd.f32 %v459_v53, %v357_v29  ;;  %v518_v38 = vadd.f32 %v459_v53, %v358_v30  ;;  %v515_v39 = vadd.f32 %v454_v37, %v355_v31  ;;  %v516_v40 = vadd.f32 %v454_v37, %v356_v32 }
  0xc9   : > { %558 = vst [vmem:[%s853_s24 + $0xd0] sm:$0xff] %v517_v54  ;;  %559 = vst.msk [vmem:[%s853_s24 + $0xd8] sm:$0xff] %vm532_vm0, %v518_v38 }
  0xca   : > { %556 = vst [vmem:[%s853_s24 + $0xc0] sm:$0xff] %v515_v39  ;;  %557 = vst.msk [vmem:[%s853_s24 + $0xc8] sm:$0xff] %vm532_vm0, %v516_v40  ;;  %v469_v55 = vpop.permute.xlu1 %468  ;;  %v464_v61 = vpop.permute.xlu0 %463 }
  0xcb   : > { %v521_v56 = vadd.f32 %v469_v55, %v361_v41  ;;  %v522_v62 = vadd.f32 %v469_v55, %v362_v42  ;;  %v519_v47 = vadd.f32 %v464_v61, %v359_v43  ;;  %v520_v1 = vadd.f32 %v464_v61, %v360_v44 }
  0xcd   : > { %562 = vst [vmem:[%s853_s24 + $0xf0] sm:$0xff] %v521_v56  ;;  %563 = vst.msk [vmem:[%s853_s24 + $0xf8] sm:$0xff] %vm532_vm0, %v522_v62 }
  0xce   : > { %560 = vst [vmem:[%s853_s24 + $0xe0] sm:$0xff] %v519_v47  ;;  %561 = vst.msk [vmem:[%s853_s24 + $0xe8] sm:$0xff] %vm532_vm0, %v520_v1  ;;  %v479_v9 = vpop.permute.xlu1 %478  ;;  %v474_v57 = vpop.permute.xlu0 %473 }
  0xcf   : > { %v525_v10 = vadd.f32 %v479_v9, %v365_v48  ;;  %v526_v11 = vadd.f32 %v479_v9, %v366_v2  ;;  %v523_v12 = vadd.f32 %v474_v57, %v363_v3  ;;  %v524_v58 = vadd.f32 %v474_v57, %v364_v4 }
  0xd1   : > { %566 = vst [vmem:[%s853_s24 + $0x110] sm:$0xff] %v525_v10  ;;  %567 = vst.msk [vmem:[%s853_s24 + $0x118] sm:$0xff] %vm532_vm0, %v526_v11 }
  0xd2   : > { %564 = vst [vmem:[%s853_s24 + $0x100] sm:$0xff] %v523_v12  ;;  %565 = vst.msk [vmem:[%s853_s24 + $0x108] sm:$0xff] %vm532_vm0, %v524_v58  ;;  %v489_v15 = vpop.permute.xlu1 %488  ;;  %v484_v16 = vpop.permute.xlu0 %483 }
  0xd3   : > { %v529_v17 = vadd.f32 %v489_v15, %v369_v49  ;;  %v530_v18 = vadd.f32 %v489_v15, %v370_v13  ;;  %v527_v19 = vadd.f32 %v484_v16, %v367_v50  ;;  %v528_v20 = vadd.f32 %v484_v16, %v368_v14 }
  0xd5   : > { %570 = vst [vmem:[%s853_s24 + $0x130] sm:$0xff] %v529_v17  ;;  %571 = vst.msk [vmem:[%s853_s24 + $0x138] sm:$0xff] %vm532_vm0, %v530_v18 }
  0xd6   : > { %568 = vst [vmem:[%s853_s24 + $0x120] sm:$0xff] %v527_v19  ;;  %569 = vst.msk [vmem:[%s853_s24 + $0x128] sm:$0xff] %vm532_vm0, %v528_v20 }
  0xd7 PF: > { %s13_s12 = sadd.s32 1, %s654_s12  }
  0xd8   : > { %p10_p4 = scmp.ge.s32.totalorder %s13_s12, 4  }
  0xda   :  { %12 = sbr.rel (!%p10_p4) target bundleno = 1 (0x1), region = 62 }

// kernel: se_conv_bn.2
= control target key start
LH: loop header
LB: loop body
LE: loop exit
PB: predicated region body
PF: predicated region fallthrough
CT: control target
= control target key end

     0   :  { %s5459_s24 = smov 0   ;;  %s8595_s0 = inlined_call_operand.vmem [shape: f32[2,1,40], index: 0, kind: input, shape index: {}]   ;;  %s8596_s1 = inlined_call_operand.vmem [shape: f32[960,40], index: 1, kind: input, shape index: {}]   ;;  %s8597_s2 = inlined_call_operand.vmem [shape: f32[960,1], index: 2, kind: input, shape index: {}]   ;;  %s8598_s3 = inlined_call_operand.vmem [shape: f32[2,960,196], index: 3, kind: input, shape index: {}]   ;;  %s8599_s4 = inlined_call_operand.vmem [shape: bf16[160,960], index: 4, kind: input, shape index: {}]   ;;  %s8600_s5 = inlined_call_operand.vmem [shape: f32[2,160,196], index: 5, kind: output, shape index: {0}]   ;;  %s8601_s6 = inlined_call_operand.vmem [shape: f32[160,1], index: 6, kind: output, shape index: {1}]   ;;  %s8602_s7 = inlined_call_operand.vmem [shape: f32[160,1], index: 7, kind: output, shape index: {2}]  }
   0x1 LB: > { %s5465_s25 = sadd.s32 4294967295, %s5415_s24   ;;  %p4577_p0 = scmp.ge.s32.totalorder %s5415_s24, 1  ;;  %s5415_s24 = sphi %s5459_s24, %s18_s24  }
   0x2   : > { %p240_p1 = scmp.lt.s32.totalorder %s5415_s24, 3 }
   0x4   : > { %p241_p2 = pnand %p4577_p0, %p240_p1 }
   0x6   : > { %244 = sbr.rel (%p241_p2) target bundleno = 1224 (0x4c8), region = 40 }
   0xd   : > { %p275_p3 = scmp.lt.s32.totalorder %s5465_s25, 1  ;;  %v291_v0 = vld [vmem:[%s8596_s1 + $0x10] sm:$0xff]  ;;  %v289_v1 = vld [vmem:[%s8596_s1] sm:$0xff]  ;;  %v292_v2 = vld [vmem:[%s8596_s1 + $0x18] sm:$0xff]  ;;  %vm536_vm0 = vcmask 326656   ;;  %vm3527_vm1 = vcmask 523264  }
   0xe   : > { %v290_v3 = vld [vmem:[%s8596_s1 + $0x8] sm:$0xff]  ;;  %v293_v10 = vld [vmem:[%s8596_s1 + $0x20] sm:$0xff]  ;;  %v296_v17 = vld [vmem:[%s8596_s1 + $0x38] sm:$0xff]  ;;  %vm4091_vm2 = vcmask 556032   ;;  %p4791_p4 = scmp.ne.s32.totalorder %s5465_s25, 0 }
   0xf   : > { %s5471_s26 = scalar_select %p275_p3, %s5465_s25, 1  ;;  %v294_v9 = vld [vmem:[%s8596_s1 + $0x28] sm:$0xff]  ;;  %v295_v18 = vld [vmem:[%s8596_s1 + $0x30] sm:$0xff]  ;;  %v297_v24 = vld [vmem:[%s8596_s1 + $0x40] sm:$0xff] }
  0x10   : > { %v298_v23 = vld [vmem:[%s8596_s1 + $0x48] sm:$0xff]  ;;  %v300_v29 = vld [vmem:[%s8596_s1 + $0x58] sm:$0xff]  ;;  %v299_v30 = vld [vmem:[%s8596_s1 + $0x50] sm:$0xff]  ;;  %vm4135_vm3 = vcmask (!%p4791_p4), 7168  }
  0x11   : > { %s5489_s14 = scalar_lea.vmem %s8595_s0, %s5471_s26  ;;  %v302_v35 = vld [vmem:[%s8596_s1 + $0x68] sm:$0xff]  ;;  %v301_v36 = vld [vmem:[%s8596_s1 + $0x60] sm:$0xff]  ;;  %v304_v41 = vld [vmem:[%s8596_s1 + $0x78] sm:$0xff]  ;;  %s4914_s15 = smul.u32 1920, %s5471_s26 }
  0x12   : > { %v5492_v4 = vld [vmem:[%s5489_s14] ss:$0 sm:$0xff]  ;;  %v303_v42 = vld [vmem:[%s8596_s1 + $0x70] sm:$0xff]  ;;  %v306_v47 = vld [vmem:[%s8596_s1 + $0x88] sm:$0xff]  ;;  %s4915_s11 = smul.u32 320, %s5471_s26 }
  0x13   : > { %v418_v5 = vmul.f32 %v5492_v4, %v291_v0  ;;  %v416_v6 = vmul.f32 %v5492_v4, %v289_v1  ;;  %v419_v7 = vmul.f32 %v5492_v4, %v292_v2  ;;  %v417_v8 = vmul.f32 %v5492_v4, %v290_v3  ;;  %v305_v48 = vld [vmem:[%s8596_s1 + $0x80] sm:$0xff]  ;;  %v308_v53 = vld [vmem:[%s8596_s1 + $0x98] sm:$0xff]  ;;  %v307_v54 = vld [vmem:[%s8596_s1 + $0x90] sm:$0xff]  ;;  %s6667_s22 = scalar_lea.vmem %s8598_s3, %s4914_s15 }
  0x14   : > { %v421_v15 = vmul.f32 %v5492_v4, %v294_v9  ;;  %v420_v16 = vmul.f32 %v5492_v4, %v293_v10  ;;  %v423_v21 = vmul.f32 %v5492_v4, %v296_v17  ;;  %v422_v22 = vmul.f32 %v5492_v4, %v295_v18  ;;  %v310_v59 = vld [vmem:[%s8596_s1 + $0xa8] sm:$0xff]  ;;  %v309_v60 = vld [vmem:[%s8596_s1 + $0xa0] sm:$0xff]  ;;  %v312_v1 = vld [vmem:[%s8596_s1 + $0xb8] sm:$0xff]  ;;  %s7809_s15 = scalar_lea.vmem %s8600_s5, %s4915_s11 }
  0x15   : > { %v543_v11 = vsel %vm536_vm0, %v418_v5, 0.0  ;;  %v537_v12 = vsel %vm536_vm0, %v416_v6, 0.0  ;;  %v546_v13 = vsel %vm536_vm0, %v419_v7, 0.0  ;;  %v540_v14 = vsel %vm536_vm0, %v417_v8, 0.0  ;;  %v311_v2 = vld [vmem:[%s8596_s1 + $0xb0] sm:$0xff]  ;;  %v314_v8 = vld [vmem:[%s8596_s1 + $0xc8] sm:$0xff] }
  0x16   : > { %544 = vadd.xlane.f32.xlu1 %v543_v11  ;;  %538 = vadd.xlane.f32.xlu0 %v537_v12  ;;  %v552_v19 = vsel %vm536_vm0, %v421_v15, 0.0  ;;  %v549_v20 = vsel %vm536_vm0, %v420_v16, 0.0  ;;  %v558_v25 = vsel %vm536_vm0, %v423_v21, 0.0  ;;  %v555_v26 = vsel %vm536_vm0, %v422_v22, 0.0  ;;  %v313_v9 = vld [vmem:[%s8596_s1 + $0xc0] sm:$0xff]  ;;  %v315_v15 = vld [vmem:[%s8596_s1 + $0xd0] sm:$0xff] }
  0x17   : > { %v425_v27 = vmul.f32 %v5492_v4, %v298_v23  ;;  %v424_v28 = vmul.f32 %v5492_v4, %v297_v24  ;;  %v427_v33 = vmul.f32 %v5492_v4, %v300_v29  ;;  %v426_v34 = vmul.f32 %v5492_v4, %v299_v30  ;;  %v317_v21 = vld [vmem:[%s8596_s1 + $0xe0] sm:$0xff] }
  0x18   : > { %v429_v39 = vmul.f32 %v5492_v4, %v302_v35  ;;  %v428_v40 = vmul.f32 %v5492_v4, %v301_v36  ;;  %v431_v45 = vmul.f32 %v5492_v4, %v304_v41  ;;  %v430_v46 = vmul.f32 %v5492_v4, %v303_v42 }
  0x19   : > { %v564_v31 = vsel %vm536_vm0, %v425_v27, 0.0  ;;  %v561_v32 = vsel %vm536_vm0, %v424_v28, 0.0  ;;  %v570_v37 = vsel %vm536_vm0, %v427_v33, 0.0  ;;  %v567_v38 = vsel %vm536_vm0, %v426_v34, 0.0  ;;  %v319_v27 = vld [vmem:[%s8596_s1 + $0xf0] sm:$0xff]  ;;  %v321_v33 = vld [vmem:[%s8596_s1 + $0x100] sm:$0xff] }
  0x1a   : > { %547 = vadd.xlane.f32.xlu1 %v546_v13  ;;  %541 = vadd.xlane.f32.xlu0 %v540_v14  ;;  %v576_v43 = vsel %vm536_vm0, %v429_v39, 0.0  ;;  %v573_v44 = vsel %vm536_vm0, %v428_v40, 0.0  ;;  %v582_v49 = vsel %vm536_vm0, %v431_v45, 0.0  ;;  %v579_v50 = vsel %vm536_vm0, %v430_v46, 0.0  ;;  %v316_v14 = vld [vmem:[%s8596_s1 + $0xd8] sm:$0xff]  ;;  %v323_v39 = vld [vmem:[%s8596_s1 + $0x110] sm:$0xff] }
  0x1b   : > { %v433_v51 = vmul.f32 %v5492_v4, %v306_v47  ;;  %v432_v52 = vmul.f32 %v5492_v4, %v305_v48  ;;  %v435_v57 = vmul.f32 %v5492_v4, %v308_v53  ;;  %v434_v58 = vmul.f32 %v5492_v4, %v307_v54  ;;  %v325_v45 = vld [vmem:[%s8596_s1 + $0x120] sm:$0xff] }
  0x1c   : > { %v437_v63 = vmul.f32 %v5492_v4, %v310_v59  ;;  %v436_v0 = vmul.f32 %v5492_v4, %v309_v60  ;;  %v439_v6 = vmul.f32 %v5492_v4, %v312_v1  ;;  %v438_v7 = vmul.f32 %v5492_v4, %v311_v2 }
  0x1d   : > { %v588_v55 = vsel %vm536_vm0, %v433_v51, 0.0  ;;  %v585_v56 = vsel %vm536_vm0, %v432_v52, 0.0  ;;  %v594_v61 = vsel %vm536_vm0, %v435_v57, 0.0  ;;  %v591_v62 = vsel %vm536_vm0, %v434_v58, 0.0  ;;  %v327_v51 = vld [vmem:[%s8596_s1 + $0x130] sm:$0xff]  ;;  %v329_v57 = vld [vmem:[%s8596_s1 + $0x140] sm:$0xff] }
  0x1e   : > { %553 = vadd.xlane.f32.xlu1 %v552_v19  ;;  %550 = vadd.xlane.f32.xlu0 %v549_v20  ;;  %v600_v3 = vsel %vm536_vm0, %v437_v63, 0.0  ;;  %v597_v5 = vsel %vm536_vm0, %v436_v0, 0.0  ;;  %v606_v10 = vsel %vm536_vm0, %v439_v6, 0.0  ;;  %v603_v11 = vsel %vm536_vm0, %v438_v7, 0.0  ;;  %v318_v20 = vld [vmem:[%s8596_s1 + $0xe8] sm:$0xff]  ;;  %v331_v63 = vld [vmem:[%s8596_s1 + $0x150] sm:$0xff] }
  0x1f   : > { %v441_v12 = vmul.f32 %v5492_v4, %v314_v8  ;;  %v440_v13 = vmul.f32 %v5492_v4, %v313_v9  ;;  %v443_v18 = vmul.f32 %v5492_v4, %v316_v14  ;;  %v442_v19 = vmul.f32 %v5492_v4, %v315_v15  ;;  %v333_v6 = vld [vmem:[%s8596_s1 + $0x160] sm:$0xff] }
  0x20   : > { %v445_v24 = vmul.f32 %v5492_v4, %v318_v20 }
  0x21   : > { %v612_v16 = vsel %vm536_vm0, %v441_v12, 0.0  ;;  %v609_v17 = vsel %vm536_vm0, %v440_v13, 0.0  ;;  %v618_v22 = vsel %vm536_vm0, %v443_v18, 0.0  ;;  %v615_v23 = vsel %vm536_vm0, %v442_v19, 0.0  ;;  %v335_v12 = vld [vmem:[%s8596_s1 + $0x170] sm:$0xff]  ;;  %v337_v18 = vld [vmem:[%s8596_s1 + $0x180] sm:$0xff] }
  0x22   : > { %559 = vadd.xlane.f32.xlu1 %v558_v25  ;;  %556 = vadd.xlane.f32.xlu0 %v555_v26  ;;  %v444_v25 = vmul.f32 %v5492_v4, %v317_v21  ;;  %v320_v26 = vld [vmem:[%s8596_s1 + $0xf8] sm:$0xff]  ;;  %v624_v28 = vsel %vm536_vm0, %v445_v24, 0.0  ;;  %v339_v24 = vld [vmem:[%s8596_s1 + $0x190] sm:$0xff] }
  0x23   : > { %v447_v30 = vmul.f32 %v5492_v4, %v320_v26 }
  0x24   : > { %v621_v29 = vsel %vm536_vm0, %v444_v25, 0.0 }
  0x25   : > { %v630_v34 = vsel %vm536_vm0, %v447_v30, 0.0  ;;  %v341_v30 = vld [vmem:[%s8596_s1 + $0x1a0] sm:$0xff] }
  0x26   : > { %565 = vadd.xlane.f32.xlu1 %v564_v31  ;;  %562 = vadd.xlane.f32.xlu0 %v561_v32  ;;  %v446_v31 = vmul.f32 %v5492_v4, %v319_v27  ;;  %v322_v32 = vld [vmem:[%s8596_s1 + $0x108] sm:$0xff] }
  0x27   : > { %v449_v36 = vmul.f32 %v5492_v4, %v322_v32 }
  0x28   : > { %v627_v35 = vsel %vm536_vm0, %v446_v31, 0.0 }
  0x29   : > { %v636_v40 = vsel %vm536_vm0, %v449_v36, 0.0  ;;  %v343_v36 = vld [vmem:[%s8596_s1 + $0x1b0] sm:$0xff] }
  0x2a   : > { %571 = vadd.xlane.f32.xlu1 %v570_v37  ;;  %568 = vadd.xlane.f32.xlu0 %v567_v38  ;;  %v448_v37 = vmul.f32 %v5492_v4, %v321_v33  ;;  %v324_v38 = vld [vmem:[%s8596_s1 + $0x118] sm:$0xff] }
  0x2b   : > { %v451_v42 = vmul.f32 %v5492_v4, %v324_v38 }
  0x2c   : > { %v633_v41 = vsel %vm536_vm0, %v448_v37, 0.0 }
  0x2d   : > { %v642_v46 = vsel %vm536_vm0, %v451_v42, 0.0  ;;  %v345_v42 = vld [vmem:[%s8596_s1 + $0x1c0] sm:$0xff] }
  0x2e   : > { %577 = vadd.xlane.f32.xlu1 %v576_v43  ;;  %574 = vadd.xlane.f32.xlu0 %v573_v44  ;;  %v450_v43 = vmul.f32 %v5492_v4, %v323_v39  ;;  %v326_v44 = vld [vmem:[%s8596_s1 + $0x128] sm:$0xff] }
  0x2f   : > { %v453_v48 = vmul.f32 %v5492_v4, %v326_v44 }
  0x30   : > { %v639_v47 = vsel %vm536_vm0, %v450_v43, 0.0 }
  0x31   : > { %v648_v52 = vsel %vm536_vm0, %v453_v48, 0.0  ;;  %v347_v48 = vld [vmem:[%s8596_s1 + $0x1d0] sm:$0xff] }
  0x32   : > { %583 = vadd.xlane.f32.xlu1 %v582_v49  ;;  %580 = vadd.xlane.f32.xlu0 %v579_v50  ;;  %v452_v49 = vmul.f32 %v5492_v4, %v325_v45  ;;  %v328_v50 = vld [vmem:[%s8596_s1 + $0x138] sm:$0xff] }
  0x33   : > { %v455_v54 = vmul.f32 %v5492_v4, %v328_v50 }
  0x34   : > { %v645_v53 = vsel %vm536_vm0, %v452_v49, 0.0 }
  0x35   : > { %v654_v58 = vsel %vm536_vm0, %v455_v54, 0.0  ;;  %v349_v54 = vld [vmem:[%s8596_s1 + $0x1e0] sm:$0xff] }
  0x36   : > { %589 = vadd.xlane.f32.xlu1 %v588_v55  ;;  %586 = vadd.xlane.f32.xlu0 %v585_v56  ;;  %v454_v55 = vmul.f32 %v5492_v4, %v327_v51  ;;  %v330_v56 = vld [vmem:[%s8596_s1 + $0x148] sm:$0xff] }
  0x37   : > { %v457_v60 = vmul.f32 %v5492_v4, %v330_v56 }
  0x38   : > { %v651_v59 = vsel %vm536_vm0, %v454_v55, 0.0 }
  0x39   : > { %v660_v0 = vsel %vm536_vm0, %v457_v60, 0.0  ;;  %v351_v60 = vld [vmem:[%s8596_s1 + $0x1f0] sm:$0xff] }
  0x3a   : > { %595 = vadd.xlane.f32.xlu1 %v594_v61  ;;  %592 = vadd.xlane.f32.xlu0 %v591_v62  ;;  %v456_v61 = vmul.f32 %v5492_v4, %v329_v57  ;;  %v332_v62 = vld [vmem:[%s8596_s1 + $0x158] sm:$0xff] }
  0x3b   : > { %v459_v2 = vmul.f32 %v5492_v4, %v332_v62 }
  0x3c   : > { %v657_v1 = vsel %vm536_vm0, %v456_v61, 0.0 }
  0x3d   : > { %v666_v7 = vsel %vm536_vm0, %v459_v2, 0.0  ;;  %v353_v2 = vld [vmem:[%s8596_s1 + $0x200] sm:$0xff] }
  0x3e   : > { %601 = vadd.xlane.f32.xlu1 %v600_v3  ;;  %598 = vadd.xlane.f32.xlu0 %v597_v5  ;;  %v458_v3 = vmul.f32 %v5492_v4, %v331_v63  ;;  %v334_v5 = vld [vmem:[%s8596_s1 + $0x168] sm:$0xff] }
  0x3f   : > { %v461_v9 = vmul.f32 %v5492_v4, %v334_v5 }
  0x40   : > { %v663_v8 = vsel %vm536_vm0, %v458_v3, 0.0 }
  0x41   : > { %v672_v13 = vsel %vm536_vm0, %v461_v9, 0.0  ;;  %v355_v9 = vld [vmem:[%s8596_s1 + $0x210] sm:$0xff] }
  0x42   : > { %607 = vadd.xlane.f32.xlu1 %v606_v10  ;;  %604 = vadd.xlane.f32.xlu0 %v603_v11  ;;  %v460_v10 = vmul.f32 %v5492_v4, %v333_v6  ;;  %v336_v11 = vld [vmem:[%s8596_s1 + $0x178] sm:$0xff] }
  0x43   : > { %v463_v15 = vmul.f32 %v5492_v4, %v336_v11 }
  0x44   : > { %v669_v14 = vsel %vm536_vm0, %v460_v10, 0.0 }
  0x45   : > { %v678_v19 = vsel %vm536_vm0, %v463_v15, 0.0  ;;  %v357_v15 = vld [vmem:[%s8596_s1 + $0x220] sm:$0xff] }
  0x46   : > { %613 = vadd.xlane.f32.xlu1 %v612_v16  ;;  %610 = vadd.xlane.f32.xlu0 %v609_v17  ;;  %v462_v16 = vmul.f32 %v5492_v4, %v335_v12  ;;  %v338_v17 = vld [vmem:[%s8596_s1 + $0x188] sm:$0xff] }
  0x47   : > { %v465_v21 = vmul.f32 %v5492_v4, %v338_v17 }
  0x48   : > { %v675_v20 = vsel %vm536_vm0, %v462_v16, 0.0 }
  0x49   : > { %v684_v25 = vsel %vm536_vm0, %v465_v21, 0.0  ;;  %v360_v21 = vld [vmem:[%s8596_s1 + $0x238] sm:$0xff] }
  0x4a   : > { %619 = vadd.xlane.f32.xlu1 %v618_v22  ;;  %616 = vadd.xlane.f32.xlu0 %v615_v23  ;;  %v464_v22 = vmul.f32 %v5492_v4, %v337_v18  ;;  %v340_v23 = vld [vmem:[%s8596_s1 + $0x198] sm:$0xff] }
  0x4b   : > { %v467_v27 = vmul.f32 %v5492_v4, %v340_v23 }
  0x4c   : > { %v681_v26 = vsel %vm536_vm0, %v464_v22, 0.0  ;;  %v359_v22 = vld [vmem:[%s8596_s1 + $0x230] sm:$0xff] }
  0x4d   : > { %v690_v31 = vsel %vm536_vm0, %v467_v27, 0.0  ;;  %v362_v27 = vld [vmem:[%s8596_s1 + $0x248] sm:$0xff] }
  0x4e   : > { %625 = vadd.xlane.f32.xlu1 %v624_v28  ;;  %622 = vadd.xlane.f32.xlu0 %v621_v29  ;;  %v466_v28 = vmul.f32 %v5492_v4, %v339_v24  ;;  %v342_v29 = vld [vmem:[%s8596_s1 + $0x1a8] sm:$0xff] }
  0x4f   : > { %v469_v33 = vmul.f32 %v5492_v4, %v342_v29 }
  0x50   : > { %v687_v32 = vsel %vm536_vm0, %v466_v28, 0.0  ;;  %v361_v28 = vld [vmem:[%s8596_s1 + $0x240] sm:$0xff] }
  0x51   : > { %v696_v37 = vsel %vm536_vm0, %v469_v33, 0.0  ;;  %v364_v33 = vld [vmem:[%s8596_s1 + $0x258] sm:$0xff] }
  0x52   : > { %631 = vadd.xlane.f32.xlu1 %v630_v34  ;;  %628 = vadd.xlane.f32.xlu0 %v627_v35  ;;  %v468_v34 = vmul.f32 %v5492_v4, %v341_v30  ;;  %v344_v35 = vld [vmem:[%s8596_s1 + $0x1b8] sm:$0xff] }
  0x53   : > { %v471_v39 = vmul.f32 %v5492_v4, %v344_v35 }
  0x54   : > { %v693_v38 = vsel %vm536_vm0, %v468_v34, 0.0  ;;  %v363_v34 = vld [vmem:[%s8596_s1 + $0x250] sm:$0xff] }
  0x55   : > { %v702_v43 = vsel %vm536_vm0, %v471_v39, 0.0  ;;  %v491_v39 = vmul.f32 %v5492_v4, %v364_v33 }
  0x56   : > { %637 = vadd.xlane.f32.xlu1 %v636_v40  ;;  %634 = vadd.xlane.f32.xlu0 %v633_v41  ;;  %v470_v40 = vmul.f32 %v5492_v4, %v343_v36  ;;  %v346_v41 = vld [vmem:[%s8596_s1 + $0x1c8] sm:$0xff] }
  0x57   : > { %v473_v45 = vmul.f32 %v5492_v4, %v346_v41  ;;  %v366_v41 = vld [vmem:[%s8596_s1 + $0x268] sm:$0xff] }
  0x58   : > { %v699_v44 = vsel %vm536_vm0, %v470_v40, 0.0  ;;  %v490_v40 = vmul.f32 %v5492_v4, %v363_v34  ;;  %v380_v34 = vld [vmem:[%s8596_s1 + $0x2d8] sm:$0xff] }
  0x59   : > { %v708_v49 = vsel %vm536_vm0, %v473_v45, 0.0  ;;  %v762_v45 = vsel %vm536_vm0, %v491_v39, 0.0 }
  0x5a   : > { %643 = vadd.xlane.f32.xlu1 %v642_v46  ;;  %640 = vadd.xlane.f32.xlu0 %v639_v47  ;;  %v472_v46 = vmul.f32 %v5492_v4, %v345_v42  ;;  %v348_v47 = vld [vmem:[%s8596_s1 + $0x1d8] sm:$0xff]  ;;  %v365_v42 = vld [vmem:[%s8596_s1 + $0x260] sm:$0xff] }
  0x5b   : > { %v475_v51 = vmul.f32 %v5492_v4, %v348_v47  ;;  %v493_v47 = vmul.f32 %v5492_v4, %v366_v41 }
  0x5c   : > { %v705_v50 = vsel %vm536_vm0, %v472_v46, 0.0  ;;  %v759_v46 = vsel %vm536_vm0, %v490_v40, 0.0 }
  0x5d   : > { %v714_v55 = vsel %vm536_vm0, %v475_v51, 0.0 }
  0x5e   : > { %649 = vadd.xlane.f32.xlu1 %v648_v52  ;;  %646 = vadd.xlane.f32.xlu0 %v645_v53  ;;  %v474_v52 = vmul.f32 %v5492_v4, %v347_v48  ;;  %v350_v53 = vld [vmem:[%s8596_s1 + $0x1e8] sm:$0xff]  ;;  %v492_v48 = vmul.f32 %v5492_v4, %v365_v42  ;;  %v507_v42 = vmul.f32 %v5492_v4, %v380_v34 }
  0x5f   : > { %v477_v57 = vmul.f32 %v5492_v4, %v350_v53  ;;  %v768_v53 = vsel %vm536_vm0, %v493_v47, 0.0  ;;  %v381_v47 = vld [vmem:[%s8596_s1 + $0x2e0] sm:$0xff] }
  0x60   : > { %v711_v56 = vsel %vm536_vm0, %v474_v52, 0.0 }
  0x61   : > { %v720_v61 = vsel %vm536_vm0, %v477_v57, 0.0  ;;  %v370_v57 = vld [vmem:[%s8596_s1 + $0x288] sm:$0xff] }
  0x62   : > { %655 = vadd.xlane.f32.xlu1 %v654_v58  ;;  %652 = vadd.xlane.f32.xlu0 %v651_v59  ;;  %v476_v58 = vmul.f32 %v5492_v4, %v349_v54  ;;  %v352_v59 = vld [vmem:[%s8596_s1 + $0x1f8] sm:$0xff]  ;;  %v765_v54 = vsel %vm536_vm0, %v492_v48, 0.0 }
  0x63   : > { %v479_v63 = vmul.f32 %v5492_v4, %v352_v59 }
  0x64   : > { %v717_v62 = vsel %vm536_vm0, %v476_v58, 0.0  ;;  %v369_v58 = vld [vmem:[%s8596_s1 + $0x280] sm:$0xff] }
  0x65   : > { %v726_v3 = vsel %vm536_vm0, %v479_v63, 0.0  ;;  %v497_v63 = vmul.f32 %v5492_v4, %v370_v57  ;;  %v383_v57 = vld [vmem:[%s8596_s1 + $0x2f0] sm:$0xff] }
  0x66   : > { %661 = vadd.xlane.f32.xlu1 %v660_v0  ;;  %658 = vadd.xlane.f32.xlu0 %v657_v1  ;;  %v478_v0 = vmul.f32 %v5492_v4, %v351_v60  ;;  %v354_v1 = vld [vmem:[%s8596_s1 + $0x208] sm:$0xff] }
  0x67   : > { %v481_v6 = vmul.f32 %v5492_v4, %v354_v1  ;;  %v372_v1 = vld [vmem:[%s8596_s1 + $0x298] sm:$0xff] }
  0x68   : > { %v723_v5 = vsel %vm536_vm0, %v478_v0, 0.0  ;;  %v496_v0 = vmul.f32 %v5492_v4, %v369_v58 }
  0x69   : > { %v732_v10 = vsel %vm536_vm0, %v481_v6, 0.0  ;;  %v780_v6 = vsel %vm536_vm0, %v497_v63, 0.0 }
  0x6a   : > { %667 = vadd.xlane.f32.xlu1 %v666_v7  ;;  %664 = vadd.xlane.f32.xlu0 %v663_v8  ;;  %v480_v7 = vmul.f32 %v5492_v4, %v353_v2  ;;  %v356_v8 = vld [vmem:[%s8596_s1 + $0x218] sm:$0xff]  ;;  %v371_v2 = vld [vmem:[%s8596_s1 + $0x290] sm:$0xff] }
  0x6b   : > { %v483_v12 = vmul.f32 %v5492_v4, %v356_v8  ;;  %v499_v8 = vmul.f32 %v5492_v4, %v372_v1  ;;  %v510_v1 = vmul.f32 %v5492_v4, %v383_v57 }
  0x6c   : > { %v729_v11 = vsel %vm536_vm0, %v480_v7, 0.0  ;;  %v777_v7 = vsel %vm536_vm0, %v496_v0, 0.0 }
  0x6d   : > { %v738_v16 = vsel %vm536_vm0, %v483_v12, 0.0 }
  0x6e   : > { %673 = vadd.xlane.f32.xlu1 %v672_v13  ;;  %670 = vadd.xlane.f32.xlu0 %v669_v14  ;;  %v482_v13 = vmul.f32 %v5492_v4, %v355_v9  ;;  %v358_v14 = vld [vmem:[%s8596_s1 + $0x228] sm:$0xff]  ;;  %v498_v9 = vmul.f32 %v5492_v4, %v371_v2 }
  0x6f   : > { %v485_v18 = vmul.f32 %v5492_v4, %v358_v14  ;;  %v786_v14 = vsel %vm536_vm0, %v499_v8, 0.0  ;;  %v386_v2 = vld [vmem:[%s8596_s1 + $0x308] sm:$0xff] }
  0x70   : > { %v735_v17 = vsel %vm536_vm0, %v482_v13, 0.0 }
  0x71   : > { %v744_v23 = vsel %vm536_vm0, %v485_v18, 0.0  ;;  %v376_v18 = vld [vmem:[%s8596_s1 + $0x2b8] sm:$0xff] }
  0x72   : > { %679 = vadd.xlane.f32.xlu1 %v678_v19  ;;  %676 = vadd.xlane.f32.xlu0 %v675_v20  ;;  %v484_v19 = vmul.f32 %v5492_v4, %v357_v15  ;;  %v5417_v20 = vmov 0   ;;  %v783_v15 = vsel %vm536_vm0, %v498_v9, 0.0 }
  0x73   : > { %4926 = vset.pattern.permute.xlu1 %v5417_v20  ;;  %4927 = vset.pattern.permute.xlu0 %v5417_v20 }
  0x74   : > { %v741_v24 = vsel %vm536_vm0, %v484_v19, 0.0  ;;  %v375_v19 = vld [vmem:[%s8596_s1 + $0x2b0] sm:$0xff] }
  0x76   : > { %685 = vadd.xlane.f32.xlu1 %v684_v25  ;;  %682 = vadd.xlane.f32.xlu0 %v681_v26  ;;  %v487_v25 = vmul.f32 %v5492_v4, %v360_v21  ;;  %v486_v26 = vmul.f32 %v5492_v4, %v359_v22 }
  0x78   : > { %v750_v29 = vsel %vm536_vm0, %v487_v25, 0.0  ;;  %v747_v30 = vsel %vm536_vm0, %v486_v26, 0.0  ;;  %v502_v25 = vmul.f32 %v5492_v4, %v375_v19  ;;  %v378_v26 = vld [vmem:[%s8596_s1 + $0x2c8] sm:$0xff] }
  0x7a   : > { %691 = vadd.xlane.f32.xlu1 %v690_v31  ;;  %688 = vadd.xlane.f32.xlu0 %v687_v32  ;;  %v489_v31 = vmul.f32 %v5492_v4, %v362_v27  ;;  %v488_v32 = vmul.f32 %v5492_v4, %v361_v28  ;;  %v377_v27 = vld [vmem:[%s8596_s1 + $0x2c0] sm:$0xff] }
  0x7b   : > { %v504_v33 = vmul.f32 %v5492_v4, %v377_v27 }
  0x7d   : > { %v801_v41 = vsel %vm536_vm0, %v504_v33, 0.0 }
  0x7e   : > { %697 = vadd.xlane.f32.xlu1 %v696_v37  ;;  %694 = vadd.xlane.f32.xlu0 %v693_v38  ;;  %v756_v37 = vsel %vm536_vm0, %v489_v31, 0.0  ;;  %v753_v38 = vsel %vm536_vm0, %v488_v32, 0.0  ;;  %v795_v31 = vsel %vm536_vm0, %v502_v25, 0.0  ;;  %v505_v32 = vmul.f32 %v5492_v4, %v378_v26  ;;  %v390_v25 = vld [vmem:[%s8596_s1 + $0x328] sm:$0xff]  ;;  %v389_v26 = vld [vmem:[%s8596_s1 + $0x320] sm:$0xff] }
  0x7f   : > { %v517_v33 = vmul.f32 %v5492_v4, %v390_v25  ;;  %v516_v34 = vmul.f32 %v5492_v4, %v389_v26 }
  0x80   : > { %v804_v40 = vsel %vm536_vm0, %v505_v32, 0.0 }
  0x82   : > { %703 = vadd.xlane.f32.xlu1 %v702_v43  ;;  %700 = vadd.xlane.f32.xlu0 %v699_v44 }
  0x86   : > { %709 = vadd.xlane.f32.xlu1 %v708_v49  ;;  %706 = vadd.xlane.f32.xlu0 %v705_v50  ;;  %v368_v49 = vld [vmem:[%s8596_s1 + $0x278] sm:$0xff]  ;;  %v367_v50 = vld [vmem:[%s8596_s1 + $0x270] sm:$0xff] }
  0x8a   : > { %715 = vadd.xlane.f32.xlu1 %v714_v55  ;;  %712 = vadd.xlane.f32.xlu0 %v711_v56  ;;  %v495_v55 = vmul.f32 %v5492_v4, %v368_v49  ;;  %v494_v56 = vmul.f32 %v5492_v4, %v367_v50  ;;  %v810_v50 = vsel %vm536_vm0, %v507_v42, 0.0 }
  0x8e   : > { %721 = vadd.xlane.f32.xlu1 %v720_v61  ;;  %718 = vadd.xlane.f32.xlu0 %v717_v62  ;;  %v774_v61 = vsel %vm536_vm0, %v495_v55, 0.0  ;;  %v771_v62 = vsel %vm536_vm0, %v494_v56, 0.0  ;;  %v508_v55 = vmul.f32 %v5492_v4, %v381_v47  ;;  %v384_v56 = vld [vmem:[%s8596_s1 + $0x2f8] sm:$0xff] }
  0x8f   : > { %v511_v0 = vmul.f32 %v5492_v4, %v384_v56 }
  0x90   : > { %v813_v63 = vsel %vm536_vm0, %v508_v55, 0.0 }
  0x91   : > { %v822_v9 = vsel %vm536_vm0, %v511_v0, 0.0 }
  0x92   : > { %727 = vadd.xlane.f32.xlu1 %v726_v3  ;;  %724 = vadd.xlane.f32.xlu0 %v723_v5 }
  0x96   : > { %733 = vadd.xlane.f32.xlu1 %v732_v10  ;;  %730 = vadd.xlane.f32.xlu0 %v729_v11  ;;  %v374_v10 = vld [vmem:[%s8596_s1 + $0x2a8] sm:$0xff]  ;;  %v373_v11 = vld [vmem:[%s8596_s1 + $0x2a0] sm:$0xff] }
  0x9a   : > { %739 = vadd.xlane.f32.xlu1 %v738_v16  ;;  %736 = vadd.xlane.f32.xlu0 %v735_v17  ;;  %v501_v16 = vmul.f32 %v5492_v4, %v374_v10  ;;  %v500_v17 = vmul.f32 %v5492_v4, %v373_v11  ;;  %v819_v10 = vsel %vm536_vm0, %v510_v1, 0.0  ;;  %v513_v11 = vmul.f32 %v5492_v4, %v386_v2  ;;  %v396_v1 = vld [vmem:[%s8596_s1 + $0x358] sm:$0xff]  ;;  %v395_v2 = vld [vmem:[%s8596_s1 + $0x350] sm:$0xff] }
  0x9c   : > { %v792_v22 = vsel %vm536_vm0, %v501_v16, 0.0  ;;  %v387_v16 = vld [vmem:[%s8596_s1 + $0x310] sm:$0xff]  ;;  %v828_v19 = vsel %vm536_vm0, %v513_v11, 0.0 }
  0x9e   : > { %745 = vadd.xlane.f32.xlu1 %v744_v23  ;;  %742 = vadd.xlane.f32.xlu0 %v741_v24  ;;  %v789_v23 = vsel %vm536_vm0, %v500_v17, 0.0  ;;  %v503_v24 = vmul.f32 %v5492_v4, %v376_v18 }
  0xa2   : > { %751 = vadd.xlane.f32.xlu1 %v750_v29  ;;  %748 = vadd.xlane.f32.xlu0 %v747_v30  ;;  %v798_v30 = vsel %vm536_vm0, %v503_v24, 0.0  ;;  %v514_v24 = vmul.f32 %v5492_v4, %v387_v16  ;;  %v398_v16 = vld [vmem:[%s8596_s1 + $0x368] sm:$0xff] }
  0xa3   : > { %v5856_v35 = vpop.xlane.xlu1 %544  ;;  %v5858_v36 = vpop.xlane.xlu0 %538  ;;  %v525_v26 = vmul.f32 %v5492_v4, %v398_v16 }
  0xa4   : > { %v831_v32 = vsel %vm536_vm0, %v514_v24, 0.0 }
  0xa6   : > { %757 = vadd.xlane.f32.xlu1 %v756_v37  ;;  %754 = vadd.xlane.f32.xlu0 %v753_v38  ;;  %v379_v37 = vld [vmem:[%s8596_s1 + $0x2d0] sm:$0xff] }
  0xa7   : > { %v5870_v43 = vpop.xlane.xlu1 %547  ;;  %v5872_v44 = vpop.xlane.xlu0 %541 }
  0xaa   : > { %763 = vadd.xlane.f32.xlu1 %v762_v45  ;;  %760 = vadd.xlane.f32.xlu0 %v759_v46  ;;  %v506_v45 = vmul.f32 %v5492_v4, %v379_v37  ;;  %v382_v46 = vld [vmem:[%s8596_s1 + $0x2e8] sm:$0xff]  ;;  %v392_v37 = vld [vmem:[%s8596_s1 + $0x338] sm:$0xff] }
  0xab   : > { %v5884_v51 = vpop.xlane.xlu1 %553  ;;  %v5886_v52 = vpop.xlane.xlu0 %550  ;;  %v519_v47 = vmul.f32 %v5492_v4, %v392_v37 }
  0xad   : > { %v846_v57 = vsel %vm536_vm0, %v519_v47, 0.0 }
  0xae   : > { %769 = vadd.xlane.f32.xlu1 %v768_v53  ;;  %766 = vadd.xlane.f32.xlu0 %v765_v54  ;;  %v807_v53 = vsel %vm536_vm0, %v506_v45, 0.0  ;;  %v509_v54 = vmul.f32 %v5492_v4, %v382_v46  ;;  %v840_v45 = vsel %vm536_vm0, %v517_v33, 0.0  ;;  %v837_v46 = vsel %vm536_vm0, %v516_v34, 0.0  ;;  %v399_v33 = vld [vmem:[%s8596_s1 + $0x370] sm:$0xff] }
  0xaf   : > { %v5898_v59 = vpop.xlane.xlu1 %559  ;;  %v5900_v60 = vpop.xlane.xlu0 %556  ;;  %v526_v47 = vmul.f32 %v5492_v4, %v399_v33  ;;  %v406_v33 = vld [vmem:[%s8596_s1 + $0x3a8] sm:$0xff] }
  0xb2   : > { %775 = vadd.xlane.f32.xlu1 %v774_v61  ;;  %772 = vadd.xlane.f32.xlu0 %v771_v62  ;;  %v816_v62 = vsel %vm536_vm0, %v509_v54, 0.0  ;;  %v393_v54 = vld [vmem:[%s8596_s1 + $0x340] sm:$0xff] }
  0xb3   : > { %v5912_v3 = vpop.xlane.xlu1 %565  ;;  %v5914_v5 = vpop.xlane.xlu0 %562  ;;  %v520_v0 = vmul.f32 %v5492_v4, %v393_v54  ;;  %v401_v54 = vld [vmem:[%s8596_s1 + $0x380] sm:$0xff] }
  0xb5   : > { %v849_v11 = vsel %vm536_vm0, %v520_v0, 0.0 }
  0xb6   : > { %781 = vadd.xlane.f32.xlu1 %v780_v6  ;;  %778 = vadd.xlane.f32.xlu0 %v777_v7  ;;  %v385_v6 = vld [vmem:[%s8596_s1 + $0x300] sm:$0xff] }
  0xb7   : > { %v5926_v12 = vpop.xlane.xlu1 %571  ;;  %v5928_v13 = vpop.xlane.xlu0 %568 }
  0xba   : > { %787 = vadd.xlane.f32.xlu1 %v786_v14  ;;  %784 = vadd.xlane.f32.xlu0 %v783_v15  ;;  %v512_v14 = vmul.f32 %v5492_v4, %v385_v6  ;;  %v388_v15 = vld [vmem:[%s8596_s1 + $0x318] sm:$0xff] }
  0xbb   : > { %v5940_v20 = vpop.xlane.xlu1 %577  ;;  %v5942_v21 = vpop.xlane.xlu0 %574 }
  0xbe   : > { %793 = vadd.xlane.f32.xlu1 %v792_v22  ;;  %790 = vadd.xlane.f32.xlu0 %v789_v23  ;;  %v825_v22 = vsel %vm536_vm0, %v512_v14, 0.0  ;;  %v515_v23 = vmul.f32 %v5492_v4, %v388_v15  ;;  %v523_v14 = vmul.f32 %v5492_v4, %v396_v1  ;;  %v522_v15 = vmul.f32 %v5492_v4, %v395_v2 }
  0xbf   : > { %v5954_v28 = vpop.xlane.xlu1 %583  ;;  %v5956_v29 = vpop.xlane.xlu0 %580  ;;  %v867_v1 = vsel %vm536_vm0, %v526_v47, 0.0 }
  0xc0   : > { %v858_v24 = vsel %vm536_vm0, %v523_v14, 0.0  ;;  %v855_v25 = vsel %vm536_vm0, %v522_v15, 0.0  ;;  %v403_v14 = vld [vmem:[%s8596_s1 + $0x390] sm:$0xff] }
  0xc2   : > { %799 = vadd.xlane.f32.xlu1 %v798_v30  ;;  %796 = vadd.xlane.f32.xlu0 %v795_v31  ;;  %v834_v31 = vsel %vm536_vm0, %v515_v23, 0.0 }
  0xc3   : > { %v5968_v38 = vpop.xlane.xlu1 %589  ;;  %v5970_v39 = vpop.xlane.xlu0 %586 }
  0xc6   : > { %805 = vadd.xlane.f32.xlu1 %v804_v40  ;;  %802 = vadd.xlane.f32.xlu0 %v801_v41  ;;  %v391_v40 = vld [vmem:[%s8596_s1 + $0x330] sm:$0xff] }
  0xc7   : > { %v5982_v48 = vpop.xlane.xlu1 %595  ;;  %v5984_v49 = vpop.xlane.xlu0 %592 }
  0xca   : > { %811 = vadd.xlane.f32.xlu1 %v810_v50  ;;  %808 = vadd.xlane.f32.xlu0 %v807_v53  ;;  %v518_v50 = vmul.f32 %v5492_v4, %v391_v40  ;;  %v394_v53 = vld [vmem:[%s8596_s1 + $0x348] sm:$0xff] }
  0xcb   : > { %v5996_v58 = vpop.xlane.xlu1 %601  ;;  %v5998_v61 = vpop.xlane.xlu0 %598 }
  0xce   : > { %817 = vadd.xlane.f32.xlu1 %v816_v62  ;;  %814 = vadd.xlane.f32.xlu0 %v813_v63  ;;  %v843_v62 = vsel %vm536_vm0, %v518_v50, 0.0  ;;  %v521_v63 = vmul.f32 %v5492_v4, %v394_v53  ;;  %v898_v50 = vld [vmem:[%s8597_s2 + $0x8] sm:$0xff] }
  0xcf   : > { %v6010_v7 = vpop.xlane.xlu1 %607  ;;  %v6012_v8 = vpop.xlane.xlu0 %604  ;;  %v402_v53 = vld [vmem:[%s8596_s1 + $0x388] sm:$0xff] }
  0xd0   : > { %v529_v2 = vmul.f32 %v5492_v4, %v402_v53 }
  0xd2   : > { %823 = vadd.xlane.f32.xlu1 %v822_v9  ;;  %820 = vadd.xlane.f32.xlu0 %v819_v10  ;;  %v852_v10 = vsel %vm536_vm0, %v521_v63, 0.0 }
  0xd3   : > { %v6024_v17 = vpop.xlane.xlu1 %613  ;;  %v6026_v18 = vpop.xlane.xlu0 %610 }
  0xd6   : > { %829 = vadd.xlane.f32.xlu1 %v828_v19  ;;  %826 = vadd.xlane.f32.xlu0 %v825_v22  ;;  %v397_v19 = vld [vmem:[%s8596_s1 + $0x360] sm:$0xff] }
  0xd7   : > { %v6038_v27 = vpop.xlane.xlu1 %619  ;;  %v6040_v30 = vpop.xlane.xlu0 %616 }
  0xda   : > { %835 = vadd.xlane.f32.xlu1 %v834_v31  ;;  %832 = vadd.xlane.f32.xlu0 %v831_v32  ;;  %v524_v31 = vmul.f32 %v5492_v4, %v397_v19  ;;  %v400_v32 = vld [vmem:[%s8596_s1 + $0x378] sm:$0xff] }
  0xdb   : > { %v6052_v41 = vpop.xlane.xlu1 %625  ;;  %v6054_v42 = vpop.xlane.xlu0 %622  ;;  %v527_v34 = vmul.f32 %v5492_v4, %v400_v32 }
  0xde   : > { %841 = vadd.xlane.f32.xlu1 %v840_v45  ;;  %838 = vadd.xlane.f32.xlu0 %v837_v46  ;;  %v864_v45 = vsel %vm536_vm0, %v525_v26, 0.0  ;;  %v861_v46 = vsel %vm536_vm0, %v524_v31, 0.0  ;;  %v530_v31 = vmul.f32 %v5492_v4, %v403_v14 }
  0xdf   : > { %v6066_v55 = vpop.xlane.xlu1 %631  ;;  %v6068_v56 = vpop.xlane.xlu0 %628 }
  0xe0   : > { %v879_v47 = vsel %vm536_vm0, %v530_v31, 0.0 }
  0xe2   : > { %847 = vadd.xlane.f32.xlu1 %v846_v57  ;;  %844 = vadd.xlane.f32.xlu0 %v843_v62  ;;  %v870_v57 = vsel %vm536_vm0, %v527_v34, 0.0  ;;  %v1018_v62 = vadd.f32 %v898_v50, %v5872_v44  ;;  %v897_v44 = vld [vmem:[%s8597_s2] sm:$0xff] }
  0xe3   : > { %v6080_v6 = vpop.xlane.xlu1 %637  ;;  %v6082_v9 = vpop.xlane.xlu0 %634  ;;  %v1017_v32 = vadd.f32 %v897_v44, %v5858_v36  ;;  %v405_v34 = vld [vmem:[%s8596_s1 + $0x3a0] sm:$0xff] }
  0xe4   : > { %v4582_v16 = vmul.f32 -1.442695, %v1018_v62  ;;  %v5408_v50 = vld [vmem:[%s5489_s14] ss:$0 sm:$0xff] }
  0xe5   : > { %v533_v53 = vmul.f32 %v5408_v50, %v406_v33 }
  0xe6   : > { %853 = vadd.xlane.f32.xlu1 %v852_v10  ;;  %850 = vadd.xlane.f32.xlu0 %v849_v11  ;;  %v528_v10 = vmul.f32 %v5492_v4, %v401_v54  ;;  %v404_v11 = vld [vmem:[%s8596_s1 + $0x398] sm:$0xff]  ;;  %4928 = vpow2.f32 %v4582_v16  ;;  %v532_v54 = vmul.f32 %v5408_v50, %v405_v34 }
  0xe7   : > { %v6094_v22 = vpop.xlane.xlu1 %643  ;;  %v6096_v23 = vpop.xlane.xlu0 %640  ;;  %v531_v15 = vmul.f32 %v5492_v4, %v404_v11  ;;  %v888_v14 = vsel %vm536_vm0, %v533_v53, 0.0 }
  0xe8   : > { %v873_v26 = vsel %vm536_vm0, %v528_v10, 0.0  ;;  %v885_v44 = vsel %vm536_vm0, %v532_v54, 0.0 }
  0xea   : > { %859 = vadd.xlane.f32.xlu1 %v858_v24  ;;  %856 = vadd.xlane.f32.xlu0 %v855_v25  ;;  %v876_v25 = vsel %vm536_vm0, %v529_v2, 0.0  ;;  %v408_v2 = vld [vmem:[%s8596_s1 + $0x3b8] sm:$0xff] }
  0xeb   : > { %v6109_v37 = vpop.xlane.xlu1 %649  ;;  %v6111_v40 = vpop.xlane.xlu0 %646 }
  0xee   : > { %865 = vadd.xlane.f32.xlu1 %v864_v45  ;;  %862 = vadd.xlane.f32.xlu0 %v861_v46  ;;  %v902_v45 = vld [vmem:[%s8597_s2 + $0x28] sm:$0xff]  ;;  %v882_v46 = vsel %vm536_vm0, %v531_v15, 0.0 }
  0xef   : > { %v6127_v63 = vpop.xlane.xlu1 %655  ;;  %v6129_v0 = vpop.xlane.xlu0 %652  ;;  %v1022_v62 = vadd.f32 %v902_v45, %v5884_v51  ;;  %v535_v51 = vmul.f32 %v5408_v50, %v408_v2 }
  0xf0   : > { %v4929_v33 = vpop.eup %4928 }
  0xf1   : > { %v4586_v16 = vmul.f32 -1.442695, %v1022_v62  ;;  %v899_v62 = vld [vmem:[%s8597_s2 + $0x10] sm:$0xff] }
  0xf2   : > { %871 = vadd.xlane.f32.xlu1 %v870_v57  ;;  %868 = vadd.xlane.f32.xlu0 %v867_v1  ;;  %v4581_v57 = vmul.f32 -1.442695, %v1017_v32  ;;  %v407_v1 = vld [vmem:[%s8596_s1 + $0x3b0] sm:$0xff]  ;;  %v894_v32 = vsel %vm536_vm0, %v535_v51, 0.0 }
  0xf3   : > { %v6144_v19 = vpop.xlane.xlu1 %661  ;;  %v6146_v24 = vpop.xlane.xlu0 %658  ;;  %v534_v15 = vmul.f32 %v5408_v50, %v407_v1 }
  0xf4   : > { %4930 = vpow2.f32 %v4581_v57 }
  0xf5   : > { %v891_v31 = vsel %vm536_vm0, %v534_v15, 0.0  ;;  %4932 = vpow2.f32 %v4586_v16  ;;  %v900_v15 = vld [vmem:[%s8597_s2 + $0x18] sm:$0xff] }
  0xf6   : > { %877 = vadd.xlane.f32.xlu1 %v876_v25  ;;  %874 = vadd.xlane.f32.xlu0 %v873_v26 }
  0xf7   : > { %v6162_v4 = vpop.xlane.xlu1 %667  ;;  %v6164_v36 = vpop.xlane.xlu0 %664 }
  0xfa   : > { %883 = vadd.xlane.f32.xlu1 %v882_v46  ;;  %880 = vadd.xlane.f32.xlu0 %v879_v47  ;;  %v1498_v46 = vadd.f32 1.0, %v4929_v33  ;;  %v1020_v33 = vadd.f32 %v900_v15, %v5870_v43 }
  0xfb   : > { %v6175_v10 = vpop.xlane.xlu1 %673  ;;  %v6177_v11 = vpop.xlane.xlu0 %670 }
  0xfc   : > { %4934 = vrcp.f32 %v1498_v46  ;;  %v901_v46 = vld [vmem:[%s8597_s2 + $0x20] sm:$0xff] }
  0xfe   : > { %889 = vadd.xlane.f32.xlu1 %v888_v14  ;;  %886 = vadd.xlane.f32.xlu0 %v885_v44  ;;  %v4931_v47 = vpop.eup %4930  ;;  %v1019_v44 = vadd.f32 %v899_v62, %v5856_v35 }
  0xff   : > { %v6181_v25 = vpop.xlane.xlu1 %679  ;;  %v6183_v26 = vpop.xlane.xlu0 %676  ;;  %v1497_v54 = vadd.f32 1.0, %v4931_v47 }
 0x100   : > { %8603 = vst [vmem:[#allocation2_spill] sm:$0xff] %v6181_v25  ;;  %8604 = vst [vmem:[#allocation3_spill] sm:$0xff] %v6183_v26  ;;  %v4933_v57 = vpop.eup %4932 }
 0x101   : > { %4936 = vrcp.f32 %v1497_v54  ;;  %v1502_v14 = vadd.f32 1.0, %v4933_v57  ;;  %v1021_v54 = vadd.f32 %v901_v46, %v5886_v52  ;;  %v4584_v57 = vmul.f32 -1.442695, %v1020_v33 }
 0x102   : > { %892 = vadd.xlane.f32.xlu1 %v891_v31  ;;  %895 = vadd.xlane.f32.xlu0 %v894_v32  ;;  %v4583_v32 = vmul.f32 -1.442695, %v1019_v44 }
 0x103   : > { %v6187_v34 = vpop.xlane.xlu1 %685  ;;  %v6189_v45 = vpop.xlane.xlu0 %682  ;;  %4938 = vrcp.f32 %v1502_v14  ;;  %v904_v14 = vld [vmem:[%s8597_s2 + $0x38] sm:$0xff]  ;;  %v4585_v15 = vmul.f32 -1.442695, %v1021_v54  ;;  %v906_v54 = vld [vmem:[%s8597_s2 + $0x48] sm:$0xff] }
 0x104   : > { %8605 = vst [vmem:[#allocation4_spill] sm:$0xff] %v6187_v34  ;;  %8606 = vst [vmem:[#allocation5_spill] sm:$0xff] %v6189_v45  ;;  %4940 = vpow2.f32 %v4583_v32  ;;  %v1024_v52 = vadd.f32 %v904_v14, %v5898_v59  ;;  %v1026_v14 = vadd.f32 %v906_v54, %v5912_v3 }
 0x105   : > { %4942 = vpow2.f32 %v4584_v57 }
 0x106   : > { %v4935_v31 = vpop.eup %4934  ;;  %4944 = vpow2.f32 %v4585_v15  ;;  %v961_v15 = vld [vmem:[%s8597_s2 + $0x200] sm:$0xff] }
 0x107   : > { %v6191_v50 = vpop.xlane.xlu1 %691  ;;  %v6193_v53 = vpop.xlane.xlu0 %688 }
 0x108   : > { %8607 = vst [vmem:[#allocation6_spill] sm:$0xff] %v6191_v50  ;;  %8608 = vst [vmem:[#allocation7_spill] sm:$0xff] %v6193_v53 }
 0x10b   : > { %v6198_v1 = vpop.xlane.xlu1 %697  ;;  %v6200_v2 = vpop.xlane.xlu0 %694 }
 0x10c   : > { %8609 = vst [vmem:[#allocation8_spill] sm:$0xff] %v6198_v1  ;;  %8610 = vst [vmem:[#allocation9_spill] sm:$0xff] %v6200_v2  ;;  %v4937_v62 = vpop.eup %4936 }
 0x10d   : > { %v4939_v32 = vpop.eup %4938 }
 0x10e   : > { %v4941_v57 = vpop.eup %4940 }
 0x10f   : > { %v6206_v51 = vpop.xlane.xlu1 %703  ;;  %v6208_v16 = vpop.xlane.xlu0 %700 }
 0x110   : > { %8611 = vst [vmem:[#allocation10_spill] sm:$0xff] %v6206_v51  ;;  %8612 = vst [vmem:[#allocation11_spill] sm:$0xff] %v6208_v16  ;;  %v910_v16 = vld [vmem:[%s8597_s2 + $0x68] sm:$0xff] }
 0x113   : > { %v6214_v47 = vpop.xlane.xlu1 %709  ;;  %2104 = vperm.xlu1 %4926, %v4935_v31   ;;  %v6216_v35 = vpop.xlane.xlu0 %706  ;;  %v903_v31 = vld [vmem:[%s8597_s2 + $0x30] sm:$0xff] }
 0x114   : > { %8613 = vst [vmem:[#allocation12_spill] sm:$0xff] %v6214_v47  ;;  %8614 = vst [vmem:[#allocation13_spill] sm:$0xff] %v6216_v35  ;;  %v1023_v35 = vadd.f32 %v903_v31, %v5900_v60  ;;  %v962_v60 = vld [vmem:[%s8597_s2 + $0x208] sm:$0xff]  ;;  %v908_v31 = vld [vmem:[%s8597_s2 + $0x58] sm:$0xff]  ;;  %v4590_v47 = vmul.f32 -1.442695, %v1026_v14 }
 0x116   : > { %v4587_v59 = vmul.f32 -1.442695, %v1023_v35  ;;  %v1499_v35 = vadd.f32 1.0, %v4941_v57 }
 0x117   : > { %v6222_v44 = vpop.xlane.xlu1 %715  ;;  %v6224_v43 = vpop.xlane.xlu0 %712 }
 0x118   : > { %8615 = vst [vmem:[#allocation14_spill] sm:$0xff] %v6222_v44  ;;  %8616 = vst [vmem:[#allocation15_spill] sm:$0xff] %v6224_v43  ;;  %2099 = vperm.xlu0 %4927, %v4937_v62   ;;  %v4588_v44 = vmul.f32 -1.442695, %v1024_v52 }
 0x11a   : > { %4946 = vpow2.f32 %v4588_v44  ;;  %v1028_v44 = vadd.f32 %v908_v31, %v5926_v12  ;;  %v1030_v12 = vadd.f32 %v910_v16, %v5940_v20 }
 0x11b   : > { %v6230_v33 = vpop.xlane.xlu1 %721  ;;  %v6232_v46 = vpop.xlane.xlu0 %718  ;;  %4948 = vpow2.f32 %v4587_v59  ;;  %v963_v59 = vld [vmem:[%s8597_s2 + $0x210] sm:$0xff] }
 0x11c   : > { %8617 = vst [vmem:[#allocation16_spill] sm:$0xff] %v6230_v33  ;;  %8618 = vst [vmem:[#allocation17_spill] sm:$0xff] %v6232_v46  ;;  %2124 = vperm.xlu0 %4927, %v4939_v32   ;;  %v905_v46 = vld [vmem:[%s8597_s2 + $0x40] sm:$0xff]  ;;  %v4943_v32 = vpop.eup %4942  ;;  %4950 = vrcp.f32 %v1499_v35  ;;  %v4592_v31 = vmul.f32 -1.442695, %v1028_v44 }
 0x11d   : > { %v1025_v54 = vadd.f32 %v905_v46, %v5914_v5  ;;  %v4945_v5 = vpop.eup %4944  ;;  %v1500_v46 = vadd.f32 1.0, %v4943_v32  ;;  %v4594_v20 = vmul.f32 -1.442695, %v1030_v12 }
 0x11f   : > { %v6238_v62 = vpop.xlane.xlu1 %727  ;;  %v6240_v43 = vpop.xlane.xlu0 %724  ;;  %v4589_v14 = vmul.f32 -1.442695, %v1025_v54  ;;  %v964_v54 = vld [vmem:[%s8597_s2 + $0x218] sm:$0xff] }
 0x120   : > { %8619 = vst [vmem:[#allocation18_spill] sm:$0xff] %v6238_v62  ;;  %8620 = vst [vmem:[#allocation19_spill] sm:$0xff] %v6240_v43  ;;  %v907_v43 = vld [vmem:[%s8597_s2 + $0x50] sm:$0xff] }
 0x121   : > { %v1027_v2 = vadd.f32 %v907_v43, %v5928_v13 }
 0x123   : > { %v734_v52 = vpop.xlane.xlu1 %733  ;;  %v731_v3 = vpop.xlane.xlu0 %730  ;;  %v4591_v13 = vmul.f32 -1.442695, %v1027_v2 }
 0x124   : > { %v1082_v62 = vadd.f32 %v962_v60, %v734_v52  ;;  %v1081_v33 = vadd.f32 %v961_v15, %v731_v3  ;;  %v1501_v52 = vadd.f32 1.0, %v4945_v5  ;;  %v4947_v32 = vpop.eup %4946 }
 0x126   : > { %v4646_v57 = vmul.f32 -1.442695, %v1082_v62  ;;  %v4645_v51 = vmul.f32 -1.442695, %v1081_v33  ;;  %v909_v33 = vld [vmem:[%s8597_s2 + $0x60] sm:$0xff]  ;;  %v966_v62 = vld [vmem:[%s8597_s2 + $0x228] sm:$0xff] }
 0x127   : > { %v740_v60 = vpop.xlane.xlu1 %739  ;;  %v737_v15 = vpop.xlane.xlu0 %736  ;;  %v1029_v16 = vadd.f32 %v909_v33, %v5942_v21 }
 0x128   : > { %4952 = vpow2.f32 %v4646_v57  ;;  %v1083_v35 = vadd.f32 %v963_v59, %v737_v15  ;;  %v4949_v57 = vpop.eup %4948  ;;  %v1504_v59 = vadd.f32 1.0, %v4947_v32  ;;  %v912_v15 = vld [vmem:[%s8597_s2 + $0x78] sm:$0xff] }
 0x129   : > { %4954 = vpow2.f32 %v4590_v47  ;;  %v4593_v21 = vmul.f32 -1.442695, %v1029_v16  ;;  %v1503_v33 = vadd.f32 1.0, %v4949_v57 }
 0x12a   : > { %4956 = vpow2.f32 %v4645_v51  ;;  %v4647_v44 = vmul.f32 -1.442695, %v1083_v35  ;;  %v968_v51 = vld [vmem:[%s8597_s2 + $0x238] sm:$0xff] }
 0x12b   : > { %4958 = vrcp.f32 %v1500_v46  ;;  %v746_v43 = vpop.xlane.xlu1 %745  ;;  %v743_v3 = vpop.xlane.xlu0 %742 }
 0x12c   : > { %4960 = vpow2.f32 %v4589_v14  ;;  %v1086_v47 = vadd.f32 %v966_v62, %v746_v43  ;;  %v1084_v14 = vadd.f32 %v964_v54, %v740_v60  ;;  %v970_v62 = vld [vmem:[%s8597_s2 + $0x248] sm:$0xff]  ;;  %v1032_v60 = vadd.f32 %v912_v15, %v5954_v28 }
 0x12d   : > { %4962 = vpow2.f32 %v4592_v31  ;;  %v6286_v31 = vpop.eup %4950 }
 0x12e   : > { %4964 = vrcp.f32 %v1501_v52  ;;  %v4650_v2 = vmul.f32 -1.442695, %v1086_v47  ;;  %v911_v52 = vld [vmem:[%s8597_s2 + $0x70] sm:$0xff]  ;;  %v4648_v47 = vmul.f32 -1.442695, %v1084_v14 }
 0x12f   : > { %4966 = vpow2.f32 %v4591_v13  ;;  %v752_v5 = vpop.xlane.xlu1 %751  ;;  %v6281_v46 = vpop.xlane.xlu0 %748 }
 0x130   : > { %4968 = vpow2.f32 %v4594_v20  ;;  %v1088_v12 = vadd.f32 %v968_v51, %v752_v5  ;;  %v1031_v51 = vadd.f32 %v911_v52, %v5956_v29 }
 0x131   : > { %4970 = vpow2.f32 %v4647_v44 }
 0x132   : > { %v4953_v35 = vpop.eup %4952  ;;  %4972 = vpow2.f32 %v4650_v2  ;;  %v4652_v13 = vmul.f32 -1.442695, %v1088_v12  ;;  %v965_v2 = vld [vmem:[%s8597_s2 + $0x220] sm:$0xff]  ;;  %v4596_v12 = vmul.f32 -1.442695, %v1032_v60 }
 0x133   : > { %v4955_v43 = vpop.eup %4954  ;;  %4974 = vrcp.f32 %v1504_v59  ;;  %v758_v32 = vpop.xlane.xlu1 %757  ;;  %v1562_v57 = vadd.f32 1.0, %v4953_v35 }
 0x134   : > { %v6295_v20 = vpop.xlane.xlu0 %754  ;;  %v4957_v16 = vpop.eup %4956  ;;  %4976 = vpow2.f32 %v4593_v21  ;;  %v1090_v54 = vadd.f32 %v970_v62, %v758_v32  ;;  %v1506_v28 = vadd.f32 1.0, %v4955_v43  ;;  %v914_v21 = vld [vmem:[%s8597_s2 + $0x88] sm:$0xff]  ;;  %v1085_v62 = vadd.f32 %v965_v2, %v743_v3 }
 0x135   : > { %v6297_v44 = vpop.eup %4958  ;;  %4978 = vrcp.f32 %v1503_v33  ;;  %v1561_v5 = vadd.f32 1.0, %v4957_v16  ;;  %v4595_v32 = vmul.f32 -1.442695, %v1031_v51  ;;  %v1034_v16 = vadd.f32 %v914_v21, %v5968_v38  ;;  %v967_v38 = vld [vmem:[%s8597_s2 + $0x230] sm:$0xff] }
 0x136   : > { %v4961_v59 = vpop.eup %4960  ;;  %4980 = vpow2.f32 %v4652_v13  ;;  %v4654_v35 = vmul.f32 -1.442695, %v1090_v54  ;;  %v972_v13 = vld [vmem:[%s8597_s2 + $0x258] sm:$0xff] }
 0x137   : > { %v4963_v15 = vpop.eup %4962  ;;  %4982 = vrcp.f32 %v1561_v5  ;;  %v764_v14 = vpop.xlane.xlu1 %763  ;;  %v1505_v60 = vadd.f32 1.0, %v4961_v59 }
 0x138   : > { %v6306_v33 = vpop.xlane.xlu0 %760  ;;  %v6308_v29 = vpop.eup %4964  ;;  %4984 = vpow2.f32 %v4648_v47  ;;  %v913_v47 = vld [vmem:[%s8597_s2 + $0x80] sm:$0xff]  ;;  %v1092_v2 = vadd.f32 %v972_v13, %v764_v14  ;;  %v1508_v53 = vadd.f32 1.0, %v4963_v15  ;;  %v1087_v13 = vadd.f32 %v967_v38, %v6281_v46 }
 0x139   : > { %v4967_v52 = vpop.eup %4966  ;;  %4986 = vrcp.f32 %v1562_v57  ;;  %v4649_v57 = vmul.f32 -1.442695, %v1085_v62  ;;  %v1033_v21 = vadd.f32 %v913_v47, %v5970_v39 }
 0x13a   : > { %v4969_v43 = vpop.eup %4968  ;;  %4988 = vrcp.f32 %v1506_v28  ;;  %v1507_v45 = vadd.f32 1.0, %v4967_v52  ;;  %v4651_v38 = vmul.f32 -1.442695, %v1087_v13 }
 0x13b   : > { %v4971_v5 = vpop.eup %4970  ;;  %4990 = vpow2.f32 %v4596_v12  ;;  %v770_v3 = vpop.xlane.xlu1 %769  ;;  %v4598_v12 = vmul.f32 -1.442695, %v1034_v16 }
 0x13c   : > { %v6317_v54 = vpop.xlane.xlu0 %766  ;;  %v4973_v51 = vpop.eup %4972  ;;  %4992 = vpow2.f32 %v4654_v35  ;;  %v1563_v62 = vadd.f32 1.0, %v4971_v5  ;;  %v974_v5 = vld [vmem:[%s8597_s2 + $0x268] sm:$0xff] }
 0x13d   : > { %v6319_v1 = vpop.eup %4974  ;;  %4994 = vpow2.f32 %v4595_v32  ;;  %v1566_v59 = vadd.f32 1.0, %v4973_v51  ;;  %v916_v32 = vld [vmem:[%s8597_s2 + $0x98] sm:$0xff]  ;;  %v4597_v51 = vmul.f32 -1.442695, %v1033_v21 }
 0x13e   : > { %v4977_v28 = vpop.eup %4976  ;;  %4996 = vrcp.f32 %v1505_v60  ;;  %v4656_v60 = vmul.f32 -1.442695, %v1092_v2  ;;  %v1036_v34 = vadd.f32 %v916_v32, %v5982_v48  ;;  %v969_v48 = vld [vmem:[%s8597_s2 + $0x240] sm:$0xff] }
 0x13f   : > { %v6325_v50 = vpop.eup %4978  ;;  %4998 = vrcp.f32 %v1566_v59  ;;  %v6327_v35 = vpop.xlane.xlu1 %775 }
 0x140   : > { %v6329_v14 = vpop.xlane.xlu0 %772  ;;  %v4981_v15 = vpop.eup %4980  ;;  %5000 = vpow2.f32 %v4649_v57 }
 0x141   : > { %v4983_v16 = vpop.eup %4982  ;;  %5002 = vrcp.f32 %v1508_v53  ;;  %v1568_v39 = vadd.f32 1.0, %v4981_v15  ;;  %v915_v53 = vld [vmem:[%s8597_s2 + $0x90] sm:$0xff] }
 0x142   : > { %v4985_v47 = vpop.eup %4984  ;;  %5004 = vpow2.f32 %v4598_v12  ;;  %2419 = vperm.xlu1 %4926, %v4983_v16   ;;  %v1094_v12 = vadd.f32 %v974_v5, %v770_v3  ;;  %v4600_v16 = vmul.f32 -1.442695, %v1036_v34  ;;  %v1035_v26 = vadd.f32 %v915_v53, %v5984_v49  ;;  %v918_v3 = vld [vmem:[%s8597_s2 + $0xa8] sm:$0xff] }
 0x143   : > { %v4987_v59 = vpop.eup %4986  ;;  %5006 = vrcp.f32 %v1563_v62  ;;  %v6339_v57 = vpop.xlane.xlu1 %781  ;;  %v1564_v15 = vadd.f32 1.0, %v4985_v47  ;;  %v1510_v62 = vadd.f32 1.0, %v4969_v43  ;;  %v917_v43 = vld [vmem:[%s8597_s2 + $0xa0] sm:$0xff]  ;;  %v976_v47 = vld [vmem:[%s8597_s2 + $0x278] sm:$0xff]  ;;  %v1038_v53 = vadd.f32 %v918_v3, %v5996_v58 }
 0x144   : > { %v6341_v46 = vpop.xlane.xlu0 %778  ;;  %v6343_v2 = vpop.eup %4988  ;;  %5008 = vpow2.f32 %v4656_v60  ;;  %v4658_v34 = vmul.f32 -1.442695, %v1094_v12 }
 0x145   : > { %v6348_v21 = vpop.eup %4990  ;;  %5010 = vrcp.f32 %v1568_v39 }
 0x146   : > { %v4993_v52 = vpop.eup %4992  ;;  %5012 = vpow2.f32 %v4597_v51  ;;  %2424 = vperm.xlu1 %4926, %v4987_v59   ;;  %v1509_v59 = vadd.f32 1.0, %v4977_v28  ;;  %v1096_v28 = vadd.f32 %v976_v47, %v6327_v35  ;;  %v920_v35 = vld [vmem:[%s8597_s2 + $0xb8] sm:$0xff] }
 0x147   : > { %v4995_v32 = vpop.eup %4994  ;;  %5014 = vrcp.f32 %v1507_v45  ;;  %v6357_v13 = vpop.xlane.xlu1 %787  ;;  %v1089_v45 = vadd.f32 %v969_v48, %v6295_v20  ;;  %v1570_v49 = vadd.f32 1.0, %v4993_v52  ;;  %v4599_v20 = vmul.f32 -1.442695, %v1035_v26 }
 0x148   : > { %v6359_v60 = vpop.xlane.xlu0 %784  ;;  %v6361_v39 = vpop.eup %4996  ;;  %5016 = vpow2.f32 %v4651_v38  ;;  %v1037_v38 = vadd.f32 %v917_v43, %v5998_v61  ;;  %v4602_v61 = vmul.f32 -1.442695, %v1038_v53  ;;  %v1512_v53 = vadd.f32 1.0, %v6348_v21 }
 0x149   : > { %v4999_v5 = vpop.eup %4998  ;;  %5018 = vrcp.f32 %v1564_v15  ;;  %v4653_v52 = vmul.f32 -1.442695, %v1089_v45 }
 0x14a   : > { %v5001_v51 = vpop.eup %5000  ;;  %5020 = vrcp.f32 %v1510_v62  ;;  %2444 = vperm.xlu0 %4927, %v4999_v5   ;;  %2109 = vperm.xlu1 %4926, %v6286_v31   ;;  %v971_v31 = vld [vmem:[%s8597_s2 + $0x250] sm:$0xff]  ;;  %v4601_v3 = vmul.f32 -1.442695, %v1037_v38 }
 0x14b   : > { %v6372_v25 = vpop.eup %5002  ;;  %5022 = vpow2.f32 %v4600_v16  ;;  %v6375_v12 = vpop.xlane.xlu1 %793  ;;  %v1565_v62 = vadd.f32 1.0, %v5001_v51  ;;  %v919_v5 = vld [vmem:[%s8597_s2 + $0xb0] sm:$0xff]  ;;  %v978_v51 = vld [vmem:[%s8597_s2 + $0x288] sm:$0xff] }
 0x14c   : > { %v6377_v15 = vpop.xlane.xlu0 %790  ;;  %v6379_v48 = vpop.eup %5004  ;;  %5024 = vpow2.f32 %v4658_v34  ;;  %v1098_v21 = vadd.f32 %v978_v51, %v6339_v57  ;;  %v922_v57 = vld [vmem:[%s8597_s2 + $0xc8] sm:$0xff] }
 0x14d   : > { %v5007_v58 = vpop.eup %5006  ;;  %5026 = vrcp.f32 %v1570_v49 }
 0x14e   : > { %v5009_v26 = vpop.eup %5008  ;;  %5028 = vrcp.f32 %v1509_v59  ;;  %2134 = vperm.xlu0 %4927, %v6319_v1   ;;  %2114 = vperm.xlu1 %4926, %v6297_v44   ;;  %v1091_v1 = vadd.f32 %v971_v31, %v6306_v33  ;;  %v4660_v44 = vmul.f32 -1.442695, %v1096_v28  ;;  %v1039_v33 = vadd.f32 %v919_v5, %v6012_v8 }
 0x14f   : > { %v5011_v16 = vpop.eup %5010  ;;  %5030 = vpow2.f32 %v4599_v20  ;;  %v6390_v43 = vpop.xlane.xlu1 %799  ;;  %v1572_v47 = vadd.f32 1.0, %v5009_v26  ;;  %v1040_v20 = vadd.f32 %v920_v35, %v6010_v7 }
 0x150   : > { %v6392_v45 = vpop.xlane.xlu0 %796  ;;  %v5013_v34 = vpop.eup %5012  ;;  %5032 = vpow2.f32 %v4653_v52  ;;  %v1511_v52 = vadd.f32 1.0, %v4995_v32  ;;  %v4655_v26 = vmul.f32 -1.442695, %v1091_v1  ;;  %v973_v32 = vld [vmem:[%s8597_s2 + $0x260] sm:$0xff] }
 0x151   : > { %v6398_v49 = vpop.eup %5014  ;;  %5034 = vrcp.f32 %v1565_v62  ;;  %v4604_v8 = vmul.f32 -1.442695, %v1040_v20 }
 0x152   : > { %v5017_v59 = vpop.eup %5016  ;;  %5036 = vpow2.f32 %v4602_v61  ;;  %2454 = vperm.xlu0 %4927, %v5011_v16   ;;  %2429 = vperm.xlu1 %4926, %v5007_v58  }
 0x153   : > { %v5019_v38 = vpop.eup %5018  ;;  %5038 = vpow2.f32 %v4601_v3  ;;  %v6406_v28 = vpop.xlane.xlu1 %805  ;;  %v1567_v7 = vadd.f32 1.0, %v5017_v59  ;;  %v4603_v3 = vmul.f32 -1.442695, %v1039_v33 }
 0x154   : > { %v6408_v62 = vpop.xlane.xlu0 %802  ;;  %v6410_v31 = vpop.eup %5020  ;;  %5040 = vpow2.f32 %v4660_v44  ;;  %v921_v44 = vld [vmem:[%s8597_s2 + $0xc0] sm:$0xff] }
 0x155   : > { %v6413_v61 = vpop.eup %5022  ;;  %5042 = vrcp.f32 %v1572_v47  ;;  %v4662_v47 = vmul.f32 -1.442695, %v1098_v21 }
 0x156   : > { %v5025_v58 = vpop.eup %5024  ;;  %5044 = vrcp.f32 %v1512_v53  ;;  %2144 = vperm.xlu0 %4927, %v6343_v2   ;;  %2434 = vperm.xlu1 %4926, %v5019_v38   ;;  %v1093_v2 = vadd.f32 %v973_v32, %v6317_v54  ;;  %v980_v53 = vld [vmem:[%s8597_s2 + $0x298] sm:$0xff]  ;;  %v1514_v38 = vadd.f32 1.0, %v6379_v48  ;;  %v1513_v54 = vadd.f32 1.0, %v5013_v34 }
 0x157   : > { %v5027_v16 = vpop.eup %5026  ;;  %5046 = vrcp.f32 %v1511_v52  ;;  %v6422_v35 = vpop.xlane.xlu1 %811  ;;  %v1574_v59 = vadd.f32 1.0, %v5025_v58  ;;  %v1042_v52 = vadd.f32 %v922_v57, %v6024_v17  ;;  %v924_v48 = vld [vmem:[%s8597_s2 + $0xd8] sm:$0xff]  ;;  %v1100_v17 = vadd.f32 %v980_v53, %v6357_v13 }
 0x158   : > { %v6424_v5 = vpop.xlane.xlu0 %808  ;;  %v6426_v1 = vpop.eup %5028  ;;  %5048 = vpow2.f32 %v4655_v26  ;;  %v1041_v26 = vadd.f32 %v921_v44, %v6026_v18  ;;  %v4657_v58 = vmul.f32 -1.442695, %v1093_v2  ;;  %v975_v18 = vld [vmem:[%s8597_s2 + $0x270] sm:$0xff]  ;;  %v1044_v44 = vadd.f32 %v924_v48, %v6038_v27 }
 0x159   : > { %v6432_v51 = vpop.eup %5030  ;;  %5050 = vrcp.f32 %v1567_v7  ;;  %v4664_v53 = vmul.f32 -1.442695, %v1100_v17  ;;  %v1516_v27 = vadd.f32 1.0, %v6413_v61 }
 0x15a   : > { %v5033_v20 = vpop.eup %5032  ;;  %5052 = vpow2.f32 %v4604_v8  ;;  %2464 = vperm.xlu0 %4927, %v5027_v16   ;;  %2119 = vperm.xlu1 %4926, %v6308_v29   ;;  %v4606_v16 = vmul.f32 -1.442695, %v1042_v52  ;;  %v4605_v57 = vmul.f32 -1.442695, %v1041_v26 }
 0x15b   : > { %v5035_v33 = vpop.eup %5034  ;;  %5054 = vpow2.f32 %v4603_v3  ;;  %v6441_v21 = vpop.xlane.xlu1 %817  ;;  %v1569_v29 = vadd.f32 1.0, %v5033_v20 }
 0x15c   : > { %v6443_v7 = vpop.xlane.xlu0 %814  ;;  %v5037_v32 = vpop.eup %5036  ;;  %5056 = vpow2.f32 %v4662_v47 }
 0x15d   : > { %v6449_v8 = vpop.eup %5038  ;;  %5058 = vrcp.f32 %v1574_v59  ;;  %v1095_v59 = vadd.f32 %v975_v18, %v6329_v14 }
 0x15e   : > { %v5041_v34 = vpop.eup %5040  ;;  %5060 = vrcp.f32 %v1514_v38  ;;  %2154 = vperm.xlu0 %4927, %v6372_v25   ;;  %2439 = vperm.xlu1 %4926, %v5035_v33   ;;  %v982_v38 = vld [vmem:[%s8597_s2 + $0x2a8] sm:$0xff] }
 0x15f   : > { %v5043_v3 = vpop.eup %5042  ;;  %5062 = vrcp.f32 %v1513_v54  ;;  %v6456_v13 = vpop.xlane.xlu1 %823  ;;  %v1576_v25 = vadd.f32 1.0, %v5041_v34  ;;  %v4608_v54 = vmul.f32 -1.442695, %v1044_v44  ;;  %v4659_v17 = vmul.f32 -1.442695, %v1095_v59  ;;  %v926_v44 = vld [vmem:[%s8597_s2 + $0xe8] sm:$0xff] }
 0x160   : > { %v6458_v2 = vpop.xlane.xlu0 %820  ;;  %v6460_v47 = vpop.eup %5044  ;;  %5064 = vpow2.f32 %v4657_v58  ;;  %v923_v58 = vld [vmem:[%s8597_s2 + $0xd0] sm:$0xff]  ;;  %v1102_v61 = vadd.f32 %v982_v38, %v6375_v12 }
 0x161   : > { %v6463_v20 = vpop.eup %5046  ;;  %5066 = vrcp.f32 %v1569_v29  ;;  %v1043_v12 = vadd.f32 %v923_v58, %v6040_v30  ;;  %v984_v30 = vld [vmem:[%s8597_s2 + $0x2b8] sm:$0xff] }
 0x162   : > { %v5049_v52 = vpop.eup %5048  ;;  %5068 = vpow2.f32 %v4606_v16  ;;  %2474 = vperm.xlu0 %4927, %v5043_v3   ;;  %2129 = vperm.xlu1 %4926, %v6325_v50   ;;  %v977_v50 = vld [vmem:[%s8597_s2 + $0x280] sm:$0xff]  ;;  %v1515_v16 = vadd.f32 1.0, %v6432_v51 }
 0x163   : > { %v5051_v33 = vpop.eup %5050  ;;  %5070 = vpow2.f32 %v4605_v57  ;;  %v6470_v14 = vpop.xlane.xlu1 %829  ;;  %v1571_v18 = vadd.f32 1.0, %v5049_v52  ;;  %v1518_v57 = vadd.f32 1.0, %v5037_v32  ;;  %v1097_v51 = vadd.f32 %v977_v50, %v6341_v46 }
 0x164   : > { %v6472_v26 = vpop.xlane.xlu0 %826  ;;  %v5053_v48 = vpop.eup %5052  ;;  %5072 = vpow2.f32 %v4664_v53  ;;  %v4607_v46 = vmul.f32 -1.442695, %v1043_v12 }
 0x165   : > { %v6478_v29 = vpop.eup %5054  ;;  %5074 = vrcp.f32 %v1576_v25  ;;  %v4661_v50 = vmul.f32 -1.442695, %v1097_v51  ;;  %v1520_v12 = vadd.f32 1.0, %v5053_v48 }
 0x166   : > { %v5057_v34 = vpop.eup %5056  ;;  %5076 = vrcp.f32 %v1516_v27  ;;  %2164 = vperm.xlu0 %4927, %v6410_v31   ;;  %2449 = vperm.xlu1 %4926, %v5051_v33   ;;  %v4666_v31 = vmul.f32 -1.442695, %v1102_v61  ;;  %v1517_v27 = vadd.f32 1.0, %v6449_v8  ;;  %v1046_v33 = vadd.f32 %v926_v44, %v6052_v41 }
 0x167   : > { %v5059_v3 = vpop.eup %5058  ;;  %5078 = vpow2.f32 %v4608_v54  ;;  %v6489_v59 = vpop.xlane.xlu1 %835  ;;  %v1578_v32 = vadd.f32 1.0, %v5057_v34  ;;  %v1104_v8 = vadd.f32 %v984_v30, %v6390_v43  ;;  %v928_v43 = vld [vmem:[%s8597_s2 + $0xf8] sm:$0xff] }
 0x168   : > { %v6491_v53 = vpop.xlane.xlu0 %832  ;;  %v6493_v25 = vpop.eup %5060  ;;  %5080 = vpow2.f32 %v4659_v17 }
 0x169   : > { %v6496_v38 = vpop.eup %5062  ;;  %5082 = vrcp.f32 %v1571_v18  ;;  %v925_v18 = vld [vmem:[%s8597_s2 + $0xe0] sm:$0xff] }
 0x16a   : > { %v5065_v52 = vpop.eup %5064  ;;  %5084 = vrcp.f32 %v1515_v16  ;;  %2484 = vperm.xlu0 %4927, %v5059_v3   ;;  %2139 = vperm.xlu1 %4926, %v6361_v39   ;;  %v979_v39 = vld [vmem:[%s8597_s2 + $0x290] sm:$0xff]  ;;  %v4610_v3 = vmul.f32 -1.442695, %v1046_v33  ;;  %v1045_v44 = vadd.f32 %v925_v18, %v6054_v42  ;;  %v986_v42 = vld [vmem:[%s8597_s2 + $0x2c8] sm:$0xff]  ;;  %v1519_v33 = vadd.f32 1.0, %v6478_v29 }
 0x16b   : > { %v5067_v54 = vpop.eup %5066  ;;  %5086 = vrcp.f32 %v1518_v57  ;;  %v6504_v58 = vpop.xlane.xlu1 %841  ;;  %v1573_v34 = vadd.f32 1.0, %v5065_v52  ;;  %v1099_v30 = vadd.f32 %v979_v39, %v6359_v60 }
 0x16c   : > { %v6506_v17 = vpop.xlane.xlu0 %838  ;;  %v5069_v61 = vpop.eup %5068  ;;  %5088 = vpow2.f32 %v4666_v31  ;;  %v4609_v60 = vmul.f32 -1.442695, %v1045_v44 }
 0x16d   : > { %v6512_v41 = vpop.eup %5070  ;;  %5090 = vrcp.f32 %v1578_v32  ;;  %v4663_v29 = vmul.f32 -1.442695, %v1099_v30  ;;  %v1522_v44 = vadd.f32 1.0, %v5069_v61 }
 0x16e   : > { %v5073_v16 = vpop.eup %5072  ;;  %5092 = vrcp.f32 %v1517_v27  ;;  %2174 = vperm.xlu0 %4927, %v6460_v47   ;;  %2459 = vperm.xlu1 %4926, %v5067_v54   ;;  %v4668_v47 = vmul.f32 -1.442695, %v1104_v8  ;;  %v1048_v54 = vadd.f32 %v928_v43, %v6066_v55  ;;  %v1106_v55 = vadd.f32 %v986_v42, %v6406_v28 }
 0x16f   : > { %v5075_v57 = vpop.eup %5074  ;;  %5094 = vpow2.f32 %v4607_v46  ;;  %v6522_v51 = vpop.xlane.xlu1 %847  ;;  %v1580_v48 = vadd.f32 1.0, %v5073_v16  ;;  %v981_v16 = vld [vmem:[%s8597_s2 + $0x2a0] sm:$0xff] }
 0x170   : > { %v6524_v31 = vpop.xlane.xlu0 %844  ;;  %v6526_v32 = vpop.eup %5076  ;;  %5096 = vpow2.f32 %v4661_v50  ;;  %v1101_v42 = vadd.f32 %v981_v16, %v6377_v15 }
 0x171   : > { %v6529_v52 = vpop.eup %5078  ;;  %5098 = vrcp.f32 %v1573_v34  ;;  %v927_v34 = vld [vmem:[%s8597_s2 + $0xf0] sm:$0xff] }
 0x172   : > { %v5081_v27 = vpop.eup %5080  ;;  %5100 = vpow2.f32 %v4610_v3  ;;  %2494 = vperm.xlu0 %4927, %v5075_v57   ;;  %2149 = vperm.xlu1 %4926, %v6398_v49   ;;  %v4612_v57 = vmul.f32 -1.442695, %v1048_v54  ;;  %v1047_v43 = vadd.f32 %v927_v34, %v6068_v56  ;;  %v929_v56 = vld [vmem:[%s8597_s2 + $0x100] sm:$0xff]  ;;  %v1521_v54 = vadd.f32 1.0, %v6512_v41  ;;  %v988_v34 = vld [vmem:[%s8597_s2 + $0x2d8] sm:$0xff] }
 0x173   : > { %v5083_v46 = vpop.eup %5082  ;;  %5102 = vrcp.f32 %v1520_v12  ;;  %v6537_v18 = vpop.xlane.xlu1 %853  ;;  %v1575_v49 = vadd.f32 1.0, %v5081_v27  ;;  %v1049_v41 = vadd.f32 %v929_v56, %v6082_v9  ;;  %v4665_v16 = vmul.f32 -1.442695, %v1101_v42 }
 0x174   : > { %v6539_v50 = vpop.xlane.xlu0 %850  ;;  %v6541_v8 = vpop.eup %5084  ;;  %5104 = vpow2.f32 %v4668_v47  ;;  %v1108_v9 = vadd.f32 %v988_v34, %v6422_v35  ;;  %v931_v35 = vld [vmem:[%s8597_s2 + $0x110] sm:$0xff] }
 0x175   : > { %v6547_v39 = vpop.eup %5086  ;;  %5106 = vrcp.f32 %v1580_v48  ;;  %v930_v48 = vld [vmem:[%s8597_s2 + $0x108] sm:$0xff] }
 0x176   : > { %v5089_v3 = vpop.eup %5088  ;;  %5108 = vrcp.f32 %v1519_v33  ;;  %2184 = vperm.xlu0 %4927, %v6493_v25   ;;  %2469 = vperm.xlu1 %4926, %v5083_v46   ;;  %v4670_v25 = vmul.f32 -1.442695, %v1106_v55  ;;  %v1050_v15 = vadd.f32 %v930_v48, %v6080_v6 }
 0x177   : > { %v5091_v12 = vpop.eup %5090  ;;  %5110 = vpow2.f32 %v4609_v60  ;;  %v6554_v28 = vpop.xlane.xlu1 %859  ;;  %v1582_v61 = vadd.f32 1.0, %v5089_v3  ;;  %v4611_v60 = vmul.f32 -1.442695, %v1047_v43 }
 0x178   : > { %v6556_v30 = vpop.xlane.xlu0 %856  ;;  %v6558_v47 = vpop.eup %5092  ;;  %5112 = vpow2.f32 %v4663_v29  ;;  %v4614_v48 = vmul.f32 -1.442695, %v1050_v15 }
 0x179   : > { %v6564_v27 = vpop.eup %5094  ;;  %5114 = vrcp.f32 %v1575_v49 }
 0x17a   : > { %v5097_v33 = vpop.eup %5096  ;;  %5116 = vpow2.f32 %v4612_v57  ;;  %2504 = vperm.xlu0 %4927, %v5091_v12   ;;  %2159 = vperm.xlu1 %4926, %v6426_v1   ;;  %v932_v1 = vld [vmem:[%s8597_s2 + $0x118] sm:$0xff]  ;;  %v983_v57 = vld [vmem:[%s8597_s2 + $0x2b0] sm:$0xff] }
 0x17b   : > { %v5099_v46 = vpop.eup %5098  ;;  %5118 = vrcp.f32 %v1522_v44  ;;  %v6575_v29 = vpop.xlane.xlu1 %865  ;;  %v1577_v6 = vadd.f32 1.0, %v5097_v33  ;;  %v1524_v44 = vadd.f32 1.0, %v6529_v52  ;;  %v1052_v42 = vadd.f32 %v932_v1, %v6094_v22 }
 0x17c   : > { %v6577_v55 = vpop.xlane.xlu0 %862  ;;  %v5101_v49 = vpop.eup %5100  ;;  %5120 = vpow2.f32 %v4670_v25  ;;  %v4613_v33 = vmul.f32 -1.442695, %v1049_v41  ;;  %v1103_v52 = vadd.f32 %v983_v57, %v6392_v45  ;;  %v4672_v22 = vmul.f32 -1.442695, %v1108_v9  ;;  %v990_v45 = vld [vmem:[%s8597_s2 + $0x2e8] sm:$0xff] }
 0x17d   : > { %v6583_v3 = vpop.eup %5102  ;;  %5122 = vrcp.f32 %v1582_v61  ;;  %v4616_v15 = vmul.f32 -1.442695, %v1052_v42  ;;  %v1526_v42 = vadd.f32 1.0, %v5101_v49 }
 0x17e   : > { %v5105_v12 = vpop.eup %5104  ;;  %5124 = vrcp.f32 %v1521_v54  ;;  %2194 = vperm.xlu0 %4927, %v6526_v32   ;;  %2479 = vperm.xlu1 %4926, %v5099_v46  }
 0x17f   : > { %v5107_v43 = vpop.eup %5106  ;;  %5126 = vpow2.f32 %v4611_v60  ;;  %v6592_v25 = vpop.xlane.xlu1 %871  ;;  %v1584_v32 = vadd.f32 1.0, %v5105_v12 }
 0x180   : > { %v6594_v56 = vpop.xlane.xlu0 %868  ;;  %v6596_v61 = vpop.eup %5108  ;;  %5128 = vpow2.f32 %v4665_v16  ;;  %v1051_v16 = vadd.f32 %v931_v35, %v6096_v23 }
 0x181   : > { %v6599_v54 = vpop.eup %5110  ;;  %5130 = vrcp.f32 %v1577_v6  ;;  %v934_v6 = vld [vmem:[%s8597_s2 + $0x128] sm:$0xff] }
 0x182   : > { %v5113_v46 = vpop.eup %5112  ;;  %5132 = vrcp.f32 %v1524_v44  ;;  %2514 = vperm.xlu0 %4927, %v5107_v43   ;;  %2169 = vperm.xlu1 %4926, %v6463_v20   ;;  %v4667_v20 = vmul.f32 -1.442695, %v1103_v52  ;;  %v985_v44 = vld [vmem:[%s8597_s2 + $0x2c0] sm:$0xff]  ;;  %v1523_v43 = vadd.f32 1.0, %v6564_v27 }
 0x183   : > { %v5115_v60 = vpop.eup %5114  ;;  %5134 = vpow2.f32 %v4614_v48  ;;  %v6608_v34 = vpop.xlane.xlu1 %877  ;;  %v1579_v12 = vadd.f32 1.0, %v5113_v46  ;;  %v1110_v48 = vadd.f32 %v990_v45, %v6441_v21  ;;  %v4615_v46 = vmul.f32 -1.442695, %v1051_v16  ;;  %v933_v21 = vld [vmem:[%s8597_s2 + $0x120] sm:$0xff]  ;;  %v992_v45 = vld [vmem:[%s8597_s2 + $0x2f8] sm:$0xff] }
 0x184   : > { %v6610_v41 = vpop.xlane.xlu0 %874  ;;  %v5117_v1 = vpop.eup %5116  ;;  %5136 = vpow2.f32 %v4613_v33  ;;  %v1054_v33 = vadd.f32 %v934_v6, %v6109_v37  ;;  %v1105_v27 = vadd.f32 %v985_v44, %v6408_v62  ;;  %v936_v37 = vld [vmem:[%s8597_s2 + $0x138] sm:$0xff] }
 0x185   : > { %v6616_v57 = vpop.eup %5118  ;;  %5138 = vrcp.f32 %v1584_v32 }
 0x186   : > { %v5121_v9 = vpop.eup %5120  ;;  %5140 = vpow2.f32 %v4672_v22  ;;  %2199 = vperm.xlu0 %4927, %v6558_v47   ;;  %2489 = vperm.xlu1 %4926, %v5115_v60   ;;  %v4674_v60 = vmul.f32 -1.442695, %v1110_v48  ;;  %v4669_v44 = vmul.f32 -1.442695, %v1105_v27 }
 0x187   : > { %v5123_v23 = vpop.eup %5122  ;;  %5142 = vpow2.f32 %v4616_v15  ;;  %v6625_v52 = vpop.xlane.xlu1 %883  ;;  %v1586_v47 = vadd.f32 1.0, %v5121_v9  ;;  %v4618_v15 = vmul.f32 -1.442695, %v1054_v33 }
 0x188   : > { %v6627_v35 = vpop.xlane.xlu0 %880  ;;  %v6629_v32 = vpop.eup %5124  ;;  %5144 = vpow2.f32 %v4667_v20 }
 0x189   : > { %8621 = vst [vmem:[#allocation20_spill] sm:$0xff] %v6627_v35  ;;  %v6632_v22 = vpop.eup %5126  ;;  %5146 = vrcp.f32 %v1579_v12  ;;  %v1053_v12 = vadd.f32 %v933_v21, %v6111_v40  ;;  %v987_v40 = vld [vmem:[%s8597_s2 + $0x2d0] sm:$0xff] }
 0x18a   : > { %v5129_v49 = vpop.eup %5128  ;;  %5148 = vrcp.f32 %v1523_v43  ;;  %2524 = vperm.xlu0 %4927, %v5123_v23   ;;  %2179 = vperm.xlu1 %4926, %v6496_v38   ;;  %v1056_v38 = vadd.f32 %v936_v37, %v6127_v63  ;;  %v1525_v23 = vadd.f32 1.0, %v6599_v54  ;;  %v935_v54 = vld [vmem:[%s8597_s2 + $0x130] sm:$0xff] }
 0x18b   : > { %v5131_v62 = vpop.eup %5130  ;;  %5150 = vrcp.f32 %v1526_v42  ;;  %v6644_v16 = vpop.xlane.xlu1 %889  ;;  %v1581_v43 = vadd.f32 1.0, %v5129_v49  ;;  %v1112_v42 = vadd.f32 %v992_v45, %v6456_v13  ;;  %v4617_v21 = vmul.f32 -1.442695, %v1053_v12  ;;  %v1860_v12 = vld [vmem:[%s6667_s22 + $0x18] sm:$0xff] }
 0x18c   : > { %v6646_v6 = vpop.xlane.xlu0 %886  ;;  %v6648_v20 = vpop.eup %5132  ;;  %5152 = vpow2.f32 %v4615_v46  ;;  %v1528_v46 = vadd.f32 1.0, %v5117_v1  ;;  %v1107_v49 = vadd.f32 %v987_v40, %v6424_v5 }
 0x18d   : > { %8622 = vst [vmem:[#allocation21_spill] sm:$0xff] %v6646_v6  ;;  %v5135_v9 = vpop.eup %5134  ;;  %5154 = vrcp.f32 %v1586_v47  ;;  %v4676_v37 = vmul.f32 -1.442695, %v1112_v42  ;;  %v1859_v42 = vld [vmem:[%s6667_s22 + $0x10] sm:$0xff] }
 0x18e   : > { %v5137_v48 = vpop.eup %5136  ;;  %5156 = vpow2.f32 %v4674_v60  ;;  %2214 = vperm.xlu0 %4927, %v6583_v3   ;;  %2499 = vperm.xlu1 %4926, %v5131_v62   ;;  %v4620_v3 = vmul.f32 -1.442695, %v1056_v38  ;;  %v1055_v62 = vadd.f32 %v935_v54, %v6129_v0  ;;  %v4671_v40 = vmul.f32 -1.442695, %v1107_v49 }
 0x18f   : > { %v5139_v33 = vpop.eup %5138  ;;  %5158 = vpow2.f32 %v4618_v15  ;;  %v6659_v27 = vpop.xlane.xlu1 %892  ;;  %v1529_v6 = vadd.f32 1.0, %v5137_v48 }
 0x190   : > { %8623 = vst [vmem:[#allocation22_spill] sm:$0xff] %v6659_v27  ;;  %v5141_v63 = vpop.eup %5140  ;;  %5160 = vpow2.f32 %v4669_v44  ;;  %v6669_v1 = vpop.xlane.xlu0 %895  ;;  %v1530_v27 = vadd.f32 1.0, %v5135_v9 }
 0x191   : > { %v5143_v13 = vpop.eup %5142  ;;  %5162 = vrcp.f32 %v1581_v43  ;;  %v1588_v15 = vadd.f32 1.0, %v5141_v63  ;;  %v1858_v43 = vld [vmem:[%s6667_s22 + $0x8] sm:$0xff]  ;;  %v989_v63 = vld [vmem:[%s8597_s2 + $0x2e0] sm:$0xff] }
 0x192   : > { %v5145_v47 = vpop.eup %5144  ;;  %5164 = vrcp.f32 %v1525_v23  ;;  %2534 = vperm.xlu0 %4927, %v5139_v33   ;;  %2189 = vperm.xlu1 %4926, %v6541_v8   ;;  %v1857_v23 = vld [vmem:[%s6667_s22] sm:$0xff]  ;;  %v1527_v8 = vadd.f32 1.0, %v6632_v22 }
 0x193   : > { %v5147_v60 = vpop.eup %5146  ;;  %5166 = vrcp.f32 %v1528_v46  ;;  %v1583_v38 = vadd.f32 1.0, %v5145_v47  ;;  %v2105_v5 = vpop.permute.xlu1 %2104  ;;  %v4619_v46 = vmul.f32 -1.442695, %v1055_v62  ;;  %v937_v22 = vld [vmem:[%s8597_s2 + $0x140] sm:$0xff] }
 0x194   : > { %v6674_v45 = vpop.eup %5148  ;;  %5168 = vpow2.f32 %v4617_v21  ;;  %v2700_v49 = vmul.f32 %v2105_v5, %v1860_v12 }
 0x195   : > { %v6677_v44 = vpop.eup %5150  ;;  %5170 = vpow2.f32 %v4620_v3  ;;  %v938_v3 = vld [vmem:[%s8597_s2 + $0x148] sm:$0xff] }
 0x196   : > { %v5153_v33 = vpop.eup %5152  ;;  %5172 = vpow2.f32 %v4676_v37  ;;  %2224 = vperm.xlu0 %4927, %v6616_v57   ;;  %2509 = vperm.xlu1 %4926, %v5147_v60   ;;  %v2699_v57 = vmul.f32 %v2105_v5, %v1859_v42  ;;  %v1058_v5 = vadd.f32 %v938_v3, %v6144_v19  ;;  %v939_v19 = vld [vmem:[%s8597_s2 + $0x150] sm:$0xff] }
 0x197   : > { %v5155_v0 = vpop.eup %5154  ;;  %5174 = vrcp.f32 %v1588_v15  ;;  %v2100_v21 = vpop.permute.xlu0 %2099  ;;  %v1109_v15 = vadd.f32 %v989_v63, %v6443_v7  ;;  %v940_v7 = vld [vmem:[%s8597_s2 + $0x158] sm:$0xff]  ;;  %v1531_v63 = vadd.f32 1.0, %v5153_v33 }
 0x198   : > { %v5157_v54 = vpop.eup %5156  ;;  %v2698_v47 = vmul.f32 %v2100_v21, %v1858_v43  ;;  %v2697_v37 = vmul.f32 %v2100_v21, %v1857_v23  ;;  %5176 = vrcp.f32 %v1583_v38  ;;  %v1532_v23 = vadd.f32 1.0, %v5143_v13 }
 0x199   : > { %v5159_v60 = vpop.eup %5158  ;;  %5178 = vpow2.f32 %v4671_v40  ;;  %v1590_v9 = vadd.f32 1.0, %v5157_v54  ;;  %v1057_v38 = vadd.f32 %v937_v22, %v6146_v24  ;;  %v4673_v13 = vmul.f32 -1.442695, %v1109_v15  ;;  %v944_v15 = vld [vmem:[%s8597_s2 + $0x178] sm:$0xff] }
 0x19a   : > { %v5161_v62 = vpop.eup %5160  ;;  %2544 = vperm.xlu0 %4927, %v5155_v0   ;;  %2204 = vperm.xlu1 %4926, %v6547_v39   ;;  %v3018_v35 = vpack.c.bf16 %v2700_v49, %v2698_v47  ;;  %v3017_v43 = vpack.c.bf16 %v2699_v57, %v2697_v37  ;;  %5180 = vrcp.f32 %v1527_v8  ;;  %v1059_v21 = vadd.f32 %v939_v19, %v6164_v36  ;;  %v942_v47 = vld [vmem:[%s8597_s2 + $0x168] sm:$0xff]  ;;  %v8624_v19 = vld [vmem:[#allocation2_spill] sm:$0xff] }
 0x19b   : > { %v5163_v12 = vpop.eup %5162  ;;  %5182 = vpow2.f32 %v4619_v46  ;;  %v1585_v39 = vadd.f32 1.0, %v5161_v62  ;;  %v4621_v8 = vmul.f32 -1.442695, %v1057_v38  ;;  %v1534_v54 = vadd.f32 1.0, %v5159_v60  ;;  %v994_v36 = vld [vmem:[%s8597_s2 + $0x308] sm:$0xff]  ;;  %v941_v60 = vld [vmem:[%s8597_s2 + $0x160] sm:$0xff] }
 0x19c   : > { %v6696_v48 = vpop.eup %5164  ;;  %3558 = vmatprep.subr.bf16.mxu1 %v3018_v35  ;;  %5184 = vrcp.f32 %v1530_v27  ;;  %v4622_v35 = vmul.f32 -1.442695, %v1058_v5  ;;  %v991_v27 = vld [vmem:[%s8597_s2 + $0x2f0] sm:$0xff] }
 0x19d   : > { %v6699_v42 = vpop.eup %5166  ;;  %3559 = vmatpush1.bf16.msra.mxu1 %v3017_v43  ;;  %5186 = vrcp.f32 %v1529_v6  ;;  %v1060_v6 = vadd.f32 %v940_v7, %v6162_v4  ;;  %v943_v38 = vld [vmem:[%s8597_s2 + $0x170] sm:$0xff] }
 0x19e   : > { %v5169_v40 = vpop.eup %5168  ;;  %2234 = vperm.xlu0 %4927, %v6648_v20   ;;  %2519 = vperm.xlu1 %4926, %v5163_v12   ;;  %5188 = vrcp.f32 %v1590_v9  ;;  %v1111_v20 = vadd.f32 %v991_v27, %v6458_v2  ;;  %v4623_v2 = vmul.f32 -1.442695, %v1059_v21  ;;  %v1114_v12 = vadd.f32 %v994_v36, %v6470_v14  ;;  %v945_v21 = vld [vmem:[%s8597_s2 + $0x180] sm:$0xff] }
 0x19f   : > { %v5171_v24 = vpop.eup %5170  ;;  %5190 = vrcp.f32 %v1532_v23  ;;  %v4624_v33 = vmul.f32 -1.442695, %v1060_v6 }
 0x1a0   : > { %v5173_v0 = vpop.eup %5172  ;;  %5192 = vrcp.f32 %v1585_v39  ;;  %v4675_v22 = vmul.f32 -1.442695, %v1111_v20  ;;  %v1536_v23 = vadd.f32 1.0, %v5171_v24 }
 0x1a1   : > { %v5175_v46 = vpop.eup %5174  ;;  %5194 = vpow2.f32 %v4673_v13  ;;  %v1592_v49 = vadd.f32 1.0, %v5173_v0  ;;  %v1064_v13 = vadd.f32 %v944_v15, %v8624_v19  ;;  %v996_v0 = vld [vmem:[%s8597_s2 + $0x318] sm:$0xff]  ;;  %v947_v15 = vld [vmem:[%s8597_s2 + $0x190] sm:$0xff] }
 0x1a2   : > { %2554 = vperm.xlu0 %4927, %v5175_v46   ;;  %2209 = vperm.xlu1 %4926, %v6596_v61   ;;  %v5177_v3 = vpop.eup %5176  ;;  %5196 = vpow2.f32 %v4622_v35  ;;  %v1062_v61 = vadd.f32 %v942_v47, %v6175_v10  ;;  %v1533_v10 = vadd.f32 1.0, %v5169_v40  ;;  %v4678_v40 = vmul.f32 -1.442695, %v1114_v12  ;;  %v946_v46 = vld [vmem:[%s8597_s2 + $0x188] sm:$0xff] }
 0x1a3   : > { %v5179_v4 = vpop.eup %5178  ;;  %5198 = vpow2.f32 %v4621_v8 }
 0x1a4   : > { %v6721_v37 = vpop.eup %5180  ;;  %5200 = vrcp.f32 %v1531_v63  ;;  %v1587_v43 = vadd.f32 1.0, %v5179_v4  ;;  %v4626_v39 = vmul.f32 -1.442695, %v1062_v61  ;;  %v4628_v63 = vmul.f32 -1.442695, %v1064_v13  ;;  %v8626_v4 = vld [vmem:[#allocation4_spill] sm:$0xff] }
 0x1a5   : > { %v5183_v57 = vpop.eup %5182  ;;  %5202 = vrcp.f32 %v1534_v54  ;;  %v8629_v13 = vld [vmem:[#allocation7_spill] sm:$0xff] }
 0x1a6   : > { %2244 = vperm.xlu0 %4927, %v6677_v44   ;;  %2529 = vperm.xlu1 %4926, %v5177_v3   ;;  %v6728_v62 = vpop.eup %5184  ;;  %5204 = vrcp.f32 %v1592_v49  ;;  %v1061_v44 = vadd.f32 %v941_v60, %v6177_v11  ;;  %v1535_v35 = vadd.f32 1.0, %v5183_v57  ;;  %v8625_v11 = vld [vmem:[#allocation3_spill] sm:$0xff]  ;;  %v1116_v3 = vadd.f32 %v996_v0, %v6489_v59  ;;  %v8627_v57 = vld [vmem:[#allocation5_spill] sm:$0xff] }
 0x1a7   : > { %v6734_v5 = vpop.eup %5186  ;;  %5206 = vpow2.f32 %v4624_v33  ;;  %v1063_v27 = vadd.f32 %v943_v38, %v8625_v11  ;;  %v1066_v33 = vadd.f32 %v946_v46, %v8626_v4  ;;  %v1065_v61 = vadd.f32 %v945_v21, %v8627_v57  ;;  %v8628_v38 = vld [vmem:[#allocation6_spill] sm:$0xff] }
 0x1a8   : > { %v5189_v9 = vpop.eup %5188  ;;  %5208 = vpow2.f32 %v4623_v2  ;;  %v4625_v6 = vmul.f32 -1.442695, %v1061_v44 }
 0x1a9   : > { %v6740_v7 = vpop.eup %5190  ;;  %5210 = vpow2.f32 %v4675_v22  ;;  %v4627_v49 = vmul.f32 -1.442695, %v1063_v27  ;;  %v948_v22 = vld [vmem:[%s8597_s2 + $0x198] sm:$0xff]  ;;  %v4629_v44 = vmul.f32 -1.442695, %v1065_v61 }
 0x1aa   : > { %2564 = vperm.xlu0 %4927, %v5189_v9   ;;  %2219 = vperm.xlu1 %4926, %v6629_v32   ;;  %v5193_v14 = vpop.eup %5192  ;;  %5212 = vrcp.f32 %v1587_v43  ;;  %v4680_v43 = vmul.f32 -1.442695, %v1116_v3  ;;  %v998_v9 = vld [vmem:[%s8597_s2 + $0x328] sm:$0xff] }
 0x1ab   : > { %v5195_v24 = vpop.eup %5194  ;;  %5214 = vrcp.f32 %v1533_v10  ;;  %v4630_v10 = vmul.f32 -1.442695, %v1066_v33  ;;  %v1118_v11 = vadd.f32 %v998_v9, %v6504_v58  ;;  %v1000_v33 = vld [vmem:[%s8597_s2 + $0x338] sm:$0xff]  ;;  %v8632_v9 = vld [vmem:[#allocation10_spill] sm:$0xff] }
 0x1ac   : > { %v5197_v8 = vpop.eup %5196  ;;  %5216 = vrcp.f32 %v1536_v23  ;;  %v1589_v20 = vadd.f32 1.0, %v5195_v24  ;;  %v950_v24 = vld [vmem:[%s8597_s2 + $0x1a8] sm:$0xff] }
 0x1ad   : > { %v5199_v32 = vpop.eup %5198  ;;  %5218 = vpow2.f32 %v4626_v39  ;;  %v1538_v2 = vadd.f32 1.0, %v5197_v8  ;;  %v1068_v39 = vadd.f32 %v948_v22, %v8628_v38  ;;  %v993_v8 = vld [vmem:[%s8597_s2 + $0x300] sm:$0xff]  ;;  %v4682_v3 = vmul.f32 -1.442695, %v1118_v11  ;;  %v1987_v11 = vld [vmem:[%s6667_s22 + $0x410] sm:$0xff] }
 0x1ae   : > { %2254 = vperm.xlu0 %4927, %v6699_v42   ;;  %2539 = vperm.xlu1 %4926, %v5193_v14   ;;  %v6755_v54 = vpop.eup %5200  ;;  %5220 = vpow2.f32 %v4678_v40  ;;  %v1537_v42 = vadd.f32 1.0, %v5199_v32  ;;  %v1067_v14 = vadd.f32 %v947_v15, %v8629_v13  ;;  %v995_v15 = vld [vmem:[%s8597_s2 + $0x310] sm:$0xff] }
 0x1af   : > { %v6758_v47 = vpop.eup %5202  ;;  %5222 = vrcp.f32 %v1535_v35  ;;  %v1115_v13 = vadd.f32 %v995_v15, %v6491_v53  ;;  %v8634_v15 = vld [vmem:[#allocation12_spill] sm:$0xff] }
 0x1b0   : > { %v5205_v36 = vpop.eup %5204  ;;  %5224 = vpow2.f32 %v4625_v6  ;;  %v4631_v32 = vmul.f32 -1.442695, %v1067_v14 }
 0x1b1   : > { %v5207_v60 = vpop.eup %5206  ;;  %5226 = vpow2.f32 %v4628_v63  ;;  %v8630_v63 = vld [vmem:[#allocation8_spill] sm:$0xff] }
 0x1b2   : > { %2574 = vperm.xlu0 %4927, %v5205_v36   ;;  %2229 = vperm.xlu1 %4926, %v6674_v45   ;;  %v5209_v59 = vpop.eup %5208  ;;  %5228 = vrcp.f32 %v1589_v20  ;;  %v1540_v19 = vadd.f32 1.0, %v5207_v60  ;;  %v1070_v21 = vadd.f32 %v950_v24, %v8630_v63  ;;  %v1113_v20 = vadd.f32 %v993_v8, %v6472_v26  ;;  %v952_v26 = vld [vmem:[%s8597_s2 + $0x1b8] sm:$0xff] }
 0x1b3   : > { %v5211_v12 = vpop.eup %5210  ;;  %5230 = vpow2.f32 %v4627_v49  ;;  %v1539_v0 = vadd.f32 1.0, %v5209_v59  ;;  %v1988_v24 = vld [vmem:[%s6667_s22 + $0x418] sm:$0xff] }
 0x1b4   : > { %v5213_v23 = vpop.eup %5212  ;;  %5232 = vrcp.f32 %v1538_v2  ;;  %v1591_v35 = vadd.f32 1.0, %v5211_v12  ;;  %v4677_v60 = vmul.f32 -1.442695, %v1113_v20  ;;  %v8631_v12 = vld [vmem:[#allocation9_spill] sm:$0xff]  ;;  %v997_v20 = vld [vmem:[%s8597_s2 + $0x320] sm:$0xff] }
 0x1b5   : > { %v6773_v45 = vpop.eup %5214  ;;  %5234 = vrcp.f32 %v1537_v42  ;;  %v1120_v42 = vadd.f32 %v1000_v33, %v6522_v51 }
 0x1b6   : > { %2264 = vperm.xlu0 %4927, %v6728_v62   ;;  %2549 = vperm.xlu1 %4926, %v5213_v23   ;;  %v5217_v40 = vpop.eup %5216  ;;  %5236 = vpow2.f32 %v4680_v43  ;;  %v4632_v62 = vmul.f32 -1.442695, %v1068_v39  ;;  %v1072_v23 = vadd.f32 %v952_v26, %v8632_v9  ;;  %v1986_v39 = vld [vmem:[%s6667_s22 + $0x408] sm:$0xff]  ;;  %v1861_v9 = vld [vmem:[%s6667_s22 + $0x20] sm:$0xff] }
 0x1b7   : > { %v5219_v27 = vpop.eup %5218  ;;  %5238 = vpow2.f32 %v4630_v10  ;;  %v4684_v14 = vmul.f32 -1.442695, %v1120_v42 }
 0x1b8   : > { %v5221_v6 = vpop.eup %5220  ;;  %5240 = vpow2.f32 %v4629_v44  ;;  %v1542_v2 = vadd.f32 1.0, %v5219_v27  ;;  %v4636_v53 = vmul.f32 -1.442695, %v1072_v23 }
 0x1b9   : > { %v6784_v46 = vpop.eup %5222  ;;  %5242 = vrcp.f32 %v1540_v19  ;;  %v1594_v4 = vadd.f32 1.0, %v5221_v6 }
 0x1ba   : > { %2274 = vperm.xlu0 %4927, %v6740_v7   ;;  %2239 = vperm.xlu1 %4926, %v6696_v48   ;;  %v5225_v58 = vpop.eup %5224  ;;  %5244 = vrcp.f32 %v1591_v35  ;;  %v4634_v7 = vmul.f32 -1.442695, %v1070_v21  ;;  %v949_v48 = vld [vmem:[%s8597_s2 + $0x1a0] sm:$0xff] }
 0x1bb   : > { %v5227_v49 = vpop.eup %5226  ;;  %5246 = vrcp.f32 %v1539_v0  ;;  %v1541_v59 = vadd.f32 1.0, %v5225_v58  ;;  %v1069_v10 = vadd.f32 %v949_v48, %v8631_v12  ;;  %v1985_v35 = vld [vmem:[%s6667_s22 + $0x400] sm:$0xff]  ;;  %v951_v0 = vld [vmem:[%s8597_s2 + $0x1b0] sm:$0xff]  ;;  %v954_v58 = vld [vmem:[%s8597_s2 + $0x1c8] sm:$0xff] }
 0x1bc   : > { %v5229_v36 = vpop.eup %5228  ;;  %5248 = vpow2.f32 %v4632_v62  ;;  %v6822_v62 = vpop.permute.xlu0 %2124 }
 0x1bd   : > { %v5231_v57 = vpop.eup %5230  ;;  %5250 = vpow2.f32 %v4631_v32  ;;  %v4633_v6 = vmul.f32 -1.442695, %v1069_v10 }
 0x1be   : > { %2284 = vperm.xlu0 %4927, %v6758_v47   ;;  %2559 = vperm.xlu1 %4926, %v5229_v36   ;;  %v5233_v61 = vpop.eup %5232  ;;  %5252 = vpow2.f32 %v4682_v3  ;;  %v1544_v47 = vadd.f32 1.0, %v5227_v49  ;;  %v1543_v38 = vadd.f32 1.0, %v5231_v57  ;;  %v8633_v36 = vld [vmem:[#allocation11_spill] sm:$0xff]  ;;  %v4679_v57 = vmul.f32 -1.442695, %v1115_v13 }
 0x1bf   : > { %v6801_v22 = vpop.eup %5234  ;;  %5254 = vrcp.f32 %v1594_v4 }
 0x1c0   : > { %v5237_v43 = vpop.eup %5236  ;;  %5256 = vrcp.f32 %v1542_v2  ;;  %v1071_v2 = vadd.f32 %v951_v0, %v8633_v36 }
 0x1c1   : > { %v2420_v51 = vpop.permute.xlu1 %2419  ;;  %v5239_v44 = vpop.eup %5238  ;;  %5258 = vpow2.f32 %v4634_v7  ;;  %v1596_v8 = vadd.f32 1.0, %v5237_v43  ;;  %v1074_v43 = vadd.f32 %v954_v58, %v8634_v15 }
 0x1c2   : > { %2294 = vperm.xlu0 %4927, %v5217_v40   ;;  %2249 = vperm.xlu1 %4926, %v6721_v37   ;;  %v5241_v19 = vpop.eup %5240  ;;  %5260 = vpow2.f32 %v4677_v60  ;;  %v1002_v37 = vld [vmem:[%s8597_s2 + $0x348] sm:$0xff]  ;;  %v2826_v63 = vmul.f32 %v2420_v51, %v1986_v39  ;;  %v2825_v49 = vmul.f32 %v2420_v51, %v1985_v35  ;;  %v1546_v26 = vadd.f32 1.0, %v5239_v44  ;;  %v1864_v39 = vld [vmem:[%s6667_s22 + $0x38] sm:$0xff] }
 0x1c3   : > { %v6814_v27 = vpop.eup %5242  ;;  %5262 = vrcp.f32 %v1541_v59  ;;  %v1122_v7 = vadd.f32 %v1002_v37, %v6537_v18  ;;  %v1545_v59 = vadd.f32 1.0, %v5241_v19  ;;  %v1862_v44 = vld [vmem:[%s6667_s22 + $0x28] sm:$0xff]  ;;  %v4638_v35 = vmul.f32 -1.442695, %v1074_v43 }
 0x1c4   : > { %v5245_v40 = vpop.eup %5244  ;;  %5264 = vrcp.f32 %v1544_v47  ;;  %v1117_v47 = vadd.f32 %v997_v20, %v6506_v17  ;;  %v4635_v17 = vmul.f32 -1.442695, %v1071_v2  ;;  %v999_v2 = vld [vmem:[%s8597_s2 + $0x330] sm:$0xff]  ;;  %v1990_v43 = vld [vmem:[%s6667_s22 + $0x428] sm:$0xff] }
 0x1c5   : > { %v2425_v32 = vpop.permute.xlu1 %2424  ;;  %v6824_v21 = vpop.eup %5246  ;;  %5266 = vrcp.f32 %v1543_v38  ;;  %v4686_v51 = vmul.f32 -1.442695, %v1122_v7  ;;  %v1863_v38 = vld [vmem:[%s6667_s22 + $0x30] sm:$0xff] }
 0x1c6   : > { %2304 = vperm.xlu0 %4927, %v5233_v61   ;;  %2569 = vperm.xlu1 %4926, %v5245_v40   ;;  %v2828_v3 = vmul.f32 %v2425_v32, %v1988_v24  ;;  %v2827_v4 = vmul.f32 %v2425_v32, %v1987_v11  ;;  %v5249_v33 = vpop.eup %5248  ;;  %5268 = vpow2.f32 %v4684_v14  ;;  %v1004_v14 = vld [vmem:[%s8597_s2 + $0x358] sm:$0xff]  ;;  %v4681_v11 = vmul.f32 -1.442695, %v1117_v47  ;;  %v1991_v47 = vld [vmem:[%s6667_s22 + $0x430] sm:$0xff] }
 0x1c7   : > { %v6834_v48 = vpop.eup %5250  ;;  %5270 = vrcp.f32 %v1596_v8  ;;  %v1124_v20 = vadd.f32 %v1004_v14, %v6554_v28  ;;  %v1867_v14 = vld [vmem:[%s6667_s22 + $0x50] sm:$0xff] }
 0x1c8   : > { %v3082_v60 = vpack.c.bf16 %v2828_v3, %v2826_v63  ;;  %v3081_v42 = vpack.c.bf16 %v2827_v4, %v2825_v49  ;;  %v5253_v61 = vpop.eup %5252  ;;  %5272 = vpow2.f32 %v4633_v6  ;;  %v6864_v63 = vld [vmem:[%s8599_s4 + $0x20] sm:$0xff] }
 0x1c9   : > { %v2110_v12 = vpop.permute.xlu1 %2109  ;;  %v6838_v10 = vpop.permute.xlu0 %2444  ;;  %5274 = vpow2.f32 %v4636_v53  ;;  %v1598_v13 = vadd.f32 1.0, %v5253_v61  ;;  %v1989_v61 = vld [vmem:[%s6667_s22 + $0x420] sm:$0xff]  ;;  %v4688_v15 = vmul.f32 -1.442695, %v1124_v20  ;;  %v1866_v20 = vld [vmem:[%s6667_s22 + $0x48] sm:$0xff] }
 0x1ca   : > { %v5255_v18 = vpop.eup %5254  ;;  %3824 = vmatprep.subr.bf16.mxu0 %v3082_v60  ;;  %5276 = vpow2.f32 %v4679_v57  ;;  %2259 = vperm.xlu1 %4926, %v6734_v5   ;;  %v6857_v5 = vld [vmem:[%s8599_s4] sm:$0xff]  ;;  %v2701_v40 = vmul.f32 %v2110_v12, %v1861_v9  ;;  %v2702_v6 = vmul.f32 %v2110_v12, %v1862_v44  ;;  %v1992_v12 = vld [vmem:[%s6667_s22 + $0x438] sm:$0xff] }
 0x1cb   : > { %v6841_v23 = vpop.eup %5256  ;;  %2584 = vperm.xlu0 %4927, %v5255_v18   ;;  %5278 = vrcp.f32 %v1546_v26  ;;  %3825 = vmatpush1.bf16.msra.mxu0 %v3081_v42  ;;  %v4701_v3 = vcombine.low %v6857_v5, %v6864_v63  ;;  %v4702_v49 = vcombine.high %v6857_v5, %v6864_v63  ;;  %v953_v42 = vld [vmem:[%s8597_s2 + $0x1c0] sm:$0xff] }
 0x1cc   : > { %v6847_v19 = vpop.eup %5258  ;;  %5280 = vrcp.f32 %v1545_v59  ;;  %v7296_v63 = vld [vmem:[%s8599_s4 + $0x80] sm:$0xff] }
 0x1cd   : > { %v5261_v24 = vpop.eup %5260  ;;  %v2115_v0 = vpop.permute.xlu1 %2114  ;;  %5282 = vpow2.f32 %v4686_v51  ;;  %3590 = vmatprep.mubr.bf16.mxu1 %v4702_v49  ;;  %v1006_v51 = vld [vmem:[%s8597_s2 + $0x368] sm:$0xff] }
 0x1ce   : > { %v6852_v8 = vpop.permute.xlu0 %2134  ;;  %v6859_v37 = vpop.eup %5262  ;;  %v2703_v53 = vmul.f32 %v2115_v0, %v1863_v38  ;;  %v2704_v32 = vmul.f32 %v2115_v0, %v1864_v39  ;;  %2269 = vperm.xlu1 %4926, %v6755_v54   ;;  %v1593_v36 = vadd.f32 1.0, %v5261_v24  ;;  %5284 = vrcp.f32 %v1598_v13  ;;  %v8635_v38 = vld [vmem:[#allocation13_spill] sm:$0xff] }
 0x1cf   : > { %v6866_v58 = vpop.eup %5264  ;;  %2314 = vperm.xlu0 %4927, %v6814_v27   ;;  %v1548_v54 = vadd.f32 1.0, %v5249_v33  ;;  %5286 = vpow2.f32 %v4635_v17  ;;  %v1119_v33 = vadd.f32 %v999_v2, %v6524_v31  ;;  %v1547_v31 = vadd.f32 1.0, %v6834_v48 }
 0x1d0   : > { %v6875_v4 = vpop.eup %5266  ;;  %v3020_v28 = vpack.c.bf16 %v2704_v32, %v2702_v6  ;;  %v3019_v57 = vpack.c.bf16 %v2703_v53, %v2701_v40  ;;  %5288 = vpow2.f32 %v4638_v35  ;;  %v1126_v48 = vadd.f32 %v1006_v51, %v6575_v29  ;;  %v1868_v53 = vld [vmem:[%s6667_s22 + $0x58] sm:$0xff]  ;;  %v1865_v32 = vld [vmem:[%s6667_s22 + $0x40] sm:$0xff]  ;;  %v1994_v51 = vld [vmem:[%s6667_s22 + $0x448] sm:$0xff] }
 0x1d1   : > { %v5269_v27 = vpop.eup %5268  ;;  %v2430_v7 = vpop.permute.xlu1 %2429  ;;  %5290 = vpow2.f32 %v4681_v11  ;;  %v4683_v6 = vmul.f32 -1.442695, %v1119_v33 }
 0x1d2   : > { %v6880_v26 = vpop.permute.xlu0 %2454  ;;  %v5271_v60 = vpop.eup %5270  ;;  %3560 = vmatprep.subr.bf16.mxu1 %v3020_v28  ;;  %2279 = vperm.xlu1 %4926, %v6773_v45   ;;  %5292 = vrcp.f32 %v1593_v36  ;;  %v1600_v9 = vadd.f32 1.0, %v5269_v27  ;;  %v1073_v45 = vadd.f32 %v953_v42, %v8635_v38  ;;  %v2829_v24 = vmul.f32 %v2430_v7, %v1989_v61  ;;  %v1001_v36 = vld [vmem:[%s8597_s2 + $0x340] sm:$0xff]  ;;  %v1995_v42 = vld [vmem:[%s6667_s22 + $0x450] sm:$0xff] }
 0x1d3   : > { %v6886_v59 = vpop.eup %5272  ;;  %2594 = vperm.xlu0 %4927, %v5271_v60   ;;  %3561 = vmatpush1.bf16.msra.mxu1 %v3019_v57  ;;  %5294 = vrcp.f32 %v1548_v54  ;;  %v2830_v35 = vmul.f32 %v2430_v7, %v1990_v43  ;;  %v2707_v7 = vmul.f32 %v6822_v62, %v1867_v14  ;;  %v2708_v60 = vmul.f32 %v6822_v62, %v1868_v53  ;;  %v1871_v53 = vld [vmem:[%s6667_s22 + $0x70] sm:$0xff] }
 0x1d4   : > { %v6893_v18 = vpop.eup %5274  ;;  %5296 = vpow2.f32 %v4688_v15  ;;  %v4637_v29 = vmul.f32 -1.442695, %v1073_v45  ;;  %v1121_v43 = vadd.f32 %v1001_v36, %v6539_v50 }
 0x1d5   : > { %v5277_v44 = vpop.eup %5276  ;;  %v2435_v39 = vpop.permute.xlu1 %2434  ;;  %5298 = vrcp.f32 %v1600_v9  ;;  %v1993_v9 = vld [vmem:[%s6667_s22 + $0x440] sm:$0xff] }
 0x1d6   : > { %v6900_v17 = vpop.permute.xlu0 %2144  ;;  %v6902_v13 = vpop.eup %5278  ;;  %v2831_v11 = vmul.f32 %v2435_v39, %v1991_v47  ;;  %v2832_v0 = vmul.f32 %v2435_v39, %v1992_v12  ;;  %2289 = vperm.xlu1 %4926, %v6784_v46   ;;  %v1595_v49 = vadd.f32 1.0, %v5277_v44  ;;  %5300 = vrcp.f32 %v1547_v31  ;;  %v1996_v12 = vld [vmem:[%s6667_s22 + $0x458] sm:$0xff] }
 0x1d7   : > { %v6905_v40 = vpop.eup %5280  ;;  %2324 = vperm.xlu0 %4927, %v6841_v23   ;;  %v956_v23 = vld [vmem:[%s8597_s2 + $0x1d8] sm:$0xff]  ;;  %5302 = vpow2.f32 %v4683_v6  ;;  %v4690_v47 = vmul.f32 -1.442695, %v1126_v48  ;;  %v1550_v39 = vadd.f32 1.0, %v6847_v19  ;;  %v1003_v6 = vld [vmem:[%s8597_s2 + $0x350] sm:$0xff]  ;;  %v2835_v19 = vmul.f32 %v6838_v10, %v1995_v42 }
 0x1d8   : > { %v3084_v2 = vpack.c.bf16 %v2832_v0, %v2830_v35  ;;  %v3083_v28 = vpack.c.bf16 %v2831_v11, %v2829_v24  ;;  %v5283_v57 = vpop.eup %5282  ;;  %5304 = vrcp.f32 %v1595_v49  ;;  %v1008_v31 = vld [vmem:[%s8597_s2 + $0x378] sm:$0xff]  ;;  %v955_v0 = vld [vmem:[%s8597_s2 + $0x1d0] sm:$0xff]  ;;  %v2836_v48 = vmul.f32 %v6838_v10, %v1996_v12 }
 0x1d9   : > { %v2120_v27 = vpop.permute.xlu1 %2119  ;;  %v5285_v46 = vpop.eup %5284  ;;  %v1602_v62 = vadd.f32 1.0, %v5283_v57  ;;  %5306 = vpow2.f32 %v4637_v29  ;;  %v4685_v36 = vmul.f32 -1.442695, %v1121_v43  ;;  %v1869_v57 = vld [vmem:[%s6667_s22 + $0x60] sm:$0xff]  ;;  %v1870_v29 = vld [vmem:[%s6667_s22 + $0x68] sm:$0xff]  ;;  %v2711_v12 = vmul.f32 %v6852_v8, %v1871_v53 }
 0x1da   : > { %v6916_v54 = vpop.permute.xlu0 %2464  ;;  %v2705_v61 = vmul.f32 %v2120_v27, %v1865_v32  ;;  %v2706_v33 = vmul.f32 %v2120_v27, %v1866_v20  ;;  %3826 = vmatprep.subr.bf16.mxu0 %v3084_v2  ;;  %v6924_v15 = vpop.eup %5286  ;;  %2299 = vperm.xlu1 %4926, %v6801_v22   ;;  %v8636_v22 = vld [vmem:[#allocation14_spill] sm:$0xff]  ;;  %5308 = vpow2.f32 %v4690_v47  ;;  %v1128_v2 = vadd.f32 %v1008_v31, %v6592_v25  ;;  %v958_v47 = vld [vmem:[%s8597_s2 + $0x1e8] sm:$0xff]  ;;  %v6974_v31 = vld [vmem:[%s8599_s4 + $0x30] sm:$0xff] }
 0x1db   : > { %2604 = vperm.xlu0 %4927, %v5285_v46   ;;  %v6931_v44 = vpop.eup %5288  ;;  %3827 = vmatpush1.bf16.msra.mxu0 %v3083_v28  ;;  %v1076_v14 = vadd.f32 %v956_v23, %v8636_v22  ;;  %v1872_v28 = vld [vmem:[%s6667_s22 + $0x78] sm:$0xff]  ;;  %5310 = vrcp.f32 %v1602_v62  ;;  %v1998_v22 = vld [vmem:[%s6667_s22 + $0x468] sm:$0xff] }
 0x1dc   : > { %v3022_v38 = vpack.c.bf16 %v2708_v60, %v2706_v33  ;;  %v3021_v45 = vpack.c.bf16 %v2707_v7, %v2705_v61  ;;  %v5291_v50 = vpop.eup %5290  ;;  %5312 = vrcp.f32 %v1550_v39  ;;  %v8637_v60 = vld [vmem:[#allocation15_spill] sm:$0xff]  ;;  %v1123_v61 = vadd.f32 %v1003_v6, %v6556_v30  ;;  %v1997_v39 = vld [vmem:[%s6667_s22 + $0x460] sm:$0xff] }
 0x1dd   : > { %v2440_v24 = vpop.permute.xlu1 %2439  ;;  %v5293_v11 = vpop.eup %5292  ;;  %v1597_v27 = vadd.f32 1.0, %v5291_v50  ;;  %v4640_v7 = vmul.f32 -1.442695, %v1076_v14  ;;  %v1075_v42 = vadd.f32 %v955_v0, %v8637_v60  ;;  %v2712_v30 = vmul.f32 %v6852_v8, %v1872_v28  ;;  %v2000_v50 = vld [vmem:[%s6667_s22 + $0x478] sm:$0xff]  ;;  %v1873_v60 = vld [vmem:[%s6667_s22 + $0x80] sm:$0xff] }
 0x1de   : > { %v6938_v35 = vpop.permute.xlu0 %2154  ;;  %v2833_v32 = vmul.f32 %v2440_v24, %v1993_v9  ;;  %v2834_v20 = vmul.f32 %v2440_v24, %v1994_v51  ;;  %3562 = vmatprep.subr.bf16.mxu1 %v3022_v38  ;;  %v6949_v49 = vpop.eup %5294  ;;  %2579 = vperm.xlu1 %4926, %v5293_v11   ;;  %v1999_v9 = vld [vmem:[%s6667_s22 + $0x470] sm:$0xff]  ;;  %5314 = vpow2.f32 %v4685_v36  ;;  %v1010_v11 = vld [vmem:[%s8597_s2 + $0x388] sm:$0xff]  ;;  %v2840_v28 = vmul.f32 %v6880_v26, %v2000_v50 }
 0x1df   : > { %2334 = vperm.xlu0 %4927, %v6866_v58   ;;  %3563 = vmatpush1.bf16.msra.mxu1 %v3021_v45  ;;  %v5297_v23 = vpop.eup %5296  ;;  %v6963_v58 = vld [vmem:[%s8599_s4 + $0x10] sm:$0xff]  ;;  %v4692_v45 = vmul.f32 -1.442695, %v1128_v2  ;;  %5316 = vrcp.f32 %v1597_v27  ;;  %v2839_v2 = vmul.f32 %v6880_v26, %v1999_v9  ;;  %v1005_v26 = vld [vmem:[%s8597_s2 + $0x360] sm:$0xff] }
 0x1e0   : > { %v3086_v10 = vpack.c.bf16 %v2836_v48, %v2834_v20  ;;  %v3085_v46 = vpack.c.bf16 %v2835_v19, %v2833_v32  ;;  %v5299_v43 = vpop.eup %5298  ;;  %v4705_v8 = vcombine.low %v6963_v58, %v6974_v31  ;;  %v4706_v14 = vcombine.high %v6963_v58, %v6974_v31  ;;  %v8638_v48 = vld [vmem:[#allocation16_spill] sm:$0xff] }
 0x1e1   : > { %v2130_v25 = vpop.permute.xlu1 %2129  ;;  %v6976_v38 = vpop.eup %5300  ;;  %v1604_v24 = vadd.f32 1.0, %v5297_v23  ;;  %5318 = vpow2.f32 %v4640_v7  ;;  %v4639_v19 = vmul.f32 -1.442695, %v1075_v42  ;;  %v1078_v53 = vadd.f32 %v958_v47, %v8638_v48  ;;  %v1876_v7 = vld [vmem:[%s6667_s22 + $0x98] sm:$0xff]  ;;  %v1874_v42 = vld [vmem:[%s6667_s22 + $0x88] sm:$0xff] }
 0x1e2   : > { %v6958_v33 = vpop.permute.xlu0 %2474  ;;  %v2709_v51 = vmul.f32 %v2130_v25, %v1869_v57  ;;  %v2710_v62 = vmul.f32 %v2130_v25, %v1870_v29  ;;  %3828 = vmatprep.subr.bf16.mxu0 %v3086_v10  ;;  %2309 = vperm.xlu1 %4926, %v6824_v21   ;;  %v5303_v21 = vpop.eup %5302  ;;  %v1875_v57 = vld [vmem:[%s6667_s22 + $0x90] sm:$0xff]  ;;  %5320 = vpow2.f32 %v4692_v45  ;;  %v1130_v23 = vadd.f32 %v1010_v11, %v6608_v34  ;;  %v2001_v11 = vld [vmem:[%s6667_s22 + $0x480] sm:$0xff] }
 0x1e3   : > { %2614 = vperm.xlu0 %4927, %v5299_v43   ;;  %3829 = vmatpush1.bf16.msra.mxu0 %v3085_v46  ;;  %v5305_v36 = vpop.eup %5304  ;;  %v4687_v46 = vmul.f32 -1.442695, %v1123_v61  ;;  %v1599_v25 = vadd.f32 1.0, %v5303_v21  ;;  %5322 = vrcp.f32 %v1604_v24  ;;  %v4642_v34 = vmul.f32 -1.442695, %v1078_v53  ;;  %v2004_v24 = vld [vmem:[%s6667_s22 + $0x498] sm:$0xff] }
 0x1e4   : > { %v3024_v0 = vpack.c.bf16 %v2712_v30, %v2710_v62  ;;  %v3023_v6 = vpack.c.bf16 %v2711_v12, %v2709_v51  ;;  %3856 = vmatprep.mubr.bf16.mxu0 %v4706_v14  ;;  %v6995_v10 = vpop.eup %5306  ;;  %5324 = vpow2.f32 %v4639_v19  ;;  %v2715_v9 = vmul.f32 %v6900_v17, %v1875_v57  ;;  %v2003_v62 = vld [vmem:[%s6667_s22 + $0x490] sm:$0xff] }
 0x1e5   : > { %v2450_v32 = vpop.permute.xlu1 %2449  ;;  %v5309_v61 = vpop.eup %5308  ;;  %v2716_v51 = vmul.f32 %v6900_v17, %v1876_v7  ;;  %5326 = vpow2.f32 %v4687_v46  ;;  %v4694_v14 = vmul.f32 -1.442695, %v1130_v23  ;;  %v1012_v17 = vld [vmem:[%s8597_s2 + $0x398] sm:$0xff]  ;;  %v1877_v7 = vld [vmem:[%s6667_s22 + $0xa0] sm:$0xff] }
 0x1e6   : > { %v6990_v20 = vpop.permute.xlu0 %2164  ;;  %v2837_v29 = vmul.f32 %v2450_v32, %v1997_v39  ;;  %v2838_v27 = vmul.f32 %v2450_v32, %v1998_v22  ;;  %3564 = vmatprep.subr.bf16.mxu1 %v3024_v0  ;;  %2589 = vperm.xlu1 %4926, %v5305_v36   ;;  %v1125_v22 = vadd.f32 %v1005_v26, %v6577_v55  ;;  %v2002_v0 = vld [vmem:[%s6667_s22 + $0x488] sm:$0xff]  ;;  %5328 = vrcp.f32 %v1599_v25  ;;  %v1880_v23 = vld [vmem:[%s6667_s22 + $0xb8] sm:$0xff] }
 0x1e7   : > { %2344 = vperm.xlu0 %4927, %v6902_v13   ;;  %3565 = vmatpush1.bf16.msra.mxu1 %v3023_v6  ;;  %v5311_v13 = vpop.eup %5310  ;;  %v1606_v6 = vadd.f32 1.0, %v5309_v61  ;;  %v1552_v55 = vadd.f32 1.0, %v6893_v18  ;;  %5330 = vpow2.f32 %v4642_v34  ;;  %v2843_v36 = vmul.f32 %v6916_v54, %v2003_v62  ;;  %v960_v34 = vld [vmem:[%s8597_s2 + $0x1f8] sm:$0xff] }
 0x1e8   : > { %v3088_v43 = vpack.c.bf16 %v2840_v28, %v2838_v27  ;;  %v3087_v47 = vpack.c.bf16 %v2839_v2, %v2837_v29  ;;  %v7010_v39 = vpop.eup %5312  ;;  %v2844_v2 = vmul.f32 %v6916_v54, %v2004_v24  ;;  %v1879_v28 = vld [vmem:[%s6667_s22 + $0xb0] sm:$0xff]  ;;  %v4689_v46 = vmul.f32 -1.442695, %v1125_v22  ;;  %v2008_v22 = vld [vmem:[%s6667_s22 + $0x4b8] sm:$0xff]  ;;  %v2006_v24 = vld [vmem:[%s6667_s22 + $0x4a8] sm:$0xff] }
 0x1e9   : > { %v2140_v12 = vpop.permute.xlu1 %2139  ;;  %v5315_v48 = vpop.eup %5314  ;;  %5332 = vpow2.f32 %v4694_v14  ;;  %v1132_v18 = vadd.f32 %v1012_v17, %v6625_v52  ;;  %v1007_v54 = vld [vmem:[%s8597_s2 + $0x370] sm:$0xff]  ;;  %v2005_v14 = vld [vmem:[%s6667_s22 + $0x4a0] sm:$0xff] }
 0x1ea   : > { %v7005_v30 = vpop.permute.xlu0 %2484  ;;  %v2713_v45 = vmul.f32 %v2140_v12, %v1873_v60  ;;  %v2714_v50 = vmul.f32 %v2140_v12, %v1874_v42  ;;  %3830 = vmatprep.subr.bf16.mxu0 %v3088_v43  ;;  %2319 = vperm.xlu1 %4926, %v6859_v37   ;;  %v5317_v32 = vpop.eup %5316  ;;  %v1878_v60 = vld [vmem:[%s6667_s22 + $0xa8] sm:$0xff]  ;;  %v1601_v42 = vadd.f32 1.0, %v5315_v48  ;;  %5334 = vrcp.f32 %v1606_v6 }
 0x1eb   : > { %2624 = vperm.xlu0 %4927, %v5311_v13   ;;  %3831 = vmatpush1.bf16.msra.mxu0 %v3087_v47  ;;  %v7026_v27 = vpop.eup %5318  ;;  %v1549_v47 = vadd.f32 1.0, %v6886_v59  ;;  %5336 = vrcp.f32 %v1552_v55  ;;  %v2719_v12 = vmul.f32 %v6938_v35, %v1879_v28  ;;  %v2720_v13 = vmul.f32 %v6938_v35, %v1880_v23  ;;  %v1014_v35 = vld [vmem:[%s8597_s2 + $0x3a8] sm:$0xff] }
 0x1ec   : > { %v3026_v21 = vpack.c.bf16 %v2716_v51, %v2714_v50  ;;  %v3025_v19 = vpack.c.bf16 %v2715_v9, %v2713_v45  ;;  %v5321_v43 = vpop.eup %5320  ;;  %v2007_v9 = vld [vmem:[%s6667_s22 + $0x4b0] sm:$0xff]  ;;  %5338 = vpow2.f32 %v4689_v46  ;;  %v1127_v45 = vadd.f32 %v1007_v54, %v6594_v56  ;;  %v1884_v46 = vld [vmem:[%s6667_s22 + $0xd8] sm:$0xff]  ;;  %v1882_v23 = vld [vmem:[%s6667_s22 + $0xc8] sm:$0xff] }
 0x1ed   : > { %v2460_v53 = vpop.permute.xlu1 %2459  ;;  %v4696_v50 = vmul.f32 -1.442695, %v1132_v18  ;;  %5340 = vrcp.f32 %v1601_v42  ;;  %v1554_v56 = vadd.f32 1.0, %v6931_v44  ;;  %v1134_v44 = vadd.f32 %v1014_v35, %v6644_v16  ;;  %v1881_v18 = vld [vmem:[%s6667_s22 + $0xc0] sm:$0xff] }
 0x1ee   : > { %v7021_v37 = vpop.permute.xlu0 %2174  ;;  %v2841_v57 = vmul.f32 %v2460_v53, %v2001_v11  ;;  %v2842_v29 = vmul.f32 %v2460_v53, %v2002_v0  ;;  %3566 = vmatprep.subr.bf16.mxu1 %v3026_v21  ;;  %2599 = vperm.xlu1 %4926, %v5317_v32   ;;  %v1608_v11 = vadd.f32 1.0, %v5321_v43  ;;  %5342 = vrcp.f32 %v1549_v47  ;;  %v8639_v21 = vld [vmem:[#allocation18_spill] sm:$0xff] }
 0x1ef   : > { %2354 = vperm.xlu0 %4927, %v6949_v49   ;;  %3567 = vmatpush1.bf16.msra.mxu1 %v3025_v19  ;;  %v5323_v49 = vpop.eup %5322  ;;  %v2847_v53 = vmul.f32 %v6958_v33, %v2007_v9  ;;  %v2848_v32 = vmul.f32 %v6958_v33, %v2008_v22  ;;  %5344 = vpow2.f32 %v4696_v50  ;;  %v1009_v33 = vld [vmem:[%s8597_s2 + $0x380] sm:$0xff]  ;;  %v2724_v47 = vmul.f32 %v6990_v20, %v1884_v46 }
 0x1f0   : > { %v3090_v25 = vpack.c.bf16 %v2844_v2, %v2842_v29  ;;  %v3089_v26 = vpack.c.bf16 %v2843_v36, %v2841_v57  ;;  %v7045_v59 = vpop.eup %5324  ;;  %v1883_v36 = vld [vmem:[%s6667_s22 + $0xd0] sm:$0xff]  ;;  %v4691_v29 = vmul.f32 -1.442695, %v1127_v45  ;;  %5346 = vrcp.f32 %v1608_v11  ;;  %v2010_v45 = vld [vmem:[%s6667_s22 + $0x4c8] sm:$0xff] }
 0x1f1   : > { %v2150_v52 = vpop.permute.xlu1 %2149  ;;  %v5327_v17 = vpop.eup %5326  ;;  %5348 = vrcp.f32 %v1554_v56  ;;  %v2723_v43 = vmul.f32 %v6990_v20, %v1883_v36  ;;  %v4698_v9 = vmul.f32 -1.442695, %v1134_v44  ;;  %v1016_v20 = vld [vmem:[%s8597_s2 + $0x3b8] sm:$0xff]  ;;  %v1551_v44 = vadd.f32 1.0, %v6924_v15 }
 0x1f2   : > { %v7037_v61 = vpop.permute.xlu0 %2494  ;;  %v2717_v51 = vmul.f32 %v2150_v52, %v1877_v7  ;;  %v2718_v62 = vmul.f32 %v2150_v52, %v1878_v60  ;;  %3832 = vmatprep.subr.bf16.mxu0 %v3090_v25  ;;  %2329 = vperm.xlu1 %4926, %v6875_v4   ;;  %v1080_v4 = vadd.f32 %v960_v34, %v8639_v21  ;;  %v5329_v55 = vpop.eup %5328  ;;  %v1603_v7 = vadd.f32 1.0, %v5327_v17  ;;  %v2011_v52 = vld [vmem:[%s6667_s22 + $0x4d0] sm:$0xff] }
 0x1f3   : > { %2634 = vperm.xlu0 %4927, %v5323_v49   ;;  %3833 = vmatpush1.bf16.msra.mxu0 %v3089_v26  ;;  %v7062_v57 = vpop.eup %5330  ;;  %5350 = vpow2.f32 %v4691_v29  ;;  %v1887_v17 = vld [vmem:[%s6667_s22 + $0xf0] sm:$0xff] }
 0x1f4   : > { %v3028_v0 = vpack.c.bf16 %v2720_v13, %v2718_v62  ;;  %v3027_v6 = vpack.c.bf16 %v2719_v12, %v2717_v51  ;;  %v5333_v54 = vpop.eup %5332  ;;  %v4644_v16 = vmul.f32 -1.442695, %v1080_v4  ;;  %v1129_v13 = vadd.f32 %v1009_v33, %v6610_v41  ;;  %v2012_v51 = vld [vmem:[%s6667_s22 + $0x4d8] sm:$0xff]  ;;  %v2009_v62 = vld [vmem:[%s6667_s22 + $0x4c0] sm:$0xff] }
 0x1f5   : > { %v2470_v19 = vpop.permute.xlu1 %2469  ;;  %5352 = vrcp.f32 %v1603_v7  ;;  %v1610_v50 = vadd.f32 1.0, %v5333_v54  ;;  %v1556_v41 = vadd.f32 1.0, %v7026_v27  ;;  %v1136_v27 = vadd.f32 %v1016_v20, %v6669_v1 }
 0x1f6   : > { %v7057_v48 = vpop.permute.xlu0 %2184  ;;  %v2845_v2 = vmul.f32 %v2470_v19, %v2005_v14  ;;  %v2846_v28 = vmul.f32 %v2470_v19, %v2006_v24  ;;  %3568 = vmatprep.subr.bf16.mxu1 %v3028_v0  ;;  %2609 = vperm.xlu1 %4926, %v5329_v55   ;;  %5354 = vpow2.f32 %v4644_v16  ;;  %v2851_v0 = vmul.f32 %v7005_v30, %v2011_v52  ;;  %v1888_v55 = vld [vmem:[%s6667_s22 + $0xf8] sm:$0xff]  ;;  %v8640_v16 = vld [vmem:[#allocation20_spill] sm:$0xff]  ;;  %v2014_v52 = vld [vmem:[%s6667_s22 + $0x4e8] sm:$0xff] }
 0x1f7   : > { %2364 = vperm.xlu0 %4927, %v7010_v39   ;;  %3569 = vmatpush1.bf16.msra.mxu1 %v3027_v6  ;;  %v5335_v39 = vpop.eup %5334  ;;  %v2852_v6 = vmul.f32 %v7005_v30, %v2012_v51  ;;  %v4693_v19 = vmul.f32 -1.442695, %v1129_v13  ;;  %5356 = vpow2.f32 %v4698_v9  ;;  %v1011_v30 = vld [vmem:[%s8597_s2 + $0x390] sm:$0xff]  ;;  %v2727_v7 = vmul.f32 %v7021_v37, %v1887_v17  ;;  %v8641_v9 = vld [vmem:[#allocation17_spill] sm:$0xff]  ;;  %v1013_v17 = vld [vmem:[%s8597_s2 + $0x3a0] sm:$0xff] }
 0x1f8   : > { %v3091_v60 = vpack.c.bf16 %v2847_v53, %v2845_v2  ;;  %v3092_v42 = vpack.c.bf16 %v2848_v32, %v2846_v28  ;;  %v5337_v12 = vpop.eup %5336  ;;  %v1885_v53 = vld [vmem:[%s6667_s22 + $0xe0] sm:$0xff]  ;;  %v1886_v32 = vld [vmem:[%s6667_s22 + $0xe8] sm:$0xff]  ;;  %5358 = vrcp.f32 %v1610_v50  ;;  %v2728_v33 = vmul.f32 %v7021_v37, %v1888_v55 }
 0x1f9   : > { %v2160_v25 = vpop.permute.xlu1 %2159  ;;  %v5339_v24 = vpop.eup %5338  ;;  %5360 = vrcp.f32 %v1556_v41  ;;  %v1558_v13 = vadd.f32 1.0, %v7062_v57  ;;  %v1892_v57 = vld [vmem:[%s6667_s22 + $0x118] sm:$0xff] }
 0x1fa   : > { %v7072_v26 = vpop.permute.xlu0 %2504  ;;  %v2721_v49 = vmul.f32 %v2160_v25, %v1881_v18  ;;  %v2722_v34 = vmul.f32 %v2160_v25, %v1882_v23  ;;  %3834 = vmatprep.subr.bf16.mxu0 %v3092_v42  ;;  %2339 = vperm.xlu1 %4926, %v6905_v40   ;;  %v5341_v35 = vpop.eup %5340  ;;  %v1605_v36 = vadd.f32 1.0, %v5339_v24  ;;  %v957_v23 = vld [vmem:[%s8597_s2 + $0x1e0] sm:$0xff]  ;;  %5362 = vpow2.f32 %v4693_v19 }
 0x1fb   : > { %2644 = vperm.xlu0 %4927, %v5335_v39   ;;  %3835 = vmatpush1.bf16.msra.mxu0 %v3091_v60  ;;  %v7091_v4 = vpop.eup %5342  ;;  %v2015_v60 = vld [vmem:[%s6667_s22 + $0x4f0] sm:$0xff]  ;;  %v1131_v25 = vadd.f32 %v1011_v30, %v8640_v16  ;;  %v4700_v39 = vmul.f32 -1.442695, %v1136_v27  ;;  %v1077_v51 = vadd.f32 %v957_v23, %v8641_v9  ;;  %v2732_v30 = vmul.f32 %v7057_v48, %v1892_v57  ;;  %v1896_v9 = vld [vmem:[%s6667_s22 + $0x138] sm:$0xff] }
 0x1fc   : > { %v3029_v22 = vpack.c.bf16 %v2723_v43, %v2721_v49  ;;  %v3030_v14 = vpack.c.bf16 %v2724_v47, %v2722_v34  ;;  %v5345_v29 = vpop.eup %5344  ;;  %v2016_v43 = vld [vmem:[%s6667_s22 + $0x4f8] sm:$0xff]  ;;  %v2013_v47 = vld [vmem:[%s6667_s22 + $0x4e0] sm:$0xff]  ;;  %5364 = vrcp.f32 %v1605_v36  ;;  %v2855_v50 = vmul.f32 %v7037_v61, %v2015_v60  ;;  %v2018_v60 = vld [vmem:[%s6667_s22 + $0x508] sm:$0xff] }
 0x1fd   : > { %v2480_v11 = vpop.permute.xlu1 %2479  ;;  %v5347_v18 = vpop.eup %5346  ;;  %v1612_v49 = vadd.f32 1.0, %v5345_v29  ;;  %5366 = vrcp.f32 %v1551_v44  ;;  %v2856_v20 = vmul.f32 %v7037_v61, %v2016_v43  ;;  %v4641_v19 = vmul.f32 -1.442695, %v1077_v51  ;;  %v1893_v51 = vld [vmem:[%s6667_s22 + $0x120] sm:$0xff] }
 0x1fe   : > { %v7086_v40 = vpop.permute.xlu0 %2194  ;;  %v2849_v56 = vmul.f32 %v2480_v11, %v2009_v62  ;;  %v2850_v21 = vmul.f32 %v2480_v11, %v2010_v45  ;;  %3570 = vmatprep.subr.bf16.mxu1 %v3030_v14  ;;  %2619 = vperm.xlu1 %4926, %v5341_v35   ;;  %v5349_v15 = vpop.eup %5348  ;;  %v4695_v11 = vmul.f32 -1.442695, %v1131_v25  ;;  %5368 = vpow2.f32 %v4700_v39  ;;  %v1889_v35 = vld [vmem:[%s6667_s22 + $0x100] sm:$0xff] }
 0x1ff   : > { %2374 = vperm.xlu0 %4927, %v5337_v12   ;;  %3571 = vmatpush1.bf16.msra.mxu1 %v3029_v22  ;;  %v5351_v12 = vpop.eup %5350  ;;  %v1891_v22 = vld [vmem:[%s6667_s22 + $0x110] sm:$0xff]  ;;  %5370 = vrcp.f32 %v1612_v49 }
 0x200   : > { %v3093_v2 = vpack.c.bf16 %v2851_v0, %v2849_v56  ;;  %v3094_v28 = vpack.c.bf16 %v2852_v6, %v2850_v21  ;;  %v5353_v45 = vpop.eup %5352  ;;  %v1890_v0 = vld [vmem:[%s6667_s22 + $0x108] sm:$0xff]  ;;  %v1607_v6 = vadd.f32 1.0, %v5351_v12  ;;  %5372 = vrcp.f32 %v1558_v13  ;;  %v1895_v49 = vld [vmem:[%s6667_s22 + $0x130] sm:$0xff] }
 0x201   : > { %v2170_v1 = vpop.permute.xlu1 %2169  ;;  %v5355_v41 = vpop.eup %5354  ;;  %v2731_v36 = vmul.f32 %v7057_v48, %v1891_v22  ;;  %5374 = vpow2.f32 %v4695_v11  ;;  %v2735_v57 = vmul.f32 %v7086_v40, %v1895_v49  ;;  %v2027_v49 = vld [vmem:[%s6667_s22 + $0x550] sm:$0xff] }
 0x202   : > { %v7101_v46 = vpop.permute.xlu0 %2514  ;;  %v2725_v42 = vmul.f32 %v2170_v1, %v1885_v53  ;;  %v2726_v54 = vmul.f32 %v2170_v1, %v1886_v32  ;;  %3836 = vmatprep.subr.bf16.mxu0 %v3094_v28  ;;  %2349 = vperm.xlu1 %4926, %v6976_v38   ;;  %v5357_v21 = vpop.eup %5356  ;;  %v959_v32 = vld [vmem:[%s8597_s2 + $0x1f0] sm:$0xff]  ;;  %v1553_v1 = vadd.f32 1.0, %v6995_v10  ;;  %5376 = vrcp.f32 %v1607_v6  ;;  %v8643_v10 = vld [vmem:[#allocation19_spill] sm:$0xff] }
 0x203   : > { %2654 = vperm.xlu0 %4927, %v5347_v18   ;;  %3837 = vmatpush1.bf16.msra.mxu0 %v3093_v2  ;;  %v5359_v53 = vpop.eup %5358  ;;  %v2019_v2 = vld [vmem:[%s6667_s22 + $0x510] sm:$0xff]  ;;  %v8642_v18 = vld [vmem:[#allocation21_spill] sm:$0xff]  ;;  %5378 = vpow2.f32 %v4641_v19  ;;  %v1560_v16 = vadd.f32 1.0, %v5355_v41  ;;  %v1079_v25 = vadd.f32 %v959_v32, %v8643_v10  ;;  %v2022_v32 = vld [vmem:[%s6667_s22 + $0x528] sm:$0xff] }
 0x204   : > { %v3031_v34 = vpack.c.bf16 %v2727_v7, %v2725_v42  ;;  %v3032_v37 = vpack.c.bf16 %v2728_v33, %v2726_v54  ;;  %v5361_v44 = vpop.eup %5360  ;;  %v1133_v23 = vadd.f32 %v1013_v17, %v8642_v18  ;;  %v2020_v7 = vld [vmem:[%s6667_s22 + $0x518] sm:$0xff]  ;;  %v2017_v33 = vld [vmem:[%s6667_s22 + $0x500] sm:$0xff]  ;;  %v1614_v42 = vadd.f32 1.0, %v5357_v21 }
 0x205   : > { %v2490_v62 = vpop.permute.xlu1 %2489  ;;  %5380 = vrcp.f32 %v1553_v1  ;;  %v8644_v21 = vld [vmem:[#allocation22_spill] sm:$0xff] }
 0x206   : > { %v7116_v38 = vpop.permute.xlu0 %2199  ;;  %v2853_v14 = vmul.f32 %v2490_v62, %v2013_v47  ;;  %v2854_v24 = vmul.f32 %v2490_v62, %v2014_v52  ;;  %3572 = vmatprep.subr.bf16.mxu1 %v3032_v37  ;;  %2629 = vperm.xlu1 %4926, %v5353_v45   ;;  %v2859_v47 = vmul.f32 %v7072_v26, %v2019_v2  ;;  %v4697_v13 = vmul.f32 -1.442695, %v1133_v23  ;;  %v1894_v62 = vld [vmem:[%s6667_s22 + $0x128] sm:$0xff]  ;;  %v1897_v18 = vld [vmem:[%s6667_s22 + $0x140] sm:$0xff] }
 0x207   : > { %2384 = vperm.xlu0 %4927, %v5349_v15   ;;  %3573 = vmatpush1.bf16.msra.mxu1 %v3031_v34  ;;  %v5363_v15 = vpop.eup %5362  ;;  %v2860_v52 = vmul.f32 %v7072_v26, %v2020_v7  ;;  %5382 = vrcp.f32 %v1614_v42  ;;  %v1898_v42 = vld [vmem:[%s6667_s22 + $0x148] sm:$0xff] }
 0x208   : > { %v3095_v61 = vpack.c.bf16 %v2855_v50, %v2853_v14  ;;  %v3096_v56 = vpack.c.bf16 %v2856_v20, %v2854_v24  ;;  %v1609_v45 = vadd.f32 1.0, %v5363_v15  ;;  %v1015_v50 = vld [vmem:[%s8597_s2 + $0x3b0] sm:$0xff]  ;;  %5384 = vrcp.f32 %v1560_v16 }
 0x209   : > { %v2180_v27 = vpop.permute.xlu1 %2179  ;;  %v4643_v14 = vmul.f32 -1.442695, %v1079_v25  ;;  %v1135_v19 = vadd.f32 %v1015_v50, %v8644_v21  ;;  %5386 = vpow2.f32 %v4697_v13  ;;  %v2028_v13 = vld [vmem:[%s6667_s22 + $0x558] sm:$0xff] }
 0x20a   : > { %v7127_v55 = vpop.permute.xlu0 %2524  ;;  %v2729_v28 = vmul.f32 %v2180_v27, %v1889_v35  ;;  %v2730_v29 = vmul.f32 %v2180_v27, %v1890_v0  ;;  %3838 = vmatprep.subr.bf16.mxu0 %v3096_v56  ;;  %2359 = vperm.xlu1 %4926, %v7091_v4   ;;  %v5365_v4 = vpop.eup %5364  ;;  %v2736_v35 = vmul.f32 %v7086_v40, %v1896_v9  ;;  %v2023_v0 = vld [vmem:[%s6667_s22 + $0x530] sm:$0xff]  ;;  %v1555_v56 = vadd.f32 1.0, %v7045_v59  ;;  %v2024_v27 = vld [vmem:[%s6667_s22 + $0x538] sm:$0xff]  ;;  %v2025_v9 = vld [vmem:[%s6667_s22 + $0x540] sm:$0xff] }
 0x20b   : > { %2664 = vperm.xlu0 %4927, %v5359_v53   ;;  %3839 = vmatpush1.bf16.msra.mxu0 %v3095_v61  ;;  %v5367_v12 = vpop.eup %5366  ;;  %v2021_v53 = vld [vmem:[%s6667_s22 + $0x520] sm:$0xff]  ;;  %5388 = vrcp.f32 %v1609_v45  ;;  %v2864_v1 = vmul.f32 %v7101_v46, %v2024_v27 }
 0x20c   : > { %v3033_v48 = vpack.c.bf16 %v2731_v36, %v2729_v28  ;;  %v3034_v54 = vpack.c.bf16 %v2732_v30, %v2730_v29  ;;  %v5369_v22 = vpop.eup %5368  ;;  %5390 = vpow2.f32 %v4643_v14  ;;  %v2867_v14 = vmul.f32 %v7127_v55, %v2027_v49 }
 0x20d   : > { %v2500_v39 = vpop.permute.xlu1 %2499  ;;  %v5371_v11 = vpop.eup %5370  ;;  %v1616_v36 = vadd.f32 1.0, %v5369_v22  ;;  %5392 = vrcp.f32 %v1555_v56 }
 0x20e   : > { %v7142_v43 = vpop.permute.xlu0 %2214  ;;  %v2857_v34 = vmul.f32 %v2500_v39, %v2017_v33  ;;  %v2858_v37 = vmul.f32 %v2500_v39, %v2018_v60  ;;  %3574 = vmatprep.subr.bf16.mxu1 %v3034_v54  ;;  %2639 = vperm.xlu1 %4926, %v5365_v4   ;;  %v5373_v61 = vpop.eup %5372  ;;  %v4699_v60 = vmul.f32 -1.442695, %v1135_v19  ;;  %v1900_v54 = vld [vmem:[%s6667_s22 + $0x158] sm:$0xff] }
 0x20f   : > { %2394 = vperm.xlu0 %4927, %v5361_v44   ;;  %3575 = vmatpush1.bf16.msra.mxu1 %v3033_v48  ;;  %v5375_v2 = vpop.eup %5374  ;;  %v2863_v44 = vmul.f32 %v7101_v46, %v2023_v0  ;;  %v1899_v48 = vld [vmem:[%s6667_s22 + $0x150] sm:$0xff]  ;;  %5394 = vrcp.f32 %v1616_v36 }
 0x210   : > { %v3097_v26 = vpack.c.bf16 %v2859_v47, %v2857_v34  ;;  %v3098_v20 = vpack.c.bf16 %v2860_v52, %v2858_v37  ;;  %v5377_v29 = vpop.eup %5376  ;;  %v1611_v15 = vadd.f32 1.0, %v5375_v2  ;;  %v2737_v47 = vmul.f32 %v7116_v38, %v1897_v18 }
 0x211   : > { %v2190_v24 = vpop.permute.xlu1 %2189  ;;  %v5379_v33 = vpop.eup %5378  ;;  %v2738_v52 = vmul.f32 %v7116_v38, %v1898_v42  ;;  %5396 = vpow2.f32 %v4699_v60 }
 0x212   : > { %v7153_v41 = vpop.permute.xlu0 %2534  ;;  %v2733_v6 = vmul.f32 %v2190_v24, %v1893_v51  ;;  %v2734_v17 = vmul.f32 %v2190_v24, %v1894_v62  ;;  %3840 = vmatprep.subr.bf16.mxu0 %v3098_v20  ;;  %2369 = vperm.xlu1 %4926, %v5367_v12   ;;  %v5381_v46 = vpop.eup %5380  ;;  %v2026_v51 = vld [vmem:[%s6667_s22 + $0x548] sm:$0xff]  ;;  %v1557_v62 = vadd.f32 1.0, %v5379_v33  ;;  %5398 = vrcp.f32 %v1611_v15  ;;  %v1907_v15 = vld [vmem:[%s6667_s22 + $0x190] sm:$0xff] }
 0x213   : > { %2674 = vperm.xlu0 %4927, %v5371_v11   ;;  %3841 = vmatpush1.bf16.msra.mxu0 %v3097_v26  ;;  %v5383_v4 = vpop.eup %5382  ;;  %v2868_v24 = vmul.f32 %v7127_v55, %v2028_v13  ;;  %v1903_v11 = vld [vmem:[%s6667_s22 + $0x170] sm:$0xff] }
 0x214   : > { %v3035_v30 = vpack.c.bf16 %v2735_v57, %v2733_v6  ;;  %v3036_v40 = vpack.c.bf16 %v2736_v35, %v2734_v17  ;;  %v5385_v12 = vpop.eup %5384  ;;  %v1904_v6 = vld [vmem:[%s6667_s22 + $0x178] sm:$0xff]  ;;  %v1901_v17 = vld [vmem:[%s6667_s22 + $0x160] sm:$0xff]  ;;  %5400 = vrcp.f32 %v1557_v62  ;;  %v2743_v36 = vmul.f32 %v7142_v43, %v1903_v11 }
 0x215   : > { %v2510_v28 = vpop.permute.xlu1 %2509  ;;  %v5387_v38 = vpop.eup %5386 }
 0x216   : > { %v7163_v59 = vpop.permute.xlu0 %2224  ;;  %v2861_v23 = vmul.f32 %v2510_v28, %v2021_v53  ;;  %v2862_v7 = vmul.f32 %v2510_v28, %v2022_v32  ;;  %3576 = vmatprep.subr.bf16.mxu1 %v3036_v40  ;;  %2649 = vperm.xlu1 %4926, %v5377_v29   ;;  %v5389_v22 = vpop.eup %5388  ;;  %v1613_v56 = vadd.f32 1.0, %v5387_v38  ;;  %v2031_v40 = vld [vmem:[%s6667_s22 + $0x570] sm:$0xff]  ;;  %v2032_v29 = vld [vmem:[%s6667_s22 + $0x578] sm:$0xff]  ;;  %v2034_v38 = vld [vmem:[%s6667_s22 + $0x588] sm:$0xff] }
 0x217   : > { %2404 = vperm.xlu0 %4927, %v5373_v61   ;;  %3577 = vmatpush1.bf16.msra.mxu1 %v3035_v30  ;;  %v5391_v0 = vpop.eup %5390  ;;  %v1902_v61 = vld [vmem:[%s6667_s22 + $0x168] sm:$0xff]  ;;  %v2744_v30 = vmul.f32 %v7142_v43, %v1904_v6 }
 0x218   : > { %v3099_v16 = vpack.c.bf16 %v2863_v44, %v2861_v23  ;;  %v3100_v10 = vpack.c.bf16 %v2864_v1, %v2862_v7  ;;  %v5393_v55 = vpop.eup %5392  ;;  %v2029_v44 = vld [vmem:[%s6667_s22 + $0x560] sm:$0xff]  ;;  %v2030_v1 = vld [vmem:[%s6667_s22 + $0x568] sm:$0xff]  ;;  %v1559_v18 = vadd.f32 1.0, %v5391_v0  ;;  %5402 = vrcp.f32 %v1613_v56 }
 0x219   : > { %v2205_v25 = vpop.permute.xlu1 %2204  ;;  %v5395_v32 = vpop.eup %5394  ;;  %v1910_v56 = vld [vmem:[%s6667_s22 + $0x1a8] sm:$0xff] }
 0x21a   : > { %v7171_v39 = vpop.permute.xlu0 %2544  ;;  %v2739_v34 = vmul.f32 %v2205_v25, %v1899_v48  ;;  %v2740_v37 = vmul.f32 %v2205_v25, %v1900_v54  ;;  %3842 = vmatprep.subr.bf16.mxu0 %v3100_v10  ;;  %2379 = vperm.xlu1 %4926, %v5381_v46   ;;  %v2871_v48 = vmul.f32 %v7153_v41, %v2031_v40  ;;  %v1908_v46 = vld [vmem:[%s6667_s22 + $0x198] sm:$0xff]  ;;  %v1905_v25 = vld [vmem:[%s6667_s22 + $0x180] sm:$0xff]  ;;  %5404 = vrcp.f32 %v1559_v18 }
 0x21b   : > { %2684 = vperm.xlu0 %4927, %v5383_v4   ;;  %3843 = vmatpush1.bf16.msra.mxu0 %v3099_v16  ;;  %v5397_v33 = vpop.eup %5396  ;;  %v2872_v54 = vmul.f32 %v7153_v41, %v2032_v29  ;;  %v1906_v4 = vld [vmem:[%s6667_s22 + $0x188] sm:$0xff]  ;;  %v2748_v13 = vmul.f32 %v7163_v59, %v1908_v46  ;;  %v2037_v29 = vld [vmem:[%s6667_s22 + $0x5a0] sm:$0xff] }
 0x21c   : > { %v3037_v45 = vpack.c.bf16 %v2739_v34, %v2737_v47  ;;  %v3038_v50 = vpack.c.bf16 %v2740_v37, %v2738_v52  ;;  %v5399_v42 = vpop.eup %5398  ;;  %v1615_v47 = vadd.f32 1.0, %v5397_v33 }
 0x21d   : > { %v2520_v26 = vpop.permute.xlu1 %2519 }
 0x21e   : > { %v7179_v20 = vpop.permute.xlu0 %2234  ;;  %v2865_v57 = vmul.f32 %v2520_v26, %v2025_v9  ;;  %v2866_v35 = vmul.f32 %v2520_v26, %v2026_v51  ;;  %3578 = vmatprep.subr.bf16.mxu1 %v3038_v50  ;;  %2659 = vperm.xlu1 %4926, %v5389_v22   ;;  %v5401_v41 = vpop.eup %5400  ;;  %v2035_v9 = vld [vmem:[%s6667_s22 + $0x590] sm:$0xff]  ;;  %v2033_v50 = vld [vmem:[%s6667_s22 + $0x580] sm:$0xff]  ;;  %5406 = vrcp.f32 %v1615_v47 }
 0x21f   : > { %2414 = vperm.xlu0 %4927, %v5385_v12   ;;  %3579 = vmatpush1.bf16.msra.mxu1 %v3037_v45  ;;  %v2747_v12 = vmul.f32 %v7163_v59, %v1907_v15  ;;  %v2036_v45 = vld [vmem:[%s6667_s22 + $0x598] sm:$0xff]  ;;  %v2875_v11 = vmul.f32 %v7171_v39, %v2035_v9  ;;  %v2042_v9 = vld [vmem:[%s6667_s22 + $0x5c8] sm:$0xff] }
 0x220   : > { %v3101_v21 = vpack.c.bf16 %v2867_v14, %v2865_v57  ;;  %v3102_v19 = vpack.c.bf16 %v2868_v24, %v2866_v35  ;;  %v2876_v57 = vmul.f32 %v7171_v39, %v2036_v45  ;;  %v1911_v35 = vld [vmem:[%s6667_s22 + $0x1b0] sm:$0xff]  ;;  %v1916_v15 = vld [vmem:[%s6667_s22 + $0x1d8] sm:$0xff] }
 0x221   : > { %v2210_v27 = vpop.permute.xlu1 %2209  ;;  %v2751_v39 = vmul.f32 %v7179_v20, %v1911_v35 }
 0x222   : > { %v7187_v53 = vpop.permute.xlu0 %2554  ;;  %v2741_v2 = vmul.f32 %v2210_v27, %v1901_v17  ;;  %v2742_v28 = vmul.f32 %v2210_v27, %v1902_v61  ;;  %3844 = vmatprep.subr.bf16.mxu0 %v3102_v19  ;;  %2389 = vperm.xlu1 %4926, %v5393_v55   ;;  %v5403_v59 = vpop.eup %5402  ;;  %v1912_v17 = vld [vmem:[%s6667_s22 + $0x1b8] sm:$0xff]  ;;  %v1909_v61 = vld [vmem:[%s6667_s22 + $0x1a0] sm:$0xff] }
 0x223   : > { %2694 = vperm.xlu0 %4927, %v5395_v32   ;;  %3845 = vmatpush1.bf16.msra.mxu0 %v3101_v21 }
 0x224   : > { %v3039_v23 = vpack.c.bf16 %v2743_v36, %v2741_v2  ;;  %v3040_v7 = vpack.c.bf16 %v2744_v30, %v2742_v28  ;;  %v5405_v32 = vpop.eup %5404  ;;  %v2752_v36 = vmul.f32 %v7179_v20, %v1912_v17  ;;  %v2039_v30 = vld [vmem:[%s6667_s22 + $0x5b0] sm:$0xff]  ;;  %v2040_v28 = vld [vmem:[%s6667_s22 + $0x5b8] sm:$0xff] }
 0x225   : > { %v2530_v43 = vpop.permute.xlu1 %2529  ;;  %v2879_v20 = vmul.f32 %v7187_v53, %v2039_v30 }
 0x226   : > { %v7195_v60 = vpop.permute.xlu0 %2244  ;;  %v2869_v16 = vmul.f32 %v2530_v43, %v2029_v44  ;;  %v2870_v10 = vmul.f32 %v2530_v43, %v2030_v1  ;;  %3580 = vmatprep.subr.bf16.mxu1 %v3040_v7  ;;  %2669 = vperm.xlu1 %4926, %v5399_v42   ;;  %v2038_v44 = vld [vmem:[%s6667_s22 + $0x5a8] sm:$0xff]  ;;  %v2880_v43 = vmul.f32 %v7187_v53, %v2040_v28  ;;  %v1915_v42 = vld [vmem:[%s6667_s22 + $0x1d0] sm:$0xff]  ;;  %v2949_v28 = vld [vmem:[%s8599_s4 + $0x60] sm:$0xff] }
 0x227   : > { %3581 = vmatpush1.bf16.msra.mxu1 %v3039_v23  ;;  %v2755_v53 = vmul.f32 %v7195_v60, %v1915_v42  ;;  %v1921_v42 = vld [vmem:[%s6667_s22 + $0x200] sm:$0xff] }
 0x228   : > { %v3103_v52 = vpack.c.bf16 %v2871_v48, %v2869_v16  ;;  %v3104_v49 = vpack.c.bf16 %v2872_v54, %v2870_v10  ;;  %v5407_v33 = vpop.eup %5406  ;;  %v1913_v16 = vld [vmem:[%s6667_s22 + $0x1c0] sm:$0xff]  ;;  %v1914_v10 = vld [vmem:[%s6667_s22 + $0x1c8] sm:$0xff] }
 0x229   : > { %v2220_v34 = vpop.permute.xlu1 %2219 }
 0x22a   : > { %v7203_v37 = vpop.permute.xlu0 %2564  ;;  %v2745_v51 = vmul.f32 %v2220_v34, %v1905_v25  ;;  %v2746_v62 = vmul.f32 %v2220_v34, %v1906_v4  ;;  %3846 = vmatprep.subr.bf16.mxu0 %v3104_v49  ;;  %2399 = vperm.xlu1 %4926, %v5401_v41   ;;  %v2043_v49 = vld [vmem:[%s6667_s22 + $0x5d0] sm:$0xff] }
 0x22b   : > { %3847 = vmatpush1.bf16.msra.mxu0 %v3103_v52  ;;  %v2756_v52 = vmul.f32 %v7195_v60, %v1916_v15  ;;  %v7276_v15 = vld [vmem:[%s8599_s4 + $0x50] sm:$0xff] }
 0x22c   : > { %v3041_v26 = vpack.c.bf16 %v2747_v12, %v2745_v51  ;;  %v3042_v22 = vpack.c.bf16 %v2748_v13, %v2746_v62  ;;  %v2044_v12 = vld [vmem:[%s6667_s22 + $0x5d8] sm:$0xff]  ;;  %v2041_v13 = vld [vmem:[%s6667_s22 + $0x5c0] sm:$0xff] }
 0x22d   : > { %v2540_v14 = vpop.permute.xlu1 %2539  ;;  %v2884_v60 = vmul.f32 %v7203_v37, %v2044_v12 }
 0x22e   : > { %v7211_v24 = vpop.permute.xlu0 %2254  ;;  %v2873_v0 = vmul.f32 %v2540_v14, %v2033_v50  ;;  %v2874_v6 = vmul.f32 %v2540_v14, %v2034_v38  ;;  %3582 = vmatprep.subr.bf16.mxu1 %v3042_v22  ;;  %2679 = vperm.xlu1 %4926, %v5403_v59   ;;  %v2883_v38 = vmul.f32 %v7203_v37, %v2043_v49  ;;  %v1920_v59 = vld [vmem:[%s6667_s22 + $0x1f8] sm:$0xff] }
 0x22f   : > { %3583 = vmatpush1.bf16.msra.mxu1 %v3041_v26  ;;  %v1919_v26 = vld [vmem:[%s6667_s22 + $0x1f0] sm:$0xff]  ;;  %v2760_v37 = vmul.f32 %v7211_v24, %v1920_v59  ;;  %v1928_v49 = vld [vmem:[%s6667_s22 + $0x238] sm:$0xff]  ;;  %v1930_v59 = vld [vmem:[%s6667_s22 + $0x248] sm:$0xff] }
 0x230   : > { %v3105_v21 = vpack.c.bf16 %v2875_v11, %v2873_v0  ;;  %v3106_v19 = vpack.c.bf16 %v2876_v57, %v2874_v6  ;;  %v1917_v11 = vld [vmem:[%s6667_s22 + $0x1e0] sm:$0xff]  ;;  %v1918_v57 = vld [vmem:[%s6667_s22 + $0x1e8] sm:$0xff] }
 0x231   : > { %v2230_v55 = vpop.permute.xlu1 %2229 }
 0x232   : > { %v7219_v27 = vpop.permute.xlu0 %2574  ;;  %v2749_v40 = vmul.f32 %v2230_v55, %v1909_v61  ;;  %v2750_v2 = vmul.f32 %v2230_v55, %v1910_v56  ;;  %3848 = vmatprep.subr.bf16.mxu0 %v3106_v19  ;;  %2409 = vperm.xlu1 %4926, %v5405_v32   ;;  %v2759_v61 = vmul.f32 %v7211_v24, %v1919_v26  ;;  %v2047_v56 = vld [vmem:[%s6667_s22 + $0x5f0] sm:$0xff]  ;;  %v2048_v55 = vld [vmem:[%s6667_s22 + $0x5f8] sm:$0xff]  ;;  %v2045_v32 = vld [vmem:[%s6667_s22 + $0x5e0] sm:$0xff] }
 0x233   : > { %3849 = vmatpush1.bf16.msra.mxu0 %v3105_v21  ;;  %v2945_v24 = vld [vmem:[%s8599_s4 + $0x40] sm:$0xff] }
 0x234   : > { %v3043_v1 = vpack.c.bf16 %v2751_v39, %v2749_v40  ;;  %v3044_v18 = vpack.c.bf16 %v2752_v36, %v2750_v2  ;;  %v2046_v39 = vld [vmem:[%s6667_s22 + $0x5e8] sm:$0xff] }
 0x235   : > { %v2550_v23 = vpop.permute.xlu1 %2549 }
 0x236   : > { %v7227_v7 = vpop.permute.xlu0 %2264  ;;  %v2877_v48 = vmul.f32 %v2550_v23, %v2037_v29  ;;  %v2878_v54 = vmul.f32 %v2550_v23, %v2038_v44  ;;  %3584 = vmatprep.subr.bf16.mxu1 %v3044_v18  ;;  %2689 = vperm.xlu1 %4926, %v5407_v33   ;;  %v2887_v29 = vmul.f32 %v7219_v27, %v2047_v56  ;;  %v1923_v23 = vld [vmem:[%s6667_s22 + $0x210] sm:$0xff]  ;;  %v1924_v33 = vld [vmem:[%s6667_s22 + $0x218] sm:$0xff] }
 0x237   : > { %3585 = vmatpush1.bf16.msra.mxu1 %v3043_v1  ;;  %v2888_v44 = vmul.f32 %v7219_v27, %v2048_v55  ;;  %v2951_v27 = vld [vmem:[%s8599_s4 + $0x70] sm:$0xff]  ;;  %v1933_v55 = vld [vmem:[%s6667_s22 + $0x260] sm:$0xff] }
 0x238   : > { %v3107_v46 = vpack.c.bf16 %v2879_v20, %v2877_v48  ;;  %v3108_v25 = vpack.c.bf16 %v2880_v43, %v2878_v54  ;;  %v1922_v48 = vld [vmem:[%s6667_s22 + $0x208] sm:$0xff]  ;;  %v4710_v54 = vcombine.high %v2945_v24, %v2949_v28  ;;  %v4714_v12 = vcombine.high %v7276_v15, %v2951_v27 }
 0x239   : > { %v2240_v4 = vpop.permute.xlu1 %2239 }
 0x23a   : > { %v7235_v47 = vpop.permute.xlu0 %2274  ;;  %v2753_v34 = vmul.f32 %v2240_v4, %v1913_v16  ;;  %v2754_v41 = vmul.f32 %v2240_v4, %v1914_v10  ;;  %3850 = vmatprep.subr.bf16.mxu0 %v3108_v25  ;;  %v2764_v25 = vmul.f32 %v7227_v7, %v1924_v33  ;;  %v1927_v4 = vld [vmem:[%s6667_s22 + $0x230] sm:$0xff] }
 0x23b   : > { %3851 = vmatpush1.bf16.msra.mxu0 %v3107_v46  ;;  %v2763_v46 = vmul.f32 %v7227_v7, %v1923_v23 }
 0x23c   : > { %v3045_v51 = vpack.c.bf16 %v2755_v53, %v2753_v34  ;;  %v3046_v62 = vpack.c.bf16 %v2756_v52, %v2754_v41  ;;  %v1925_v34 = vld [vmem:[%s6667_s22 + $0x220] sm:$0xff]  ;;  %v1926_v41 = vld [vmem:[%s6667_s22 + $0x228] sm:$0xff] }
 0x23d   : > { %v2560_v45 = vpop.permute.xlu1 %2559 }
 0x23e   : > { %v7243_v50 = vpop.permute.xlu0 %2284  ;;  %v2881_v22 = vmul.f32 %v2560_v45, %v2041_v13  ;;  %v2882_v14 = vmul.f32 %v2560_v45, %v2042_v9  ;;  %3586 = vmatprep.subr.bf16.mxu1 %v3046_v62  ;;  %v2767_v62 = vmul.f32 %v7235_v47, %v1927_v4  ;;  %v2768_v45 = vmul.f32 %v7235_v47, %v1928_v49  ;;  %v7319_v47 = vld [vmem:[%s8599_s4 + $0x90] sm:$0xff] }
 0x23f   : > { %3587 = vmatpush1.bf16.msra.mxu1 %v3045_v51  ;;  %v4709_v51 = vcombine.low %v2945_v24, %v2949_v28 }
 0x240   : > { %v3109_v35 = vpack.c.bf16 %v2883_v38, %v2881_v22  ;;  %v3110_v0 = vpack.c.bf16 %v2884_v60, %v2882_v14  ;;  %v1931_v38 = vld [vmem:[%s6667_s22 + $0x250] sm:$0xff]  ;;  %v1932_v22 = vld [vmem:[%s6667_s22 + $0x258] sm:$0xff]  ;;  %v1929_v14 = vld [vmem:[%s6667_s22 + $0x240] sm:$0xff] }
 0x241   : > { %v2250_v6 = vpop.permute.xlu1 %2249 }
 0x242   : > { %v7251_v17 = vpop.permute.xlu0 %2294  ;;  %v2757_v21 = vmul.f32 %v2250_v6, %v1917_v11  ;;  %v2758_v19 = vmul.f32 %v2250_v6, %v1918_v57  ;;  %3852 = vmatprep.subr.bf16.mxu0 %v3110_v0  ;;  %v7324_v11 = vld [vmem:[%s8599_s4 + $0xb0] sm:$0xff]  ;;  %v4713_v0 = vcombine.low %v7276_v15, %v2951_v27  ;;  %v2771_v6 = vmul.f32 %v7243_v50, %v1931_v38 }
 0x243   : > { %3853 = vmatpush1.bf16.msra.mxu0 %v3109_v35  ;;  %v7367_v27 = vld [vmem:[%s8599_s4 + $0xf0] sm:$0xff] }
 0x244   : > { %v3047_v36 = vpack.c.bf16 %v2759_v61, %v2757_v21  ;;  %v3048_v30 = vpack.c.bf16 %v2760_v37, %v2758_v19  ;;  %v2772_v61 = vmul.f32 %v7243_v50, %v1932_v22  ;;  %v1935_v37 = vld [vmem:[%s6667_s22 + $0x270] sm:$0xff]  ;;  %v1936_v19 = vld [vmem:[%s6667_s22 + $0x278] sm:$0xff]  ;;  %v7340_v50 = vld [vmem:[%s8599_s4 + $0xc0] sm:$0xff] }
 0x245   : > { %v2570_v40 = vpop.permute.xlu1 %2569 }
 0x246   : > { %v7259_v2 = vpop.permute.xlu0 %2304  ;;  %v2885_v1 = vmul.f32 %v2570_v40, %v2045_v32  ;;  %v2886_v18 = vmul.f32 %v2570_v40, %v2046_v39  ;;  %3588 = vmatprep.subr.bf16.mxu1 %v3048_v30  ;;  %v1934_v32 = vld [vmem:[%s6667_s22 + $0x268] sm:$0xff]  ;;  %v4722_v39 = vcombine.high %v7319_v47, %v7324_v11  ;;  %v7345_v40 = vld [vmem:[%s8599_s4 + $0xe0] sm:$0xff] }
 0x247   : > { %3589 = vmatpush1.bf16.msra.mxu1 %v3047_v36 }
 0x248   : > { %v3111_v20 = vpack.c.bf16 %v2887_v29, %v2885_v1  ;;  %v3112_v43 = vpack.c.bf16 %v2888_v44, %v2886_v18  ;;  %v2775_v44 = vmul.f32 %v7251_v17, %v1935_v37  ;;  %v2776_v1 = vmul.f32 %v7251_v17, %v1936_v19  ;;  %v1939_v18 = vld [vmem:[%s6667_s22 + $0x290] sm:$0xff] }
 0x249   : > { %v2260_v16 = vpop.permute.xlu1 %2259  ;;  %v7362_v17 = vld [vmem:[%s8599_s4 + $0xd0] sm:$0xff]  ;;  %v2779_v4 = vmul.f32 %v7259_v2, %v1939_v18 }
 0x24a   : > { %v7281_v10 = vpop.permute.xlu0 %2584  ;;  %3854 = vmatprep.subr.bf16.mxu0 %v3112_v43  ;;  %3591 = vmatmul.mubr.bf16.vlgmr.msra.gmra.mrb[0].mxu1 %v4701_v3  ;;  %v2761_v53 = vmul.f32 %v2260_v16, %v1921_v42  ;;  %v2762_v52 = vmul.f32 %v2260_v16, %v1922_v48  ;;  %v7301_v3 = vld [vmem:[%s8599_s4 + $0xa0] sm:$0xff]  ;;  %v1938_v42 = vld [vmem:[%s6667_s22 + $0x288] sm:$0xff]  ;;  %v4726_v48 = vcombine.high %v7340_v50, %v7345_v40 }
 0x24b   : > { %3855 = vmatpush1.bf16.msra.mxu0 %v3111_v20  ;;  %3600 = vmatprep.mubr.bf16.mxu1 %v4710_v54  ;;  %v4718_v58 = vcombine.high %v7296_v63, %v7301_v3  ;;  %v4717_v29 = vcombine.low %v7296_v63, %v7301_v3  ;;  %v1940_v20 = vld [vmem:[%s6667_s22 + $0x298] sm:$0xff]  ;;  %v1937_v43 = vld [vmem:[%s6667_s22 + $0x280] sm:$0xff] }
 0x24c   : > { %v3049_v13 = vpack.c.bf16 %v2763_v46, %v2761_v53  ;;  %v3050_v5 = vpack.c.bf16 %v2764_v25, %v2762_v52  ;;  %v4721_v25 = vcombine.low %v7319_v47, %v7324_v11  ;;  %v2780_v53 = vmul.f32 %v7259_v2, %v1940_v20  ;;  %v2051_v52 = vld [vmem:[%s6667_s22 + $0x610] sm:$0xff]  ;;  %v7384_v2 = vld [vmem:[%s8599_s4 + $0x100] sm:$0xff] }
 0x24d   : > { %v2270_v7 = vpop.permute.xlu1 %2269  ;;  %v2891_v38 = vmul.f32 %v7281_v10, %v2051_v52 }
 0x24e   : > { %v7303_v9 = vpop.permute.xlu0 %2314  ;;  %3857 = vmatmul.mubr.bf16.vlgmr.msra.gmra.mrb[0].mxu0 %v4705_v8  ;;  %v2765_v60 = vmul.f32 %v2270_v7, %v1925_v34  ;;  %v2766_v26 = vmul.f32 %v2270_v7, %v1926_v41  ;;  %3691 = vmatprep.subr.bf16.mxu1 %v3050_v5  ;;  %v2052_v41 = vld [vmem:[%s6667_s22 + $0x618] sm:$0xff]  ;;  %v4730_v5 = vcombine.high %v7362_v17, %v7367_v27  ;;  %v7389_v7 = vld [vmem:[%s8599_s4 + $0x120] sm:$0xff] }
 0x24f   : > { %3692 = vmatpush1.bf16.msra.mxu1 %v3049_v13  ;;  %3866 = vmatprep.mubr.bf16.mxu0 %v4714_v12  ;;  %v2049_v12 = vld [vmem:[%s6667_s22 + $0x600] sm:$0xff]  ;;  %v2050_v13 = vld [vmem:[%s6667_s22 + $0x608] sm:$0xff] }
 0x250   : > { %v3051_v31 = vpack.c.bf16 %v2767_v62, %v2765_v60  ;;  %v3052_v8 = vpack.c.bf16 %v2768_v45, %v2766_v26  ;;  %v4725_v45 = vcombine.low %v7340_v50, %v7345_v40  ;;  %v2892_v60 = vmul.f32 %v7281_v10, %v2052_v41  ;;  %v1943_v26 = vld [vmem:[%s6667_s22 + $0x2b0] sm:$0xff] }
 0x251   : > { %v2280_v57 = vpop.permute.xlu1 %2279  ;;  %v7406_v10 = vld [vmem:[%s8599_s4 + $0x110] sm:$0xff]  ;;  %v2783_v37 = vmul.f32 %v7303_v9, %v1943_v26 }
 0x252   : > { %v7326_v35 = vpop.permute.xlu0 %2594  ;;  %3601 = vmatmul.mubr.bf16.gmra.mrb[4].mxu1 %v4709_v51  ;;  %v2769_v56 = vmul.f32 %v2280_v57, %v1929_v14  ;;  %v2770_v21 = vmul.f32 %v2280_v57, %v1930_v59  ;;  %3693 = vmatprep.subr.bf16.mxu1 %v3052_v8  ;;  %v1944_v59 = vld [vmem:[%s6667_s22 + $0x2b8] sm:$0xff]  ;;  %v4734_v8 = vcombine.high %v7384_v2, %v7389_v7  ;;  %v7411_v57 = vld [vmem:[%s8599_s4 + $0x130] sm:$0xff] }
 0x253   : > { %3694 = vmatpush1.bf16.msra.mxu1 %v3051_v31  ;;  %3610 = vmatprep.mubr.bf16.mxu1 %v4718_v58  ;;  %v1941_v58 = vld [vmem:[%s6667_s22 + $0x2a0] sm:$0xff]  ;;  %v1942_v31 = vld [vmem:[%s6667_s22 + $0x2a8] sm:$0xff] }
 0x254   : > { %v3053_v36 = vpack.c.bf16 %v2771_v6, %v2769_v56  ;;  %v3054_v30 = vpack.c.bf16 %v2772_v61, %v2770_v21  ;;  %v4729_v61 = vcombine.low %v7362_v17, %v7367_v27  ;;  %v2784_v56 = vmul.f32 %v7303_v9, %v1944_v59  ;;  %v2055_v21 = vld [vmem:[%s6667_s22 + $0x630] sm:$0xff]  ;;  %v7428_v9 = vld [vmem:[%s8599_s4 + $0x140] sm:$0xff] }
 0x255   : > { %v2290_v24 = vpop.permute.xlu1 %2289  ;;  %v2895_v18 = vmul.f32 %v7326_v35, %v2055_v21 }
 0x256   : > { %v7347_v28 = vpop.permute.xlu0 %2324  ;;  %3867 = vmatmul.mubr.bf16.gmra.mrb[4].mxu0 %v4713_v0  ;;  %v2773_v23 = vmul.f32 %v2290_v24, %v1933_v55  ;;  %v2774_v33 = vmul.f32 %v2290_v24, %v1934_v32  ;;  %3695 = vmatprep.subr.bf16.mxu1 %v3054_v30  ;;  %v2056_v32 = vld [vmem:[%s6667_s22 + $0x638] sm:$0xff]  ;;  %v4738_v30 = vcombine.high %v7406_v10, %v7411_v57  ;;  %v7433_v24 = vld [vmem:[%s8599_s4 + $0x160] sm:$0xff] }
 0x257   : > { %3696 = vmatpush1.bf16.msra.mxu1 %v3053_v36  ;;  %3876 = vmatprep.mubr.bf16.mxu0 %v4722_v39  ;;  %v2053_v39 = vld [vmem:[%s6667_s22 + $0x620] sm:$0xff]  ;;  %v2054_v36 = vld [vmem:[%s6667_s22 + $0x628] sm:$0xff] }
 0x258   : > { %v3055_v54 = vpack.c.bf16 %v2775_v44, %v2773_v23  ;;  %v3056_v15 = vpack.c.bf16 %v2776_v1, %v2774_v33  ;;  %v4733_v1 = vcombine.low %v7384_v2, %v7389_v7  ;;  %v2896_v23 = vmul.f32 %v7326_v35, %v2056_v32  ;;  %v1947_v33 = vld [vmem:[%s6667_s22 + $0x2d0] sm:$0xff] }
 0x259   : > { %v2300_v16 = vpop.permute.xlu1 %2299  ;;  %v7450_v35 = vld [vmem:[%s8599_s4 + $0x150] sm:$0xff]  ;;  %v2787_v52 = vmul.f32 %v7347_v28, %v1947_v33 }
 0x25a   : > { %v7369_v46 = vpop.permute.xlu0 %2604  ;;  %3611 = vmatmul.mubr.bf16.gmra.mrb[8].mxu1 %v4717_v29  ;;  %v2777_v49 = vmul.f32 %v2300_v16, %v1937_v43  ;;  %v2778_v34 = vmul.f32 %v2300_v16, %v1938_v42  ;;  %3697 = vmatprep.subr.bf16.mxu1 %v3056_v15  ;;  %v1948_v42 = vld [vmem:[%s6667_s22 + $0x2d8] sm:$0xff]  ;;  %v4742_v15 = vcombine.high %v7428_v9, %v7433_v24  ;;  %v7455_v16 = vld [vmem:[%s8599_s4 + $0x170] sm:$0xff] }
 0x25b   : > { %3698 = vmatpush1.bf16.msra.mxu1 %v3055_v54  ;;  %3620 = vmatprep.mubr.bf16.mxu1 %v4726_v48  ;;  %v1945_v48 = vld [vmem:[%s6667_s22 + $0x2c0] sm:$0xff]  ;;  %v1946_v54 = vld [vmem:[%s6667_s22 + $0x2c8] sm:$0xff] }
 0x25c   : > { %v3057_v63 = vpack.c.bf16 %v2779_v4, %v2777_v49  ;;  %v3058_v3 = vpack.c.bf16 %v2780_v53, %v2778_v34  ;;  %v4737_v53 = vcombine.low %v7406_v10, %v7411_v57  ;;  %v2788_v49 = vmul.f32 %v7347_v28, %v1948_v42  ;;  %v2059_v34 = vld [vmem:[%s6667_s22 + $0x650] sm:$0xff]  ;;  %v7472_v28 = vld [vmem:[%s8599_s4 + $0x180] sm:$0xff] }
 0x25d   : > { %v2580_v51 = vpop.permute.xlu1 %2579  ;;  %v2899_v26 = vmul.f32 %v7369_v46, %v2059_v34 }
 0x25e   : > { %v7391_v62 = vpop.permute.xlu0 %2334  ;;  %3877 = vmatmul.mubr.bf16.gmra.mrb[8].mxu0 %v4721_v25  ;;  %v2889_v22 = vmul.f32 %v2580_v51, %v2049_v12  ;;  %v2890_v14 = vmul.f32 %v2580_v51, %v2050_v13  ;;  %3699 = vmatprep.subr.bf16.mxu1 %v3058_v3  ;;  %v2060_v13 = vld [vmem:[%s6667_s22 + $0x658] sm:$0xff]  ;;  %v4746_v3 = vcombine.high %v7450_v35, %v7455_v16  ;;  %v7477_v51 = vld [vmem:[%s8599_s4 + $0x1a0] sm:$0xff] }
 0x25f   : > { %3700 = vmatpush1.bf16.msra.mxu1 %v3057_v63  ;;  %3886 = vmatprep.mubr.bf16.mxu0 %v4730_v5  ;;  %v2057_v5 = vld [vmem:[%s6667_s22 + $0x640] sm:$0xff]  ;;  %v2058_v63 = vld [vmem:[%s6667_s22 + $0x648] sm:$0xff] }
 0x260   : > { %v3113_v47 = vpack.c.bf16 %v2891_v38, %v2889_v22  ;;  %v3114_v11 = vpack.c.bf16 %v2892_v60, %v2890_v14  ;;  %v4741_v60 = vcombine.low %v7428_v9, %v7433_v24  ;;  %v2900_v22 = vmul.f32 %v7369_v46, %v2060_v13  ;;  %v1951_v14 = vld [vmem:[%s6667_s22 + $0x2f0] sm:$0xff] }
 0x261   : > { %v2310_v0 = vpop.permute.xlu1 %2309  ;;  %v7494_v46 = vld [vmem:[%s8599_s4 + $0x190] sm:$0xff]  ;;  %v2791_v21 = vmul.f32 %v7391_v62, %v1951_v14 }
 0x262   : > { %v7413_v6 = vpop.permute.xlu0 %2614  ;;  %3621 = vmatmul.mubr.bf16.gmra.mrb[12].mxu1 %v4725_v45  ;;  %v2781_v19 = vmul.f32 %v2310_v0, %v1941_v58  ;;  %v2782_v55 = vmul.f32 %v2310_v0, %v1942_v31  ;;  %3957 = vmatprep.subr.bf16.mxu0 %v3114_v11  ;;  %v1952_v31 = vld [vmem:[%s6667_s22 + $0x2f8] sm:$0xff]  ;;  %v4750_v11 = vcombine.high %v7472_v28, %v7477_v51  ;;  %v7499_v0 = vld [vmem:[%s8599_s4 + $0x1b0] sm:$0xff] }
 0x263   : > { %3958 = vmatpush1.bf16.msra.mxu0 %v3113_v47  ;;  %3630 = vmatprep.mubr.bf16.mxu1 %v4734_v8  ;;  %v1949_v8 = vld [vmem:[%s6667_s22 + $0x2e0] sm:$0xff]  ;;  %v1950_v47 = vld [vmem:[%s6667_s22 + $0x2e8] sm:$0xff] }
 0x264   : > { %v3059_v50 = vpack.c.bf16 %v2783_v37, %v2781_v19  ;;  %v3060_v40 = vpack.c.bf16 %v2784_v56, %v2782_v55  ;;  %v4745_v56 = vcombine.low %v7450_v35, %v7455_v16  ;;  %v2792_v19 = vmul.f32 %v7391_v62, %v1952_v31  ;;  %v2063_v55 = vld [vmem:[%s6667_s22 + $0x670] sm:$0xff]  ;;  %v7516_v62 = vld [vmem:[%s8599_s4 + $0x1c0] sm:$0xff] }
 0x265   : > { %v2590_v29 = vpop.permute.xlu1 %2589  ;;  %v2903_v33 = vmul.f32 %v7413_v6, %v2063_v55 }
 0x266   : > { %v7435_v44 = vpop.permute.xlu0 %2344  ;;  %3887 = vmatmul.mubr.bf16.gmra.mrb[12].mxu0 %v4729_v61  ;;  %v2893_v20 = vmul.f32 %v2590_v29, %v2053_v39  ;;  %v2894_v43 = vmul.f32 %v2590_v29, %v2054_v36  ;;  %3701 = vmatprep.subr.bf16.mxu1 %v3060_v40  ;;  %v2064_v36 = vld [vmem:[%s6667_s22 + $0x678] sm:$0xff]  ;;  %v4754_v40 = vcombine.high %v7494_v46, %v7499_v0  ;;  %v2997_v29 = vld [vmem:[%s8599_s4 + $0x1e0] sm:$0xff] }
 0x267   : > { %3702 = vmatpush1.bf16.msra.mxu1 %v3059_v50  ;;  %3896 = vmatprep.mubr.bf16.mxu0 %v4738_v30  ;;  %v2061_v30 = vld [vmem:[%s6667_s22 + $0x660] sm:$0xff]  ;;  %v2062_v50 = vld [vmem:[%s6667_s22 + $0x668] sm:$0xff] }
 0x268   : > { %v3115_v17 = vpack.c.bf16 %v2895_v18, %v2893_v20  ;;  %v3116_v27 = vpack.c.bf16 %v2896_v23, %v2894_v43  ;;  %v4749_v23 = vcombine.low %v7472_v28, %v7477_v51  ;;  %v2904_v20 = vmul.f32 %v7413_v6, %v2064_v36  ;;  %v1955_v43 = vld [vmem:[%s6667_s22 + $0x310] sm:$0xff] }
 0x269   : > { %v2320_v25 = vpop.permute.xlu1 %2319  ;;  %v7535_v6 = vld [vmem:[%s8599_s4 + $0x1d0] sm:$0xff]  ;;  %v2795_v34 = vmul.f32 %v7435_v44, %v1955_v43 }
 0x26a   : > { %v7457_v4 = vpop.permute.xlu0 %2624  ;;  %3631 = vmatmul.mubr.bf16.gmra.mrb[16].mxu1 %v4733_v1  ;;  %v2785_v41 = vmul.f32 %v2320_v25, %v1945_v48  ;;  %v2786_v12 = vmul.f32 %v2320_v25, %v1946_v54  ;;  %3959 = vmatprep.subr.bf16.mxu0 %v3116_v27  ;;  %v1956_v54 = vld [vmem:[%s6667_s22 + $0x318] sm:$0xff]  ;;  %v4758_v27 = vcombine.high %v7516_v62, %v2997_v29  ;;  %v2999_v25 = vld [vmem:[%s8599_s4 + $0x1f0] sm:$0xff] }
 0x26b   : > { %3960 = vmatpush1.bf16.msra.mxu0 %v3115_v17  ;;  %3640 = vmatprep.mubr.bf16.mxu1 %v4742_v15  ;;  %v1953_v15 = vld [vmem:[%s6667_s22 + $0x300] sm:$0xff]  ;;  %v1954_v17 = vld [vmem:[%s6667_s22 + $0x308] sm:$0xff] }
 0x26c   : > { %v3061_v2 = vpack.c.bf16 %v2787_v52, %v2785_v41  ;;  %v3062_v7 = vpack.c.bf16 %v2788_v49, %v2786_v12  ;;  %v4753_v49 = vcombine.low %v7494_v46, %v7499_v0  ;;  %v2796_v41 = vmul.f32 %v7435_v44, %v1956_v54  ;;  %v2067_v12 = vld [vmem:[%s6667_s22 + $0x690] sm:$0xff]  ;;  %v7554_v44 = vld [vmem:[%s8599_s4 + $0x200] sm:$0xff] }
 0x26d   : > { %v2600_v45 = vpop.permute.xlu1 %2599  ;;  %v2907_v14 = vmul.f32 %v7457_v4, %v2067_v12 }
 0x26e   : > { %v7479_v38 = vpop.permute.xlu0 %2354  ;;  %3897 = vmatmul.mubr.bf16.gmra.mrb[16].mxu0 %v4737_v53  ;;  %v2897_v59 = vmul.f32 %v2600_v45, %v2057_v5  ;;  %v2898_v58 = vmul.f32 %v2600_v45, %v2058_v63  ;;  %3703 = vmatprep.subr.bf16.mxu1 %v3062_v7  ;;  %v2068_v63 = vld [vmem:[%s6667_s22 + $0x698] sm:$0xff]  ;;  %v4762_v7 = vcombine.high %v7535_v6, %v2999_v25  ;;  %v3005_v45 = vld [vmem:[%s8599_s4 + $0x220] sm:$0xff] }
 0x26f   : > { %3704 = vmatpush1.bf16.msra.mxu1 %v3061_v2  ;;  %3906 = vmatprep.mubr.bf16.mxu0 %v4746_v3  ;;  %v2065_v3 = vld [vmem:[%s6667_s22 + $0x680] sm:$0xff]  ;;  %v2066_v2 = vld [vmem:[%s6667_s22 + $0x688] sm:$0xff] }
 0x270   : > { %v3117_v10 = vpack.c.bf16 %v2899_v26, %v2897_v59  ;;  %v3118_v57 = vpack.c.bf16 %v2900_v22, %v2898_v58  ;;  %v4757_v22 = vcombine.low %v7516_v62, %v2997_v29  ;;  %v2908_v59 = vmul.f32 %v7457_v4, %v2068_v63  ;;  %v1959_v58 = vld [vmem:[%s6667_s22 + $0x330] sm:$0xff] }
 0x271   : > { %v2330_v61 = vpop.permute.xlu1 %2329  ;;  %v3003_v4 = vld [vmem:[%s8599_s4 + $0x210] sm:$0xff] }
 0x272   : > { %v7501_v37 = vpop.permute.xlu0 %2634  ;;  %3641 = vmatmul.mubr.bf16.gmra.mrb[20].mxu1 %v4741_v60  ;;  %v2789_v32 = vmul.f32 %v2330_v61, %v1949_v8  ;;  %v2790_v39 = vmul.f32 %v2330_v61, %v1950_v47  ;;  %3961 = vmatprep.subr.bf16.mxu0 %v3118_v57  ;;  %v1960_v47 = vld [vmem:[%s6667_s22 + $0x338] sm:$0xff]  ;;  %v4766_v57 = vcombine.high %v7554_v44, %v3005_v45  ;;  %v3007_v61 = vld [vmem:[%s8599_s4 + $0x230] sm:$0xff] }
 0x273   : > { %3962 = vmatpush1.bf16.msra.mxu0 %v3117_v10  ;;  %3650 = vmatprep.mubr.bf16.mxu1 %v4750_v11  ;;  %v1957_v11 = vld [vmem:[%s6667_s22 + $0x320] sm:$0xff]  ;;  %v1958_v10 = vld [vmem:[%s6667_s22 + $0x328] sm:$0xff]  ;;  %v2800_v55 = vmul.f32 %v7479_v38, %v1960_v47  ;;  %v1968_v47 = vld [vmem:[%s6667_s22 + $0x378] sm:$0xff] }
 0x274   : > { %v3063_v9 = vpack.c.bf16 %v2791_v21, %v2789_v32  ;;  %v3064_v24 = vpack.c.bf16 %v2792_v19, %v2790_v39  ;;  %v4761_v21 = vcombine.low %v7535_v6, %v2999_v25  ;;  %v2799_v19 = vmul.f32 %v7479_v38, %v1959_v58  ;;  %v2071_v32 = vld [vmem:[%s6667_s22 + $0x6b0] sm:$0xff]  ;;  %v3009_v38 = vld [vmem:[%s8599_s4 + $0x240] sm:$0xff] }
 0x275   : > { %v2610_v1 = vpop.permute.xlu1 %2609  ;;  %v3015_v25 = vld [vmem:[%s8599_s4 + $0x270] sm:$0xff] }
 0x276   : > { %v7521_v18 = vpop.permute.xlu0 %2364  ;;  %3907 = vmatmul.mubr.bf16.gmra.mrb[20].mxu0 %v4745_v56  ;;  %v2901_v42 = vmul.f32 %v2610_v1, %v2061_v30  ;;  %v2902_v48 = vmul.f32 %v2610_v1, %v2062_v50  ;;  %3705 = vmatprep.subr.bf16.mxu1 %v3064_v24  ;;  %v2072_v30 = vld [vmem:[%s6667_s22 + $0x6b8] sm:$0xff]  ;;  %v4770_v24 = vcombine.high %v3003_v4, %v3007_v61  ;;  %v3013_v1 = vld [vmem:[%s8599_s4 + $0x260] sm:$0xff]  ;;  %v1967_v58 = vld [vmem:[%s6667_s22 + $0x370] sm:$0xff] }
 0x277   : > { %3706 = vmatpush1.bf16.msra.mxu1 %v3063_v9  ;;  %3916 = vmatprep.mubr.bf16.mxu0 %v4754_v40  ;;  %v2069_v40 = vld [vmem:[%s6667_s22 + $0x6a0] sm:$0xff]  ;;  %v2070_v9 = vld [vmem:[%s6667_s22 + $0x6a8] sm:$0xff]  ;;  %v2912_v43 = vmul.f32 %v7501_v37, %v2072_v30  ;;  %v2080_v30 = vld [vmem:[%s6667_s22 + $0x6f8] sm:$0xff] }
 0x278   : > { %v3119_v35 = vpack.c.bf16 %v2903_v33, %v2901_v42  ;;  %v3120_v16 = vpack.c.bf16 %v2904_v20, %v2902_v48  ;;  %v4765_v33 = vcombine.low %v7554_v44, %v3005_v45  ;;  %v2911_v20 = vmul.f32 %v7501_v37, %v2071_v32  ;;  %v1963_v42 = vld [vmem:[%s6667_s22 + $0x350] sm:$0xff]  ;;  %v7619_v45 = vld [vmem:[%s8599_s4 + $0x28] sm:$0xff] }
 0x279   : > { %v2340_v53 = vpop.permute.xlu1 %2339  ;;  %v3011_v37 = vld [vmem:[%s8599_s4 + $0x250] sm:$0xff] }
 0x27a   : > { %v7540_v52 = vpop.permute.xlu0 %2644  ;;  %3651 = vmatmul.mubr.bf16.gmra.mrb[24].mxu1 %v4749_v23  ;;  %v2793_v13 = vmul.f32 %v2340_v53, %v1953_v15  ;;  %v2794_v5 = vmul.f32 %v2340_v53, %v1954_v17  ;;  %3963 = vmatprep.subr.bf16.mxu0 %v3120_v16  ;;  %v1964_v15 = vld [vmem:[%s6667_s22 + $0x358] sm:$0xff]  ;;  %v1961_v17 = vld [vmem:[%s6667_s22 + $0x340] sm:$0xff]  ;;  %v2079_v32 = vld [vmem:[%s6667_s22 + $0x6f0] sm:$0xff] }
 0x27b   : > { %3964 = vmatpush1.bf16.msra.mxu0 %v3119_v35  ;;  %3660 = vmatprep.mubr.bf16.mxu1 %v4758_v27  ;;  %v1962_v27 = vld [vmem:[%s6667_s22 + $0x348] sm:$0xff]  ;;  %v4774_v35 = vcombine.high %v3009_v38, %v3013_v1  ;;  %v2804_v12 = vmul.f32 %v7521_v18, %v1964_v15 }
 0x27c   : > { %v3065_v28 = vpack.c.bf16 %v2795_v34, %v2793_v13  ;;  %v3066_v51 = vpack.c.bf16 %v2796_v41, %v2794_v5  ;;  %v4769_v34 = vcombine.low %v3003_v4, %v3007_v61  ;;  %v2803_v41 = vmul.f32 %v7521_v18, %v1963_v42  ;;  %v2075_v13 = vld [vmem:[%s6667_s22 + $0x6d0] sm:$0xff]  ;;  %v7614_v18 = vld [vmem:[%s8599_s4 + $0x8] sm:$0xff]  ;;  %v7637_v61 = vld [vmem:[%s8599_s4 + $0x38] sm:$0xff] }
 0x27d   : > { %v2620_v60 = vpop.permute.xlu1 %2619  ;;  %v1972_v42 = vld [vmem:[%s6667_s22 + $0x398] sm:$0xff] }
 0x27e   : > { %v7559_v26 = vpop.permute.xlu0 %2374  ;;  %3917 = vmatmul.mubr.bf16.gmra.mrb[24].mxu0 %v4753_v49  ;;  %v2905_v31 = vmul.f32 %v2620_v60, %v2065_v3  ;;  %v2906_v8 = vmul.f32 %v2620_v60, %v2066_v2  ;;  %3707 = vmatprep.subr.bf16.mxu1 %v3066_v51  ;;  %v2076_v3 = vld [vmem:[%s6667_s22 + $0x6d8] sm:$0xff]  ;;  %v2073_v2 = vld [vmem:[%s6667_s22 + $0x6c0] sm:$0xff] }
 0x27f   : > { %3708 = vmatpush1.bf16.msra.mxu1 %v3065_v28  ;;  %3926 = vmatprep.mubr.bf16.mxu0 %v4762_v7  ;;  %v2074_v7 = vld [vmem:[%s6667_s22 + $0x6c8] sm:$0xff]  ;;  %v4778_v28 = vcombine.high %v3011_v37, %v3015_v25 }
 0x280   : > { %v3121_v46 = vpack.c.bf16 %v2907_v14, %v2905_v31  ;;  %v3122_v0 = vpack.c.bf16 %v2908_v59, %v2906_v8  ;;  %v2915_v14 = vmul.f32 %v7540_v52, %v2075_v13  ;;  %v2916_v59 = vmul.f32 %v7540_v52, %v2076_v3  ;;  %v7632_v52 = vld [vmem:[%s8599_s4 + $0x18] sm:$0xff] }
 0x281   : > { %v2350_v56 = vpop.permute.xlu1 %2349 }
 0x282   : > { %3661 = vmatmul.mubr.bf16.gmra.mrb[28].mxu1 %v4757_v22  ;;  %v2797_v39 = vmul.f32 %v2350_v56, %v1957_v11  ;;  %v2798_v36 = vmul.f32 %v2350_v56, %v1958_v10  ;;  %3965 = vmatprep.subr.bf16.mxu0 %v3122_v0  ;;  %v7580_v50 = vpop.permute.xlu0 %2654  ;;  %v4773_v22 = vcombine.low %v3009_v38, %v3013_v1  ;;  %v1965_v10 = vld [vmem:[%s6667_s22 + $0x360] sm:$0xff] }
 0x283   : > { %3966 = vmatpush1.bf16.msra.mxu0 %v3121_v46  ;;  %3670 = vmatprep.mubr.bf16.mxu1 %v4766_v57  ;;  %v1966_v57 = vld [vmem:[%s6667_s22 + $0x368] sm:$0xff]  ;;  %v4704_v46 = vcombine.high %v7614_v18, %v7619_v45  ;;  %v2919_v1 = vmul.f32 %v7580_v50, %v2079_v32 }
 0x284   : > { %v3067_v62 = vpack.c.bf16 %v2799_v19, %v2797_v39  ;;  %v3068_v29 = vpack.c.bf16 %v2800_v55, %v2798_v36  ;;  %v2807_v19 = vmul.f32 %v7559_v26, %v1967_v58  ;;  %v2808_v55 = vmul.f32 %v7559_v26, %v1968_v47 }
 0x285   : > { %v2630_v23 = vpop.permute.xlu1 %2629 }
 0x286   : > { %3927 = vmatmul.mubr.bf16.gmra.mrb[28].mxu0 %v4761_v21  ;;  %v2909_v48 = vmul.f32 %v2630_v23, %v2069_v40  ;;  %v2910_v54 = vmul.f32 %v2630_v23, %v2070_v9  ;;  %3709 = vmatprep.subr.bf16.mxu1 %v3068_v29  ;;  %v7603_v53 = vpop.permute.xlu0 %2384  ;;  %v4777_v21 = vcombine.low %v3011_v37, %v3015_v25  ;;  %v2077_v40 = vld [vmem:[%s6667_s22 + $0x6e0] sm:$0xff]  ;;  %v2078_v9 = vld [vmem:[%s6667_s22 + $0x6e8] sm:$0xff]  ;;  %v2084_v25 = vld [vmem:[%s6667_s22 + $0x718] sm:$0xff] }
 0x287   : > { %3710 = vmatpush1.bf16.msra.mxu1 %v3067_v62  ;;  %3936 = vmatprep.mubr.bf16.mxu0 %v4770_v24  ;;  %v4708_v24 = vcombine.high %v7632_v52, %v7637_v61  ;;  %v2920_v23 = vmul.f32 %v7580_v50, %v2080_v30  ;;  %v2812_v50 = vmul.f32 %v7603_v53, %v1972_v42  ;;  %v2090_v42 = vld [vmem:[%s6667_s22 + $0x748] sm:$0xff] }
 0x288   : > { %v3123_v16 = vpack.c.bf16 %v2911_v20, %v2909_v48  ;;  %v3124_v6 = vpack.c.bf16 %v2912_v43, %v2910_v54  ;;  %v1969_v48 = vld [vmem:[%s6667_s22 + $0x380] sm:$0xff]  ;;  %v1970_v54 = vld [vmem:[%s6667_s22 + $0x388] sm:$0xff] }
 0x289   : > { %v2360_v49 = vpop.permute.xlu1 %2359 }
 0x28a   : > { %3671 = vmatmul.mubr.bf16.gmra.mrb[32].mxu1 %v4765_v33  ;;  %v2801_v5 = vmul.f32 %v2360_v49, %v1961_v17  ;;  %v2802_v63 = vmul.f32 %v2360_v49, %v1962_v27  ;;  %3967 = vmatprep.subr.bf16.mxu0 %v3124_v6  ;;  %v2665_v11 = vpop.permute.xlu0 %2664  ;;  %v1971_v33 = vld [vmem:[%s6667_s22 + $0x390] sm:$0xff] }
 0x28b   : > { %3968 = vmatpush1.bf16.msra.mxu0 %v3123_v16  ;;  %3680 = vmatprep.mubr.bf16.mxu1 %v4774_v35  ;;  %v2811_v35 = vmul.f32 %v7603_v53, %v1971_v33  ;;  %v2083_v16 = vld [vmem:[%s6667_s22 + $0x710] sm:$0xff]  ;;  %v2924_v3 = vmul.f32 %v2665_v11, %v2084_v25  ;;  %v1981_v25 = vld [vmem:[%s6667_s22 + $0x3e0] sm:$0xff] }
 0x28c   : > { %v3069_v51 = vpack.c.bf16 %v2803_v41, %v2801_v5  ;;  %v3070_v44 = vpack.c.bf16 %v2804_v12, %v2802_v63  ;;  %v2082_v41 = vld [vmem:[%s6667_s22 + $0x708] sm:$0xff]  ;;  %v2923_v63 = vmul.f32 %v2665_v11, %v2083_v16 }
 0x28d   : > { %v2640_v60 = vpop.permute.xlu1 %2639 }
 0x28e   : > { %3937 = vmatmul.mubr.bf16.gmra.mrb[32].mxu0 %v4769_v34  ;;  %v2913_v31 = vmul.f32 %v2640_v60, %v2073_v2  ;;  %v2914_v8 = vmul.f32 %v2640_v60, %v2074_v7  ;;  %3711 = vmatprep.subr.bf16.mxu1 %v3070_v44  ;;  %v2395_v26 = vpop.permute.xlu0 %2394  ;;  %v2081_v34 = vld [vmem:[%s6667_s22 + $0x700] sm:$0xff]  ;;  %v1975_v2 = vld [vmem:[%s6667_s22 + $0x3b0] sm:$0xff]  ;;  %v1974_v44 = vld [vmem:[%s6667_s22 + $0x3a8] sm:$0xff] }
 0x28f   : > { %3712 = vmatpush1.bf16.msra.mxu1 %v3069_v51  ;;  %3946 = vmatprep.mubr.bf16.mxu0 %v4778_v28  ;;  %v1976_v28 = vld [vmem:[%s6667_s22 + $0x3b8] sm:$0xff]  ;;  %v1973_v51 = vld [vmem:[%s6667_s22 + $0x3a0] sm:$0xff]  ;;  %v2815_v58 = vmul.f32 %v2395_v26, %v1975_v2 }
 0x290   : > { %v3125_v0 = vpack.c.bf16 %v2915_v14, %v2913_v31  ;;  %v3126_v4 = vpack.c.bf16 %v2916_v59, %v2914_v8  ;;  %v2816_v31 = vmul.f32 %v2395_v26, %v1976_v28  ;;  %v2087_v8 = vld [vmem:[%s6667_s22 + $0x730] sm:$0xff]  ;;  %v2093_v28 = vld [vmem:[%s6667_s22 + $0x760] sm:$0xff] }
 0x291   : > { %v2370_v56 = vpop.permute.xlu1 %2369 }
 0x292   : > { %3681 = vmatmul.mubr.bf16.gmra.mrb[36].mxu1 %v4773_v22  ;;  %v2805_v39 = vmul.f32 %v2370_v56, %v1965_v10  ;;  %v2806_v36 = vmul.f32 %v2370_v56, %v1966_v57  ;;  %3969 = vmatprep.subr.bf16.mxu0 %v3126_v4  ;;  %v2675_v49 = vpop.permute.xlu0 %2674  ;;  %v2088_v10 = vld [vmem:[%s6667_s22 + $0x738] sm:$0xff]  ;;  %v2085_v57 = vld [vmem:[%s6667_s22 + $0x720] sm:$0xff] }
 0x293   : > { %3970 = vmatpush1.bf16.msra.mxu0 %v3125_v0  ;;  %3723 = vmatprep.mubr.bf16.mxu1 %v4704_v46  ;;  %v2086_v46 = vld [vmem:[%s6667_s22 + $0x728] sm:$0xff] }
 0x294   : > { %v3071_v62 = vpack.c.bf16 %v2807_v19, %v2805_v39  ;;  %v3072_v29 = vpack.c.bf16 %v2808_v55, %v2806_v36  ;;  %v2928_v19 = vmul.f32 %v2675_v49, %v2088_v10  ;;  %v1979_v55 = vld [vmem:[%s6667_s22 + $0x3d0] sm:$0xff]  ;;  %v1980_v36 = vld [vmem:[%s6667_s22 + $0x3d8] sm:$0xff] }
 0x295   : > { %v2650_v38 = vpop.permute.xlu1 %2649 }
 0x296   : > { %3947 = vmatmul.mubr.bf16.gmra.mrb[36].mxu0 %v4777_v21  ;;  %v2917_v20 = vmul.f32 %v2650_v38, %v2077_v40  ;;  %v2918_v43 = vmul.f32 %v2650_v38, %v2078_v9  ;;  %3713 = vmatprep.subr.bf16.mxu1 %v3072_v29  ;;  %v2405_v14 = vpop.permute.xlu0 %2404  ;;  %v2927_v21 = vmul.f32 %v2675_v49, %v2087_v8  ;;  %v1977_v40 = vld [vmem:[%s6667_s22 + $0x3c0] sm:$0xff]  ;;  %v1978_v9 = vld [vmem:[%s6667_s22 + $0x3c8] sm:$0xff] }
 0x297   : > { %3714 = vmatpush1.bf16.msra.mxu1 %v3071_v62  ;;  %4781 = vmatprep.mubr.msk.bf16.mxu0 %vm3527_vm1, %v4708_v24  ;;  %v2819_v26 = vmul.f32 %v2405_v14, %v1979_v55  ;;  %v2820_v38 = vmul.f32 %v2405_v14, %v1980_v36  ;;  %v1982_v49 = vld [vmem:[%s6667_s22 + $0x3e8] sm:$0xff] }
 0x298   : > { %v3127_v15 = vpack.c.bf16 %v2919_v1, %v2917_v20  ;;  %v3128_v17 = vpack.c.bf16 %v2920_v23, %v2918_v43  ;;  %v2091_v1 = vld [vmem:[%s6667_s22 + $0x750] sm:$0xff]  ;;  %v2092_v20 = vld [vmem:[%s6667_s22 + $0x758] sm:$0xff]  ;;  %v2089_v43 = vld [vmem:[%s6667_s22 + $0x740] sm:$0xff] }
 0x299   : > { %v2380_v27 = vpop.permute.xlu1 %2379  ;;  %v2950_v14 = vld [vmem:[%s8599_s4 + $0x68] sm:$0xff] }
 0x29a   : > { %v2809_v6 = vmul.f32 %v2380_v27, %v1969_v48  ;;  %v2810_v37 = vmul.f32 %v2380_v27, %v1970_v54  ;;  %3971 = vmatprep.subr.bf16.mxu0 %v3128_v17  ;;  %v2685_v30 = vpop.permute.xlu0 %2684  ;;  %v2962_v36 = vld [vmem:[%s8599_s4 + $0xc8] sm:$0xff] }
 0x29b   : > { %3972 = vmatpush1.bf16.msra.mxu0 %v3127_v15  ;;  %v2931_v27 = vmul.f32 %v2685_v30, %v2091_v1  ;;  %v2974_v1 = vld [vmem:[%s8599_s4 + $0x128] sm:$0xff] }
 0x29c   : > { %v3073_v12 = vpack.c.bf16 %v2811_v35, %v2809_v6  ;;  %v3074_v13 = vpack.c.bf16 %v2812_v50, %v2810_v37  ;;  %v2932_v35 = vmul.f32 %v2685_v30, %v2092_v20  ;;  %v1983_v50 = vld [vmem:[%s6667_s22 + $0x3f0] sm:$0xff]  ;;  %v1984_v37 = vld [vmem:[%s6667_s22 + $0x3f8] sm:$0xff]  ;;  %v2966_v30 = vld [vmem:[%s8599_s4 + $0xe8] sm:$0xff] }
 0x29d   : > { %v2660_v5 = vpop.permute.xlu1 %2659  ;;  %v2972_v20 = vld [vmem:[%s8599_s4 + $0x118] sm:$0xff] }
 0x29e   : > { %v2921_v53 = vmul.f32 %v2660_v5, %v2081_v34  ;;  %v2922_v7 = vmul.f32 %v2660_v5, %v2082_v41  ;;  %3715 = vmatprep.subr.bf16.mxu1 %v3074_v13  ;;  %v2415_v15 = vpop.permute.xlu0 %2414 }
 0x29f   : > { %3716 = vmatpush1.bf16.msra.mxu1 %v3073_v12  ;;  %v2823_v13 = vmul.f32 %v2415_v15, %v1983_v50  ;;  %v2824_v5 = vmul.f32 %v2415_v15, %v1984_v37  ;;  %v2982_v15 = vld [vmem:[%s8599_s4 + $0x168] sm:$0xff]  ;;  %v2984_v50 = vld [vmem:[%s8599_s4 + $0x178] sm:$0xff] }
 0x2a0   : > { %v3129_v60 = vpack.c.bf16 %v2923_v63, %v2921_v53  ;;  %v3130_v22 = vpack.c.bf16 %v2924_v3, %v2922_v7  ;;  %v2095_v63 = vld [vmem:[%s6667_s22 + $0x770] sm:$0xff]  ;;  %v2096_v53 = vld [vmem:[%s6667_s22 + $0x778] sm:$0xff]  ;;  %v2986_v37 = vld [vmem:[%s8599_s4 + $0x188] sm:$0xff] }
 0x2a1   : > { %v2390_v59 = vpop.permute.xlu1 %2389 }
 0x2a2   : > { %v2813_v47 = vmul.f32 %v2390_v59, %v1973_v51  ;;  %v2814_v11 = vmul.f32 %v2390_v59, %v1974_v44  ;;  %3973 = vmatprep.subr.bf16.mxu0 %v3130_v22  ;;  %v2695_v7 = vpop.permute.xlu0 %2694  ;;  %v2094_v51 = vld [vmem:[%s6667_s22 + $0x768] sm:$0xff] }
 0x2a3   : > { %3974 = vmatpush1.bf16.msra.mxu0 %v3129_v60  ;;  %v2946_v22 = vld [vmem:[%s8599_s4 + $0x48] sm:$0xff]  ;;  %v2936_v8 = vmul.f32 %v2695_v7, %v2096_v53 }
 0x2a4   : > { %v3075_v0 = vpack.c.bf16 %v2815_v58, %v2813_v47  ;;  %v3076_v4 = vpack.c.bf16 %v2816_v31, %v2814_v11  ;;  %v4703_v58 = vcombine.low %v7614_v18, %v7619_v45  ;;  %v2935_v31 = vmul.f32 %v2695_v7, %v2095_v63  ;;  %v2994_v63 = vld [vmem:[%s8599_s4 + $0x1c8] sm:$0xff]  ;;  %v2996_v7 = vld [vmem:[%s8599_s4 + $0x1d8] sm:$0xff] }
 0x2a5   : > { %v2670_v56 = vpop.permute.xlu1 %2669  ;;  %v4712_v10 = vcombine.high %v2946_v22, %v2950_v14  ;;  %v4707_v18 = vcombine.low %v7632_v52, %v7637_v61  ;;  %v2956_v52 = vld [vmem:[%s8599_s4 + $0x98] sm:$0xff] }
 0x2a6   : > { %v2925_v32 = vmul.f32 %v2670_v56, %v2085_v57  ;;  %v2926_v39 = vmul.f32 %v2670_v56, %v2086_v46  ;;  %3717 = vmatprep.subr.bf16.mxu1 %v3076_v4  ;;  %v2952_v4 = vld [vmem:[%s8599_s4 + $0x78] sm:$0xff]  ;;  %v2954_v56 = vld [vmem:[%s8599_s4 + $0x88] sm:$0xff] }
 0x2a7   : > { %3718 = vmatpush1.bf16.msra.mxu1 %v3075_v0  ;;  %v2948_v0 = vld [vmem:[%s8599_s4 + $0x58] sm:$0xff] }
 0x2a8   : > { %v3131_v24 = vpack.c.bf16 %v2927_v21, %v2925_v32  ;;  %v3132_v62 = vpack.c.bf16 %v2928_v19, %v2926_v39  ;;  %v4716_v45 = vcombine.high %v2948_v0, %v2952_v4  ;;  %v2958_v21 = vld [vmem:[%s8599_s4 + $0xa8] sm:$0xff]  ;;  %v4711_v19 = vcombine.low %v2946_v22, %v2950_v14  ;;  %v2960_v61 = vld [vmem:[%s8599_s4 + $0xb8] sm:$0xff] }
 0x2a9   : > { %v2400_v29 = vpop.permute.xlu1 %2399  ;;  %v4720_v55 = vcombine.high %v2954_v56, %v2958_v21  ;;  %v4715_v32 = vcombine.low %v2948_v0, %v2952_v4  ;;  %v4724_v39 = vcombine.high %v2956_v52, %v2960_v61  ;;  %v3006_v22 = vld [vmem:[%s8599_s4 + $0x228] sm:$0xff]  ;;  %v3012_v0 = vld [vmem:[%s8599_s4 + $0x258] sm:$0xff] }
 0x2aa   : > { %v2817_v23 = vmul.f32 %v2400_v29, %v1977_v40  ;;  %v2818_v33 = vmul.f32 %v2400_v29, %v1978_v9  ;;  %3975 = vmatprep.subr.bf16.mxu0 %v3132_v62  ;;  %v4719_v40 = vcombine.low %v2954_v56, %v2958_v21  ;;  %v4728_v9 = vcombine.high %v2962_v36, %v2966_v30  ;;  %v2968_v62 = vld [vmem:[%s8599_s4 + $0xf8] sm:$0xff] }
 0x2ab   : > { %3976 = vmatpush1.bf16.msra.mxu0 %v3131_v24  ;;  %v2964_v24 = vld [vmem:[%s8599_s4 + $0xd8] sm:$0xff]  ;;  %v4723_v29 = vcombine.low %v2956_v52, %v2960_v61 }
 0x2ac   : > { %v3077_v48 = vpack.c.bf16 %v2819_v26, %v2817_v23  ;;  %v3078_v54 = vpack.c.bf16 %v2820_v38, %v2818_v33  ;;  %v4732_v26 = vcombine.high %v2964_v24, %v2968_v62  ;;  %v2970_v38 = vld [vmem:[%s8599_s4 + $0x108] sm:$0xff]  ;;  %v4727_v23 = vcombine.low %v2962_v36, %v2966_v30  ;;  %v3016_v4 = vld [vmem:[%s8599_s4 + $0x278] sm:$0xff] }
 0x2ad   : > { %v2680_v17 = vpop.permute.xlu1 %2679  ;;  %v4736_v33 = vcombine.high %v2970_v38, %v2974_v1  ;;  %v4779_v21 = vcombine.low %v3012_v0, %v3016_v4 }
 0x2ae   : > { %v2929_v16 = vmul.f32 %v2680_v17, %v2089_v43  ;;  %v2930_v6 = vmul.f32 %v2680_v17, %v2090_v42  ;;  %3719 = vmatprep.subr.bf16.mxu1 %v3078_v54  ;;  %v2976_v43 = vld [vmem:[%s8599_s4 + $0x138] sm:$0xff]  ;;  %v4731_v42 = vcombine.low %v2964_v24, %v2968_v62  ;;  %v2978_v54 = vld [vmem:[%s8599_s4 + $0x148] sm:$0xff]  ;;  %v4735_v17 = vcombine.low %v2970_v38, %v2974_v1 }
 0x2af   : > { %3720 = vmatpush1.bf16.msra.mxu1 %v3077_v48  ;;  %v4740_v48 = vcombine.high %v2972_v20, %v2976_v43 }
 0x2b0   : > { %v3133_v34 = vpack.c.bf16 %v2931_v27, %v2929_v16  ;;  %v3134_v41 = vpack.c.bf16 %v2932_v35, %v2930_v6  ;;  %v4744_v27 = vcombine.high %v2978_v54, %v2982_v15  ;;  %v2980_v35 = vld [vmem:[%s8599_s4 + $0x158] sm:$0xff]  ;;  %v4739_v16 = vcombine.low %v2972_v20, %v2976_v43 }
 0x2b1   : > { %v2410_v12 = vpop.permute.xlu1 %2409  ;;  %v4748_v6 = vcombine.high %v2980_v35, %v2984_v50 }
 0x2b2   : > { %v2821_v3 = vmul.f32 %v2410_v12, %v1981_v25  ;;  %v2822_v2 = vmul.f32 %v2410_v12, %v1982_v49  ;;  %3977 = vmatprep.subr.bf16.mxu0 %v3134_v41  ;;  %v2990_v25 = vld [vmem:[%s8599_s4 + $0x1a8] sm:$0xff]  ;;  %v4743_v49 = vcombine.low %v2978_v54, %v2982_v15  ;;  %v2988_v41 = vld [vmem:[%s8599_s4 + $0x198] sm:$0xff] }
 0x2b3   : > { %3978 = vmatpush1.bf16.msra.mxu0 %v3133_v34  ;;  %v4752_v34 = vcombine.high %v2986_v37, %v2990_v25  ;;  %v2992_v12 = vld [vmem:[%s8599_s4 + $0x1b8] sm:$0xff] }
 0x2b4   : > { %v3079_v44 = vpack.c.bf16 %v2823_v13, %v2821_v3  ;;  %v3080_v60 = vpack.c.bf16 %v2824_v5, %v2822_v2  ;;  %v4747_v13 = vcombine.low %v2980_v35, %v2984_v50  ;;  %v4756_v5 = vcombine.high %v2988_v41, %v2992_v12  ;;  %v2998_v3 = vld [vmem:[%s8599_s4 + $0x1e8] sm:$0xff] }
 0x2b5   : > { %v2690_v59 = vpop.permute.xlu1 %2689  ;;  %v4751_v2 = vcombine.low %v2986_v37, %v2990_v25  ;;  %v4760_v53 = vcombine.high %v2994_v63, %v2998_v3  ;;  %v4759_v14 = vcombine.low %v2994_v63, %v2998_v3 }
 0x2b6   : > { %v2933_v47 = vmul.f32 %v2690_v59, %v2093_v28  ;;  %v2934_v11 = vmul.f32 %v2690_v59, %v2094_v51  ;;  %3721 = vmatprep.subr.bf16.mxu1 %v3080_v60  ;;  %v3000_v28 = vld [vmem:[%s8599_s4 + $0x1f8] sm:$0xff]  ;;  %v4755_v51 = vcombine.low %v2988_v41, %v2992_v12  ;;  %v3002_v60 = vld [vmem:[%s8599_s4 + $0x208] sm:$0xff] }
 0x2b7   : > { %3722 = vmatpush1.bf16.msra.mxu1 %v3079_v44  ;;  %v4764_v44 = vcombine.high %v2996_v7, %v3000_v28  ;;  %v4768_v59 = vcombine.high %v3002_v60, %v3006_v22 }
 0x2b8   : > { %v3135_v57 = vpack.c.bf16 %v2935_v31, %v2933_v47  ;;  %v3136_v46 = vpack.c.bf16 %v2936_v8, %v2934_v11  ;;  %v3008_v31 = vld [vmem:[%s8599_s4 + $0x238] sm:$0xff]  ;;  %v4763_v8 = vcombine.low %v2996_v7, %v3000_v28  ;;  %v3010_v11 = vld [vmem:[%s8599_s4 + $0x248] sm:$0xff] }
 0x2ba   : > { %3724 = vmatmul.mubr.bf16.vlgmr.msra.gmra.mrb[0].mxu1 %v4703_v58  ;;  %3979 = vmatprep.subr.bf16.mxu0 %v3136_v46  ;;  %v3004_v58 = vld [vmem:[%s8599_s4 + $0x218] sm:$0xff] }
 0x2bb   : > { %3980 = vmatpush1.bf16.msra.mxu0 %v3135_v57  ;;  %3733 = vmatprep.mubr.bf16.mxu1 %v4712_v10  ;;  %v4772_v47 = vcombine.high %v3004_v58, %v3008_v31  ;;  %v3014_v10 = vld [vmem:[%s8599_s4 + $0x268] sm:$0xff]  ;;  %v4767_v57 = vcombine.low %v3002_v60, %v3006_v22 }
 0x2bc   : > { %v4776_v46 = vcombine.high %v3010_v11, %v3014_v10  ;;  %v4775_v56 = vcombine.low %v3010_v11, %v3014_v10 }
 0x2be   : > { %3990 = vmatmul.mubr.bf16.vlgmr.msra.gmra.mrb[0].mxu0 %v4707_v18  ;;  %v4771_v18 = vcombine.low %v3004_v58, %v3008_v31 }
 0x2bf   : > { %4782 = vmatprep.mubr.msk.bf16.mxu0 %vm3527_vm1, %v4716_v45  ;;  %v4780_v45 = vcombine.high %v3012_v0, %v3016_v4 }
 0x2c2   : > { %3734 = vmatmul.mubr.bf16.gmra.mrb[4].mxu1 %v4711_v19 }
 0x2c3   : > { %3743 = vmatprep.mubr.bf16.mxu1 %v4720_v55 }
 0x2c6   : > { %4000 = vmatmul.mubr.bf16.gmra.mrb[4].mxu0 %v4715_v32 }
 0x2c7   : > { %4783 = vmatprep.mubr.msk.bf16.mxu0 %vm3527_vm1, %v4724_v39 }
 0x2ca   : > { %3744 = vmatmul.mubr.bf16.gmra.mrb[8].mxu1 %v4719_v40 }
 0x2cb   : > { %3753 = vmatprep.mubr.bf16.mxu1 %v4728_v9 }
 0x2ce   : > { %4010 = vmatmul.mubr.bf16.gmra.mrb[8].mxu0 %v4723_v29 }
 0x2cf   : > { %4784 = vmatprep.mubr.msk.bf16.mxu0 %vm3527_vm1, %v4732_v26 }
 0x2d2   : > { %3754 = vmatmul.mubr.bf16.gmra.mrb[12].mxu1 %v4727_v23 }
 0x2d3   : > { %3763 = vmatprep.mubr.bf16.mxu1 %v4736_v33 }
 0x2d6   : > { %4020 = vmatmul.mubr.bf16.gmra.mrb[12].mxu0 %v4731_v42 }
 0x2d7   : > { %4785 = vmatprep.mubr.msk.bf16.mxu0 %vm3527_vm1, %v4740_v48 }
 0x2da   : > { %3764 = vmatmul.mubr.bf16.gmra.mrb[16].mxu1 %v4735_v17 }
 0x2db   : > { %3773 = vmatprep.mubr.bf16.mxu1 %v4744_v27 }
 0x2de   : > { %4030 = vmatmul.mubr.bf16.gmra.mrb[16].mxu0 %v4739_v16 }
 0x2df   : > { %4786 = vmatprep.mubr.msk.bf16.mxu0 %vm3527_vm1, %v4748_v6 }
 0x2e2   : > { %3774 = vmatmul.mubr.bf16.gmra.mrb[20].mxu1 %v4743_v49 }
 0x2e3   : > { %3783 = vmatprep.mubr.bf16.mxu1 %v4752_v34 }
 0x2e6   : > { %4040 = vmatmul.mubr.bf16.gmra.mrb[20].mxu0 %v4747_v13 }
 0x2e7   : > { %4787 = vmatprep.mubr.msk.bf16.mxu0 %vm3527_vm1, %v4756_v5 }
 0x2ea   : > { %3784 = vmatmul.mubr.bf16.gmra.mrb[24].mxu1 %v4751_v2 }
 0x2eb   : > { %3793 = vmatprep.mubr.bf16.mxu1 %v4760_v53 }
 0x2ee   : > { %4050 = vmatmul.mubr.bf16.gmra.mrb[24].mxu0 %v4755_v51 }
 0x2ef   : > { %4788 = vmatprep.mubr.msk.bf16.mxu0 %vm3527_vm1, %v4764_v44 }
 0x2f2   : > { %3794 = vmatmul.mubr.bf16.gmra.mrb[28].mxu1 %v4759_v14 }
 0x2f3   : > { %3803 = vmatprep.mubr.bf16.mxu1 %v4768_v59 }
 0x2f6   : > { %4060 = vmatmul.mubr.bf16.gmra.mrb[28].mxu0 %v4763_v8 }
 0x2f7   : > { %4789 = vmatprep.mubr.msk.bf16.mxu0 %vm3527_vm1, %v4772_v47 }
 0x2fa   : > { %3804 = vmatmul.mubr.bf16.gmra.mrb[32].mxu1 %v4767_v57 }
 0x2fb   : > { %3813 = vmatprep.mubr.bf16.mxu1 %v4776_v46 }
 0x2fe   : > { %4070 = vmatmul.mubr.bf16.gmra.mrb[32].mxu0 %v4771_v18 }
 0x2ff   : > { %4790 = vmatprep.mubr.msk.bf16.mxu0 %vm3527_vm1, %v4780_v45 }
 0x302   : > { %3814 = vmatmul.mubr.bf16.gmra.mrb[36].mxu1 %v4775_v56 }
 0x306   : > { %4080 = vmatmul.mubr.bf16.gmra.mrb[36].mxu0 %v4779_v21 }
 0x38d   : > { %v3725_v19 = vpop.f32.mrb[0].mxu1 }
 0x38e   : > { %v3727_v55 = vpop.f32.mrb[1].mxu1 }
 0x38f   : > { %v3729_v52 = vpop.f32.mrb[2].mxu1 }
 0x390   : > { %v3731_v61 = vpop.f32.mrb[3].mxu1 }
 0x391   : > { %v3991_v32 = vpop.f32.mrb[0].mxu0 }
 0x392   : > { %v7811_v39 = vadd.f32 %v3991_v32, %v3725_v19  ;;  %v3993_v36 = vpop.f32.mrb[1].mxu0 }
 0x393   : > { %v7813_v30 = vadd.f32 %v3993_v36, %v3727_v55  ;;  %v3995_v40 = vpop.f32.mrb[2].mxu0 }
 0x394   : > { %4090 = vst [vmem:[%s7809_s15] sm:$0xff] %v7811_v39  ;;  %v7817_v9 = vadd.f32 %v3995_v40, %v3729_v52  ;;  %v3997_v24 = vpop.f32.mrb[3].mxu0 }
 0x395   : > { %4092 = vst.msk [vmem:[%s7809_s15 + $0x8] sm:$0xff] %vm4091_vm2, %v7813_v30  ;;  %v7822_v62 = vadd.f32 %v3997_v24, %v3731_v61  ;;  %v3735_v29 = vpop.f32.mrb[4].mxu1 }
 0x396   : > { %4093 = vst [vmem:[%s7809_s15 + $0x10] sm:$0xff] %v7817_v9  ;;  %v3737_v26 = vpop.f32.mrb[5].mxu1 }
 0x397   : > { %4094 = vst.msk [vmem:[%s7809_s15 + $0x18] sm:$0xff] %vm4091_vm2, %v7822_v62  ;;  %v3739_v38 = vpop.f32.mrb[6].mxu1 }
 0x398   : > { %v3741_v1 = vpop.f32.mrb[7].mxu1 }
 0x399   : > { %v4001_v23 = vpop.f32.mrb[4].mxu0 }
 0x39a   : > { %v7829_v33 = vadd.f32 %v4001_v23, %v3735_v29  ;;  %v4003_v20 = vpop.f32.mrb[5].mxu0 }
 0x39b   : > { %v7831_v43 = vadd.f32 %v4003_v20, %v3737_v26  ;;  %v4005_v42 = vpop.f32.mrb[6].mxu0 }
 0x39c   : > { %4095 = vst [vmem:[%s7809_s15 + $0x20] sm:$0xff] %v7829_v33  ;;  %v7835_v48 = vadd.f32 %v4005_v42, %v3739_v38  ;;  %v4007_v54 = vpop.f32.mrb[7].mxu0 }
 0x39d   : > { %4096 = vst.msk [vmem:[%s7809_s15 + $0x28] sm:$0xff] %vm4091_vm2, %v7831_v43  ;;  %v7840_v15 = vadd.f32 %v4007_v54, %v3741_v1  ;;  %v3745_v17 = vpop.f32.mrb[8].mxu1 }
 0x39e   : > { %4097 = vst [vmem:[%s7809_s15 + $0x30] sm:$0xff] %v7835_v48  ;;  %v3747_v27 = vpop.f32.mrb[9].mxu1 }
 0x39f   : > { %4098 = vst.msk [vmem:[%s7809_s15 + $0x38] sm:$0xff] %vm4091_vm2, %v7840_v15  ;;  %v3749_v35 = vpop.f32.mrb[10].mxu1 }
 0x3a0   : > { %v3751_v50 = vpop.f32.mrb[11].mxu1 }
 0x3a1   : > { %v4011_v16 = vpop.f32.mrb[8].mxu0 }
 0x3a2   : > { %v7847_v6 = vadd.f32 %v4011_v16, %v3745_v17  ;;  %v4013_v37 = vpop.f32.mrb[9].mxu0 }
 0x3a3   : > { %v7849_v25 = vadd.f32 %v4013_v37, %v3747_v27  ;;  %v4015_v49 = vpop.f32.mrb[10].mxu0 }
 0x3a4   : > { %4099 = vst [vmem:[%s7809_s15 + $0x40] sm:$0xff] %v7847_v6  ;;  %v7853_v34 = vadd.f32 %v4015_v49, %v3749_v35  ;;  %v4017_v41 = vpop.f32.mrb[11].mxu0 }
 0x3a5   : > { %4100 = vst.msk [vmem:[%s7809_s15 + $0x48] sm:$0xff] %vm4091_vm2, %v7849_v25  ;;  %v7858_v12 = vadd.f32 %v4017_v41, %v3751_v50  ;;  %v3755_v13 = vpop.f32.mrb[12].mxu1 }
 0x3a6   : > { %4101 = vst [vmem:[%s7809_s15 + $0x50] sm:$0xff] %v7853_v34  ;;  %v3757_v5 = vpop.f32.mrb[13].mxu1 }
 0x3a7   : > { %4102 = vst.msk [vmem:[%s7809_s15 + $0x58] sm:$0xff] %vm4091_vm2, %v7858_v12  ;;  %v3759_v63 = vpop.f32.mrb[14].mxu1 }
 0x3a8   : > { %v3761_v3 = vpop.f32.mrb[15].mxu1 }
 0x3a9   : > { %v4021_v2 = vpop.f32.mrb[12].mxu0 }
 0x3aa   : > { %v7865_v53 = vadd.f32 %v4021_v2, %v3755_v13  ;;  %v4023_v7 = vpop.f32.mrb[13].mxu0 }
 0x3ab   : > { %v7867_v28 = vadd.f32 %v4023_v7, %v3757_v5  ;;  %v4025_v51 = vpop.f32.mrb[14].mxu0 }
 0x3ac   : > { %4103 = vst [vmem:[%s7809_s15 + $0x60] sm:$0xff] %v7865_v53  ;;  %v7871_v44 = vadd.f32 %v4025_v51, %v3759_v63  ;;  %v4027_v60 = vpop.f32.mrb[15].mxu0 }
 0x3ad   : > { %4104 = vst.msk [vmem:[%s7809_s15 + $0x68] sm:$0xff] %vm4091_vm2, %v7867_v28  ;;  %v7876_v22 = vadd.f32 %v4027_v60, %v3761_v3  ;;  %v3765_v14 = vpop.f32.mrb[16].mxu1 }
 0x3ae   : > { %4105 = vst [vmem:[%s7809_s15 + $0x70] sm:$0xff] %v7871_v44  ;;  %v3767_v59 = vpop.f32.mrb[17].mxu1 }
 0x3af   : > { %4106 = vst.msk [vmem:[%s7809_s15 + $0x78] sm:$0xff] %vm4091_vm2, %v7876_v22  ;;  %v3769_v58 = vpop.f32.mrb[18].mxu1 }
 0x3b0   : > { %v3771_v31 = vpop.f32.mrb[19].mxu1 }
 0x3b1   : > { %v4031_v8 = vpop.f32.mrb[16].mxu0 }
 0x3b2   : > { %v7883_v47 = vadd.f32 %v4031_v8, %v3765_v14  ;;  %v4033_v11 = vpop.f32.mrb[17].mxu0 }
 0x3b3   : > { %v7885_v10 = vadd.f32 %v4033_v11, %v3767_v59  ;;  %v4035_v57 = vpop.f32.mrb[18].mxu0 }
 0x3b4   : > { %4107 = vst [vmem:[%s7809_s15 + $0x80] sm:$0xff] %v7883_v47  ;;  %v7889_v46 = vadd.f32 %v4035_v57, %v3769_v58  ;;  %v4037_v0 = vpop.f32.mrb[19].mxu0 }
 0x3b5   : > { %4108 = vst.msk [vmem:[%s7809_s15 + $0x88] sm:$0xff] %vm4091_vm2, %v7885_v10  ;;  %v7894_v4 = vadd.f32 %v4037_v0, %v3771_v31  ;;  %v3775_v18 = vpop.f32.mrb[20].mxu1 }
 0x3b6   : > { %4109 = vst [vmem:[%s7809_s15 + $0x90] sm:$0xff] %v7889_v46  ;;  %v3777_v45 = vpop.f32.mrb[21].mxu1 }
 0x3b7   : > { %4110 = vst.msk [vmem:[%s7809_s15 + $0x98] sm:$0xff] %vm4091_vm2, %v7894_v4  ;;  %v3779_v56 = vpop.f32.mrb[22].mxu1 }
 0x3b8   : > { %v3781_v21 = vpop.f32.mrb[23].mxu1 }
 0x3b9   : > { %v4041_v19 = vpop.f32.mrb[20].mxu0 }
 0x3ba   : > { %v7901_v55 = vadd.f32 %v4041_v19, %v3775_v18  ;;  %v4043_v52 = vpop.f32.mrb[21].mxu0 }
 0x3bb   : > { %v7903_v61 = vadd.f32 %v4043_v52, %v3777_v45  ;;  %v4045_v32 = vpop.f32.mrb[22].mxu0 }
 0x3bc   : > { %4111 = vst [vmem:[%s7809_s15 + $0xa0] sm:$0xff] %v7901_v55  ;;  %v7907_v36 = vadd.f32 %v4045_v32, %v3779_v56  ;;  %v4047_v40 = vpop.f32.mrb[23].mxu0 }
 0x3bd   : > { %4112 = vst.msk [vmem:[%s7809_s15 + $0xa8] sm:$0xff] %vm4091_vm2, %v7903_v61  ;;  %v7912_v24 = vadd.f32 %v4047_v40, %v3781_v21  ;;  %v3785_v29 = vpop.f32.mrb[24].mxu1 }
 0x3be   : > { %4113 = vst [vmem:[%s7809_s15 + $0xb0] sm:$0xff] %v7907_v36  ;;  %v3787_v26 = vpop.f32.mrb[25].mxu1 }
 0x3bf   : > { %4114 = vst.msk [vmem:[%s7809_s15 + $0xb8] sm:$0xff] %vm4091_vm2, %v7912_v24  ;;  %v3789_v38 = vpop.f32.mrb[26].mxu1 }
 0x3c0   : > { %v3791_v1 = vpop.f32.mrb[27].mxu1 }
 0x3c1   : > { %v4051_v23 = vpop.f32.mrb[24].mxu0 }
 0x3c2   : > { %v7919_v20 = vadd.f32 %v4051_v23, %v3785_v29  ;;  %v4053_v42 = vpop.f32.mrb[25].mxu0 }
 0x3c3   : > { %v7921_v54 = vadd.f32 %v4053_v42, %v3787_v26  ;;  %v4055_v17 = vpop.f32.mrb[26].mxu0 }
 0x3c4   : > { %4115 = vst [vmem:[%s7809_s15 + $0xc0] sm:$0xff] %v7919_v20  ;;  %v7925_v27 = vadd.f32 %v4055_v17, %v3789_v38  ;;  %v4057_v35 = vpop.f32.mrb[27].mxu0 }
 0x3c5   : > { %4116 = vst.msk [vmem:[%s7809_s15 + $0xc8] sm:$0xff] %vm4091_vm2, %v7921_v54  ;;  %v7930_v50 = vadd.f32 %v4057_v35, %v3791_v1  ;;  %v3795_v16 = vpop.f32.mrb[28].mxu1 }
 0x3c6   : > { %4117 = vst [vmem:[%s7809_s15 + $0xd0] sm:$0xff] %v7925_v27  ;;  %v3797_v37 = vpop.f32.mrb[29].mxu1 }
 0x3c7   : > { %4118 = vst.msk [vmem:[%s7809_s15 + $0xd8] sm:$0xff] %vm4091_vm2, %v7930_v50  ;;  %v3799_v49 = vpop.f32.mrb[30].mxu1 }
 0x3c8   : > { %v3801_v41 = vpop.f32.mrb[31].mxu1 }
 0x3c9   : > { %v4061_v13 = vpop.f32.mrb[28].mxu0 }
 0x3ca   : > { %v7937_v5 = vadd.f32 %v4061_v13, %v3795_v16  ;;  %v4063_v63 = vpop.f32.mrb[29].mxu0  ;;  %v5418_v16 = vmov (!%p4791_p4), 0.0  }
 0x3cb   : > { %v7939_v3 = vadd.f32 %v4063_v63, %v3797_v37  ;;  %v4065_v2 = vpop.f32.mrb[30].mxu0  ;;  %4136 = vst.msk [vmem:[%s8601_s6] sm:$0xff] (!%p4791_p4), %vm4135_vm3, %v5418_v16  ;;  %4137 = vst.msk [vmem:[%s8601_s6 + $0x8] sm:$0xff] (!%p4791_p4), %vm4135_vm3, %v5418_v16 }
 0x3cc   : > { %4119 = vst [vmem:[%s7809_s15 + $0xe0] sm:$0xff] %v7937_v5  ;;  %v7943_v7 = vadd.f32 %v4065_v2, %v3799_v49  ;;  %v4067_v51 = vpop.f32.mrb[31].mxu0  ;;  %4138 = vst.msk [vmem:[%s8601_s6 + $0x10] sm:$0xff] (!%p4791_p4), %vm4135_vm3, %v5418_v16 }
 0x3cd   : > { %4120 = vst.msk [vmem:[%s7809_s15 + $0xe8] sm:$0xff] %vm4091_vm2, %v7939_v3  ;;  %v7948_v60 = vadd.f32 %v4067_v51, %v3801_v41  ;;  %v3805_v14 = vpop.f32.mrb[32].mxu1 }
 0x3ce   : > { %4121 = vst [vmem:[%s7809_s15 + $0xf0] sm:$0xff] %v7943_v7  ;;  %v3807_v59 = vpop.f32.mrb[33].mxu1  ;;  %4139 = vst.msk [vmem:[%s8601_s6 + $0x18] sm:$0xff] (!%p4791_p4), %vm4135_vm3, %v5418_v16 }
 0x3cf   : > { %4122 = vst.msk [vmem:[%s7809_s15 + $0xf8] sm:$0xff] %vm4091_vm2, %v7948_v60  ;;  %v3809_v58 = vpop.f32.mrb[34].mxu1 }
 0x3d0   : > { %v3811_v31 = vpop.f32.mrb[35].mxu1  ;;  %4140 = vst.msk [vmem:[%s8601_s6 + $0x20] sm:$0xff] (!%p4791_p4), %vm4135_vm3, %v5418_v16  ;;  %4141 = vst.msk [vmem:[%s8601_s6 + $0x28] sm:$0xff] (!%p4791_p4), %vm4135_vm3, %v5418_v16 }
 0x3d1   : > { %v4071_v8 = vpop.f32.mrb[32].mxu0  ;;  %4142 = vst.msk [vmem:[%s8601_s6 + $0x30] sm:$0xff] (!%p4791_p4), %vm4135_vm3, %v5418_v16  ;;  %4143 = vst.msk [vmem:[%s8601_s6 + $0x38] sm:$0xff] (!%p4791_p4), %vm4135_vm3, %v5418_v16 }
 0x3d2   : > { %v7955_v11 = vadd.f32 %v4071_v8, %v3805_v14  ;;  %v4073_v57 = vpop.f32.mrb[33].mxu0  ;;  %4144 = vst.msk [vmem:[%s8601_s6 + $0x40] sm:$0xff] (!%p4791_p4), %vm4135_vm3, %v5418_v16  ;;  %4145 = vst.msk [vmem:[%s8601_s6 + $0x48] sm:$0xff] (!%p4791_p4), %vm4135_vm3, %v5418_v16 }
 0x3d3   : > { %v7957_v0 = vadd.f32 %v4073_v57, %v3807_v59  ;;  %v4075_v18 = vpop.f32.mrb[34].mxu0  ;;  %4146 = vst.msk [vmem:[%s8601_s6 + $0x50] sm:$0xff] (!%p4791_p4), %vm4135_vm3, %v5418_v16  ;;  %4147 = vst.msk [vmem:[%s8601_s6 + $0x58] sm:$0xff] (!%p4791_p4), %vm4135_vm3, %v5418_v16 }
 0x3d4   : > { %4123 = vst [vmem:[%s7809_s15 + $0x100] sm:$0xff] %v7955_v11  ;;  %v7961_v45 = vadd.f32 %v4075_v18, %v3809_v58  ;;  %v4077_v56 = vpop.f32.mrb[35].mxu0  ;;  %4148 = vst.msk [vmem:[%s8601_s6 + $0x60] sm:$0xff] (!%p4791_p4), %vm4135_vm3, %v5418_v16 }
 0x3d5   : > { %4124 = vst.msk [vmem:[%s7809_s15 + $0x108] sm:$0xff] %vm4091_vm2, %v7957_v0  ;;  %v7966_v21 = vadd.f32 %v4077_v56, %v3811_v31  ;;  %v3815_v19 = vpop.f32.mrb[36].mxu1 }
 0x3d6   : > { %4125 = vst [vmem:[%s7809_s15 + $0x110] sm:$0xff] %v7961_v45  ;;  %v3817_v52 = vpop.f32.mrb[37].mxu1  ;;  %4149 = vst.msk [vmem:[%s8601_s6 + $0x68] sm:$0xff] (!%p4791_p4), %vm4135_vm3, %v5418_v16 }
 0x3d7   : > { %4126 = vst.msk [vmem:[%s7809_s15 + $0x118] sm:$0xff] %vm4091_vm2, %v7966_v21  ;;  %v3819_v32 = vpop.f32.mrb[38].mxu1 }
 0x3d8   : > { %v3821_v40 = vpop.f32.mrb[39].mxu1  ;;  %4150 = vst.msk [vmem:[%s8601_s6 + $0x70] sm:$0xff] (!%p4791_p4), %vm4135_vm3, %v5418_v16  ;;  %4151 = vst.msk [vmem:[%s8601_s6 + $0x78] sm:$0xff] (!%p4791_p4), %vm4135_vm3, %v5418_v16 }
 0x3d9   : > { %v4081_v29 = vpop.f32.mrb[36].mxu0  ;;  %4134 = sbr.rel (%p4791_p4) target bundleno = 1000 (0x3e8), region = 44  ;;  %4152 = vst.msk [vmem:[%s8601_s6 + $0x80] sm:$0xff] (!%p4791_p4), %vm4135_vm3, %v5418_v16  ;;  %4153 = vst.msk [vmem:[%s8601_s6 + $0x88] sm:$0xff] (!%p4791_p4), %vm4135_vm3, %v5418_v16 }
 0x3da   : > { %v7973_v26 = vadd.f32 %v4081_v29, %v3815_v19  ;;  %v4083_v38 = vpop.f32.mrb[37].mxu0  ;;  %4154 = vst.msk [vmem:[%s8601_s6 + $0x90] sm:$0xff] (!%p4791_p4), %vm4135_vm3, %v5418_v16  ;;  %4155 = vst.msk [vmem:[%s8601_s6 + $0x98] sm:$0xff] (!%p4791_p4), %vm4135_vm3, %v5418_v16 }
 0x3db   : > { %v7975_v1 = vadd.f32 %v4083_v38, %v3817_v52  ;;  %v4085_v23 = vpop.f32.mrb[38].mxu0  ;;  %4156 = vst.msk [vmem:[%s8602_s7] sm:$0xff] (!%p4791_p4), %vm4135_vm3, %v5418_v16  ;;  %4157 = vst.msk [vmem:[%s8602_s7 + $0x8] sm:$0xff] (!%p4791_p4), %vm4135_vm3, %v5418_v16 }
 0x3dc   : > { %4127 = vst [vmem:[%s7809_s15 + $0x120] sm:$0xff] %v7973_v26  ;;  %v7979_v42 = vadd.f32 %v4085_v23, %v3819_v32  ;;  %v4087_v17 = vpop.f32.mrb[39].mxu0  ;;  %4158 = vst.msk [vmem:[%s8602_s7 + $0x10] sm:$0xff] (!%p4791_p4), %vm4135_vm3, %v5418_v16 }
 0x3dd   : > { %4128 = vst.msk [vmem:[%s7809_s15 + $0x128] sm:$0xff] %vm4091_vm2, %v7975_v1  ;;  %v7984_v35 = vadd.f32 %v4087_v17, %v3821_v40 }
 0x3de   : > { %4129 = vst [vmem:[%s7809_s15 + $0x130] sm:$0xff] %v7979_v42  ;;  %4159 = vst.msk [vmem:[%s8602_s7 + $0x18] sm:$0xff] (!%p4791_p4), %vm4135_vm3, %v5418_v16 }
 0x3df   : > { %4130 = vst.msk [vmem:[%s7809_s15 + $0x138] sm:$0xff] %vm4091_vm2, %v7984_v35 }
 0x3e0   : > { %4160 = vst.msk [vmem:[%s8602_s7 + $0x20] sm:$0xff] %vm4135_vm3, %v5418_v16  ;;  %4161 = vst.msk [vmem:[%s8602_s7 + $0x28] sm:$0xff] %vm4135_vm3, %v5418_v16 }
 0x3e1   : > { %4162 = vst.msk [vmem:[%s8602_s7 + $0x30] sm:$0xff] %vm4135_vm3, %v5418_v16  ;;  %4163 = vst.msk [vmem:[%s8602_s7 + $0x38] sm:$0xff] %vm4135_vm3, %v5418_v16 }
 0x3e2   : > { %4164 = vst.msk [vmem:[%s8602_s7 + $0x40] sm:$0xff] %vm4135_vm3, %v5418_v16  ;;  %4165 = vst.msk [vmem:[%s8602_s7 + $0x48] sm:$0xff] %vm4135_vm3, %v5418_v16 }
 0x3e3   : > { %4166 = vst.msk [vmem:[%s8602_s7 + $0x50] sm:$0xff] %vm4135_vm3, %v5418_v16  ;;  %4167 = vst.msk [vmem:[%s8602_s7 + $0x58] sm:$0xff] %vm4135_vm3, %v5418_v16 }
 0x3e4   : > { %4168 = vst.msk [vmem:[%s8602_s7 + $0x60] sm:$0xff] %vm4135_vm3, %v5418_v16  ;;  %4169 = vst.msk [vmem:[%s8602_s7 + $0x68] sm:$0xff] %vm4135_vm3, %v5418_v16 }
 0x3e5   : > { %4170 = vst.msk [vmem:[%s8602_s7 + $0x70] sm:$0xff] %vm4135_vm3, %v5418_v16  ;;  %4171 = vst.msk [vmem:[%s8602_s7 + $0x78] sm:$0xff] %vm4135_vm3, %v5418_v16 }
 0x3e6   : > { %4172 = vst.msk [vmem:[%s8602_s7 + $0x80] sm:$0xff] %vm4135_vm3, %v5418_v16  ;;  %4173 = vst.msk [vmem:[%s8602_s7 + $0x88] sm:$0xff] %vm4135_vm3, %v5418_v16 }
 0x3e7   : > { %4174 = vst.msk [vmem:[%s8602_s7 + $0x90] sm:$0xff] %vm4135_vm3, %v5418_v16  ;;  %4175 = vst.msk [vmem:[%s8602_s7 + $0x98] sm:$0xff] %vm4135_vm3, %v5418_v16 }
 0x3e8 PF: > { %v4204_v37 = vsel %vm4091_vm2, %v7831_v43, 0.0  ;;  %v4196_v49 = vsel %vm4091_vm2, %v7813_v30, 0.0  ;;  %v4208_v41 = vsel %vm4091_vm2, %v7840_v15, 0.0  ;;  %v4200_v13 = vsel %vm4091_vm2, %v7822_v62, 0.0 }
 0x3e9   : > { %v4205_v63 = vadd.f32 %v7829_v33, %v4204_v37  ;;  %v4197_v2 = vadd.f32 %v7811_v39, %v4196_v49  ;;  %v4209_v51 = vadd.f32 %v7835_v48, %v4208_v41  ;;  %v4201_v14 = vadd.f32 %v7817_v9, %v4200_v13 }
 0x3ea   : > { %v4216_v59 = vsel %vm4091_vm2, %v7858_v12, 0.0  ;;  %v4212_v58 = vsel %vm4091_vm2, %v7849_v25, 0.0  ;;  %v4224_v57 = vsel %vm4091_vm2, %v7876_v22, 0.0  ;;  %v4220_v18 = vsel %vm4091_vm2, %v7867_v28, 0.0 }
 0x3eb   : > { %4206 = vadd.xlane.f32.xlu1 %v4205_v63  ;;  %4198 = vadd.xlane.f32.xlu0 %v4197_v2  ;;  %v4217_v31 = vadd.f32 %v7853_v34, %v4216_v59  ;;  %v4213_v8 = vadd.f32 %v7847_v6, %v4212_v58  ;;  %v4225_v56 = vadd.f32 %v7871_v44, %v4224_v57  ;;  %v4232_v52 = vsel %vm4091_vm2, %v7894_v4, 0.0 }
 0x3ec   : > { %v4221_v19 = vadd.f32 %v7865_v53, %v4220_v18  ;;  %v4228_v32 = vsel %vm4091_vm2, %v7885_v10, 0.0  ;;  %v4233_v40 = vadd.f32 %v7889_v46, %v4232_v52  ;;  %v4240_v38 = vsel %vm4091_vm2, %v7912_v24, 0.0 }
 0x3ed   : > { %v4229_v29 = vadd.f32 %v7883_v47, %v4228_v32  ;;  %v4236_v23 = vsel %vm4091_vm2, %v7903_v61, 0.0  ;;  %v4241_v17 = vadd.f32 %v7907_v36, %v4240_v38  ;;  %v4248_v37 = vsel %vm4091_vm2, %v7930_v50, 0.0 }
 0x3ee   : > { %v4237_v16 = vadd.f32 %v7901_v55, %v4236_v23  ;;  %v4244_v49 = vsel %vm4091_vm2, %v7921_v54, 0.0  ;;  %v4249_v41 = vadd.f32 %v7925_v27, %v4248_v37  ;;  %v4256_v63 = vsel %vm4091_vm2, %v7948_v60, 0.0 }
 0x3ef   : > { %4210 = vadd.xlane.f32.xlu1 %v4209_v51  ;;  %4202 = vadd.xlane.f32.xlu0 %v4201_v14  ;;  %v4245_v13 = vadd.f32 %v7919_v20, %v4244_v49  ;;  %v4252_v2 = vsel %vm4091_vm2, %v7939_v3, 0.0  ;;  %v4257_v51 = vadd.f32 %v7943_v7, %v4256_v63  ;;  %v4264_v59 = vsel %vm4091_vm2, %v7966_v21, 0.0 }
 0x3f0   : > { %v4253_v14 = vadd.f32 %v7937_v5, %v4252_v2  ;;  %v4260_v58 = vsel %vm4091_vm2, %v7957_v0, 0.0  ;;  %v4272_v57 = vsel %vm4091_vm2, %v7984_v35, 0.0  ;;  %v4268_v18 = vsel %vm4091_vm2, %v7975_v1, 0.0 }
 0x3f1   : > { %v4273_v52 = vadd.f32 %v7979_v42, %v4272_v57  ;;  %v4269_v32 = vadd.f32 %v7973_v26, %v4268_v18  ;;  %vm4296_vm4 = vcmask 7168  }
 0x3f3   : > { %4218 = vadd.xlane.f32.xlu1 %v4217_v31  ;;  %4214 = vadd.xlane.f32.xlu0 %v4213_v8  ;;  %v4265_v31 = vadd.f32 %v7961_v45, %v4264_v59  ;;  %v4261_v8 = vadd.f32 %v7955_v11, %v4260_v58 }
 0x3f7   : > { %4226 = vadd.xlane.f32.xlu1 %v4225_v56  ;;  %4222 = vadd.xlane.f32.xlu0 %v4221_v19  ;;  %v4340_v56 = vmul.f32 %v7822_v62, %v7822_v62  ;;  %v4338_v19 = vmul.f32 %v7813_v30, %v7813_v30  ;;  %v4344_v62 = vmul.f32 %v7840_v15, %v7840_v15 }
 0x3f8   : > { %v4342_v30 = vmul.f32 %v7831_v43, %v7831_v43  ;;  %v4348_v15 = vmul.f32 %v7858_v12, %v7858_v12  ;;  %v4346_v43 = vmul.f32 %v7849_v25, %v7849_v25  ;;  %v4352_v12 = vmul.f32 %v7876_v22, %v7876_v22 }
 0x3f9   : > { %v4381_v38 = vsel %vm4091_vm2, %v4340_v56, 0.0  ;;  %v4377_v23 = vsel %vm4091_vm2, %v4338_v19, 0.0  ;;  %v4389_v37 = vsel %vm4091_vm2, %v4344_v62, 0.0  ;;  %v4350_v25 = vmul.f32 %v7867_v28, %v7867_v28 }
 0x3fa   : > { %v4385_v49 = vsel %vm4091_vm2, %v4342_v30, 0.0  ;;  %v4397_v63 = vsel %vm4091_vm2, %v4348_v15, 0.0  ;;  %v4393_v2 = vsel %vm4091_vm2, %v4346_v43, 0.0  ;;  %v4405_v59 = vsel %vm4091_vm2, %v4352_v12, 0.0  ;;  %v4179_v12 = vld [vmem:[%s8601_s6 + $0x18] sm:$0xff] }
 0x3fb   : > { %4234 = vadd.xlane.f32.xlu1 %v4233_v40  ;;  %4230 = vadd.xlane.f32.xlu0 %v4229_v29  ;;  %v4339_v40 = vmul.f32 %v7817_v9, %v7817_v9  ;;  %v4337_v29 = vmul.f32 %v7811_v39, %v7811_v39  ;;  %v4341_v39 = vmul.f32 %v7829_v33, %v7829_v33  ;;  %v4401_v58 = vsel %vm4091_vm2, %v4350_v25, 0.0  ;;  %v4177_v25 = vld [vmem:[%s8601_s6 + $0x8] sm:$0xff] }
 0x3fc   : > { %v4345_v33 = vmul.f32 %v7847_v6, %v7847_v6  ;;  %v4349_v6 = vmul.f32 %v7865_v53, %v7865_v53  ;;  %v4356_v22 = vmul.f32 %v7894_v4, %v7894_v4  ;;  %v4354_v28 = vmul.f32 %v7885_v10, %v7885_v10 }
 0x3fd   : > { %v4378_v9 = vadd.f32 %v4377_v23, %v4337_v29  ;;  %v4353_v53 = vmul.f32 %v7883_v47, %v7883_v47  ;;  %v4360_v4 = vmul.f32 %v7912_v24, %v7912_v24  ;;  %v4358_v10 = vmul.f32 %v7903_v61, %v7903_v61 }
 0x3fe   : > { %v4413_v57 = vsel %vm4091_vm2, %v4356_v22, 0.0  ;;  %v4409_v18 = vsel %vm4091_vm2, %v4354_v28, 0.0  ;;  %v4357_v47 = vmul.f32 %v7901_v55, %v7901_v55  ;;  %v4364_v24 = vmul.f32 %v7930_v50, %v7930_v50 }
 0x3ff   : > { %4242 = vadd.xlane.f32.xlu1 %v4241_v17  ;;  %4238 = vadd.xlane.f32.xlu0 %v4237_v16  ;;  %v4343_v17 = vmul.f32 %v7835_v48, %v7835_v48  ;;  %v4382_v16 = vadd.f32 %v4381_v38, %v4339_v40  ;;  %v4347_v48 = vmul.f32 %v7853_v34, %v7853_v34 }
 0x400   : > { %v4351_v34 = vmul.f32 %v7871_v44, %v7871_v44  ;;  %v4355_v44 = vmul.f32 %v7889_v46, %v7889_v46  ;;  %v4359_v46 = vmul.f32 %v7907_v36, %v7907_v36  ;;  %v4410_v19 = vadd.f32 %v4409_v18, %v4353_v53  ;;  %v4182_v53 = vld [vmem:[%s8601_s6 + $0x30] sm:$0xff] }
 0x401   : > { %v4362_v61 = vmul.f32 %v7921_v54, %v7921_v54  ;;  %v4363_v36 = vmul.f32 %v7925_v27, %v7925_v27  ;;  %v4361_v55 = vmul.f32 %v7919_v20, %v7919_v20  ;;  %v4429_v38 = vsel %vm4091_vm2, %v4364_v24, 0.0  ;;  %v4187_v24 = vld [vmem:[%s8601_s6 + $0x58] sm:$0xff] }
 0x402   : > { %v4414_v56 = vadd.f32 %v4413_v57, %v4355_v44  ;;  %v4368_v50 = vmul.f32 %v7948_v60, %v7948_v60  ;;  %v4366_v54 = vmul.f32 %v7939_v3, %v7939_v3  ;;  %v4367_v27 = vmul.f32 %v7943_v7, %v7943_v7 }
 0x403   : > { %4250 = vadd.xlane.f32.xlu1 %v4249_v41  ;;  %4246 = vadd.xlane.f32.xlu0 %v4245_v13  ;;  %v4390_v41 = vadd.f32 %v4389_v37, %v4343_v17  ;;  %v4386_v13 = vadd.f32 %v4385_v49, %v4341_v39  ;;  %v4425_v23 = vsel %vm4091_vm2, %v4362_v61, 0.0  ;;  %v4430_v62 = vadd.f32 %v4429_v38, %v4363_v36  ;;  %v4186_v61 = vld [vmem:[%s8601_s6 + $0x50] sm:$0xff]  ;;  %v4189_v38 = vld [vmem:[%s8601_s6 + $0x68] sm:$0xff] }
 0x404   : > { %v4426_v30 = vadd.f32 %v4425_v23, %v4361_v55  ;;  %v4365_v20 = vmul.f32 %v7937_v5, %v7937_v5  ;;  %v4437_v17 = vsel %vm4091_vm2, %v4368_v50, 0.0  ;;  %v4372_v60 = vmul.f32 %v7966_v21, %v7966_v21  ;;  %v4188_v23 = vld [vmem:[%s8601_s6 + $0x60] sm:$0xff] }
 0x405   : > { %v4370_v3 = vmul.f32 %v7957_v0, %v7957_v0  ;;  %v4371_v7 = vmul.f32 %v7961_v45, %v7961_v45  ;;  %v4369_v5 = vmul.f32 %v7955_v11, %v7955_v11  ;;  %v4376_v21 = vmul.f32 %v7984_v35, %v7984_v35 }
 0x406   : > { %v4445_v37 = vsel %vm4091_vm2, %v4372_v60, 0.0  ;;  %v4374_v0 = vmul.f32 %v7975_v1, %v7975_v1  ;;  %v4375_v45 = vmul.f32 %v7979_v42, %v7979_v42  ;;  %v4373_v11 = vmul.f32 %v7973_v26, %v7973_v26  ;;  %v4178_v1 = vld [vmem:[%s8601_s6 + $0x10] sm:$0xff]  ;;  %v4176_v42 = vld [vmem:[%s8601_s6] sm:$0xff] }
 0x407   : > { %4258 = vadd.xlane.f32.xlu1 %v4257_v51  ;;  %4254 = vadd.xlane.f32.xlu0 %v4253_v14  ;;  %v4398_v51 = vadd.f32 %v4397_v63, %v4347_v48  ;;  %v4394_v14 = vadd.f32 %v4393_v2, %v4345_v33  ;;  %v4441_v49 = vsel %vm4091_vm2, %v4370_v3, 0.0  ;;  %v4446_v15 = vadd.f32 %v4445_v37, %v4371_v7  ;;  %v4193_v7 = vld [vmem:[%s8601_s6 + $0x88] sm:$0xff] }
 0x408   : > { %v4442_v43 = vadd.f32 %v4441_v49, %v4369_v5  ;;  %v4453_v48 = vsel %vm4091_vm2, %v4376_v21, 0.0  ;;  %v4195_v21 = vld [vmem:[%s8601_s6 + $0x98] sm:$0xff] }
 0x409   : > { %v4454_v35 = vadd.f32 %v4453_v48, %v4375_v45  ;;  %v4318_v48 = vld [vmem:[%s8602_s7 + $0x8] sm:$0xff] }
 0x40b   : > { %4266 = vadd.xlane.f32.xlu1 %v4265_v31  ;;  %4262 = vadd.xlane.f32.xlu0 %v4261_v8  ;;  %v4406_v31 = vadd.f32 %v4405_v59, %v4351_v34  ;;  %v4402_v8 = vadd.f32 %v4401_v58, %v4349_v6  ;;  %v4181_v59 = vld [vmem:[%s8601_s6 + $0x28] sm:$0xff]  ;;  %v4180_v58 = vld [vmem:[%s8601_s6 + $0x20] sm:$0xff] }
 0x40f   : > { %4274 = vadd.xlane.f32.xlu1 %v4273_v52  ;;  %4270 = vadd.xlane.f32.xlu0 %v4269_v32  ;;  %v4421_v52 = vsel %vm4091_vm2, %v4360_v4, 0.0  ;;  %v4417_v32 = vsel %vm4091_vm2, %v4358_v10, 0.0 }
 0x410   : > { %v4422_v40 = vadd.f32 %v4421_v52, %v4359_v46  ;;  %v4418_v29 = vadd.f32 %v4417_v32, %v4357_v47  ;;  %v4185_v46 = vld [vmem:[%s8601_s6 + $0x48] sm:$0xff] }
 0x413   : > { %4383 = vadd.xlane.f32.xlu1 %v4382_v16  ;;  %4379 = vadd.xlane.f32.xlu0 %v4378_v9  ;;  %v4433_v16 = vsel %vm4091_vm2, %v4366_v54, 0.0  ;;  %v4438_v9 = vadd.f32 %v4437_v17, %v4367_v27 }
 0x414   : > { %v4434_v39 = vadd.f32 %v4433_v16, %v4365_v20  ;;  %v4190_v20 = vld [vmem:[%s8601_s6 + $0x70] sm:$0xff] }
 0x417   : > { %4391 = vadd.xlane.f32.xlu1 %v4390_v41  ;;  %4387 = vadd.xlane.f32.xlu0 %v4386_v13  ;;  %v4449_v41 = vsel %vm4091_vm2, %v4374_v0, 0.0  ;;  %v4194_v0 = vld [vmem:[%s8601_s6 + $0x90] sm:$0xff] }
 0x418   : > { %v4450_v13 = vadd.f32 %v4449_v41, %v4373_v11  ;;  %v4317_v41 = vld [vmem:[%s8602_s7] sm:$0xff] }
 0x41b   : > { %4399 = vadd.xlane.f32.xlu1 %v4398_v51  ;;  %4395 = vadd.xlane.f32.xlu0 %v4394_v14 }
 0x41f   : > { %4407 = vadd.xlane.f32.xlu1 %v4406_v31  ;;  %4403 = vadd.xlane.f32.xlu0 %v4402_v8  ;;  %v4183_v8 = vld [vmem:[%s8601_s6 + $0x38] sm:$0xff] }
 0x423   : > { %4415 = vadd.xlane.f32.xlu1 %v4414_v56  ;;  %4411 = vadd.xlane.f32.xlu0 %v4410_v19  ;;  %v4184_v56 = vld [vmem:[%s8601_s6 + $0x40] sm:$0xff] }
 0x427   : > { %4423 = vadd.xlane.f32.xlu1 %v4422_v40  ;;  %4419 = vadd.xlane.f32.xlu0 %v4418_v29 }
 0x42b   : > { %4431 = vadd.xlane.f32.xlu1 %v4430_v62  ;;  %4427 = vadd.xlane.f32.xlu0 %v4426_v30  ;;  %v4191_v30 = vld [vmem:[%s8601_s6 + $0x78] sm:$0xff] }
 0x42f   : > { %4439 = vadd.xlane.f32.xlu1 %v4438_v9  ;;  %4435 = vadd.xlane.f32.xlu0 %v4434_v39  ;;  %v4192_v9 = vld [vmem:[%s8601_s6 + $0x80] sm:$0xff] }
 0x433   : > { %4447 = vadd.xlane.f32.xlu1 %v4446_v15  ;;  %4443 = vadd.xlane.f32.xlu0 %v4442_v43 }
 0x437   : > { %4455 = vadd.xlane.f32.xlu1 %v4454_v35  ;;  %4451 = vadd.xlane.f32.xlu0 %v4450_v13 }
 0x478   : > { %v4207_v26 = vpop.xlane.xlu1 %4206  ;;  %v4199_v33 = vpop.xlane.xlu0 %4198 }
 0x479   : > { %v4278_v63 = vadd.f32 %v4207_v26, %v4178_v1  ;;  %v4276_v2 = vadd.f32 %v4199_v33, %v4176_v42  ;;  %v4320_v26 = vld [vmem:[%s8602_s7 + $0x18] sm:$0xff]  ;;  %v4319_v33 = vld [vmem:[%s8602_s7 + $0x10] sm:$0xff] }
 0x47b   : > { %4299 = vst.msk [vmem:[%s8601_s6 + $0x10] sm:$0xff] %vm4296_vm4, %v4278_v63  ;;  %4297 = vst.msk [vmem:[%s8601_s6] sm:$0xff] %vm4296_vm4, %v4276_v2 }
 0x47c   : > { %v4211_v34 = vpop.xlane.xlu1 %4210  ;;  %v4203_v51 = vpop.xlane.xlu0 %4202 }
 0x47d   : > { %v4279_v14 = vadd.f32 %v4211_v34, %v4179_v12  ;;  %v4277_v6 = vadd.f32 %v4203_v51, %v4177_v25  ;;  %v4322_v34 = vld [vmem:[%s8602_s7 + $0x28] sm:$0xff]  ;;  %v4321_v51 = vld [vmem:[%s8602_s7 + $0x20] sm:$0xff] }
 0x47f   : > { %4300 = vst.msk [vmem:[%s8601_s6 + $0x18] sm:$0xff] %vm4296_vm4, %v4279_v14  ;;  %4298 = vst.msk [vmem:[%s8601_s6 + $0x8] sm:$0xff] %vm4296_vm4, %v4277_v6 }
 0x480   : > { %v4219_v22 = vpop.xlane.xlu1 %4218  ;;  %v4215_v28 = vpop.xlane.xlu0 %4214 }
 0x481   : > { %v4281_v44 = vadd.f32 %v4219_v22, %v4181_v59  ;;  %v4280_v31 = vadd.f32 %v4215_v28, %v4180_v58  ;;  %v4324_v22 = vld [vmem:[%s8602_s7 + $0x38] sm:$0xff]  ;;  %v4323_v28 = vld [vmem:[%s8602_s7 + $0x30] sm:$0xff] }
 0x483   : > { %4302 = vst.msk [vmem:[%s8601_s6 + $0x28] sm:$0xff] %vm4296_vm4, %v4281_v44  ;;  %4301 = vst.msk [vmem:[%s8601_s6 + $0x20] sm:$0xff] %vm4296_vm4, %v4280_v31 }
 0x484   : > { %v4227_v57 = vpop.xlane.xlu1 %4226  ;;  %v4223_v18 = vpop.xlane.xlu0 %4222 }
 0x485   : > { %v4283_v4 = vadd.f32 %v4227_v57, %v4183_v8  ;;  %v4282_v10 = vadd.f32 %v4223_v18, %v4182_v53  ;;  %v4326_v57 = vld [vmem:[%s8602_s7 + $0x48] sm:$0xff]  ;;  %v4325_v18 = vld [vmem:[%s8602_s7 + $0x40] sm:$0xff] }
 0x487   : > { %4304 = vst.msk [vmem:[%s8601_s6 + $0x38] sm:$0xff] %vm4296_vm4, %v4283_v4  ;;  %4303 = vst.msk [vmem:[%s8601_s6 + $0x30] sm:$0xff] %vm4296_vm4, %v4282_v10 }
 0x488   : > { %v4235_v19 = vpop.xlane.xlu1 %4234  ;;  %v4231_v47 = vpop.xlane.xlu0 %4230 }
 0x489   : > { %v4285_v52 = vadd.f32 %v4235_v19, %v4185_v46  ;;  %v4284_v32 = vadd.f32 %v4231_v47, %v4184_v56  ;;  %v4328_v19 = vld [vmem:[%s8602_s7 + $0x58] sm:$0xff]  ;;  %v4327_v47 = vld [vmem:[%s8602_s7 + $0x50] sm:$0xff] }
 0x48b   : > { %4306 = vst.msk [vmem:[%s8601_s6 + $0x48] sm:$0xff] %vm4296_vm4, %v4285_v52  ;;  %4305 = vst.msk [vmem:[%s8601_s6 + $0x40] sm:$0xff] %vm4296_vm4, %v4284_v32 }
 0x48c   : > { %v4243_v36 = vpop.xlane.xlu1 %4242  ;;  %v4239_v40 = vpop.xlane.xlu0 %4238 }
 0x48d   : > { %v4287_v29 = vadd.f32 %v4243_v36, %v4187_v24  ;;  %v4286_v55 = vadd.f32 %v4239_v40, %v4186_v61  ;;  %v4330_v36 = vld [vmem:[%s8602_s7 + $0x68] sm:$0xff]  ;;  %v4329_v40 = vld [vmem:[%s8602_s7 + $0x60] sm:$0xff] }
 0x48f   : > { %4308 = vst.msk [vmem:[%s8601_s6 + $0x58] sm:$0xff] %vm4296_vm4, %v4287_v29  ;;  %4307 = vst.msk [vmem:[%s8601_s6 + $0x50] sm:$0xff] %vm4296_vm4, %v4286_v55 }
 0x490   : > { %v4251_v50 = vpop.xlane.xlu1 %4250  ;;  %v4247_v54 = vpop.xlane.xlu0 %4246 }
 0x491   : > { %v4289_v27 = vadd.f32 %v4251_v50, %v4189_v38  ;;  %v4288_v62 = vadd.f32 %v4247_v54, %v4188_v23  ;;  %v4332_v50 = vld [vmem:[%s8602_s7 + $0x78] sm:$0xff]  ;;  %v4331_v54 = vld [vmem:[%s8602_s7 + $0x70] sm:$0xff] }
 0x493   : > { %4310 = vst.msk [vmem:[%s8601_s6 + $0x68] sm:$0xff] %vm4296_vm4, %v4289_v27  ;;  %4309 = vst.msk [vmem:[%s8601_s6 + $0x60] sm:$0xff] %vm4296_vm4, %v4288_v62 }
 0x494   : > { %v4259_v17 = vpop.xlane.xlu1 %4258  ;;  %v4255_v16 = vpop.xlane.xlu0 %4254 }
 0x495   : > { %v4291_v60 = vadd.f32 %v4259_v17, %v4191_v30  ;;  %v4290_v3 = vadd.f32 %v4255_v16, %v4190_v20  ;;  %v4334_v17 = vld [vmem:[%s8602_s7 + $0x88] sm:$0xff]  ;;  %v4333_v16 = vld [vmem:[%s8602_s7 + $0x80] sm:$0xff] }
 0x497   : > { %4312 = vst.msk [vmem:[%s8601_s6 + $0x78] sm:$0xff] %vm4296_vm4, %v4291_v60  ;;  %4311 = vst.msk [vmem:[%s8601_s6 + $0x70] sm:$0xff] %vm4296_vm4, %v4290_v3 }
 0x498   : > { %v4267_v39 = vpop.xlane.xlu1 %4266  ;;  %v4263_v5 = vpop.xlane.xlu0 %4262 }
 0x499   : > { %v4293_v37 = vadd.f32 %v4267_v39, %v4193_v7  ;;  %v4292_v49 = vadd.f32 %v4263_v5, %v4192_v9  ;;  %v4336_v39 = vld [vmem:[%s8602_s7 + $0x98] sm:$0xff]  ;;  %v4335_v5 = vld [vmem:[%s8602_s7 + $0x90] sm:$0xff] }
 0x49b   : > { %4314 = vst.msk [vmem:[%s8601_s6 + $0x88] sm:$0xff] %vm4296_vm4, %v4293_v37  ;;  %4313 = vst.msk [vmem:[%s8601_s6 + $0x80] sm:$0xff] %vm4296_vm4, %v4292_v49 }
 0x49c   : > { %v4275_v45 = vpop.xlane.xlu1 %4274  ;;  %v4271_v15 = vpop.xlane.xlu0 %4270 }
 0x49d   : > { %v4295_v43 = vadd.f32 %v4275_v45, %v4195_v21  ;;  %v4294_v11 = vadd.f32 %v4271_v15, %v4194_v0 }
 0x49f   : > { %4316 = vst.msk [vmem:[%s8601_s6 + $0x98] sm:$0xff] %vm4296_vm4, %v4295_v43  ;;  %4315 = vst.msk [vmem:[%s8601_s6 + $0x90] sm:$0xff] %vm4296_vm4, %v4294_v11 }
 0x4a0   : > { %v4384_v35 = vpop.xlane.xlu1 %4383  ;;  %v4380_v13 = vpop.xlane.xlu0 %4379 }
 0x4a1   : > { %v4458_v1 = vadd.f32 %v4384_v35, %v4318_v48  ;;  %v4457_v42 = vadd.f32 %v4380_v13, %v4317_v41 }
 0x4a3   : > { %4478 = vst.msk [vmem:[%s8602_s7 + $0x8] sm:$0xff] %vm4296_vm4, %v4458_v1  ;;  %4477 = vst.msk [vmem:[%s8602_s7] sm:$0xff] %vm4296_vm4, %v4457_v42 }
 0x4a4   : > { %v4392_v63 = vpop.xlane.xlu1 %4391  ;;  %v4388_v2 = vpop.xlane.xlu0 %4387 }
 0x4a5   : > { %v4460_v12 = vadd.f32 %v4392_v63, %v4320_v26  ;;  %v4459_v25 = vadd.f32 %v4388_v2, %v4319_v33 }
 0x4a7   : > { %4480 = vst.msk [vmem:[%s8602_s7 + $0x18] sm:$0xff] %vm4296_vm4, %v4460_v12  ;;  %4479 = vst.msk [vmem:[%s8602_s7 + $0x10] sm:$0xff] %vm4296_vm4, %v4459_v25 }
 0x4a8   : > { %v4400_v14 = vpop.xlane.xlu1 %4399  ;;  %v4396_v6 = vpop.xlane.xlu0 %4395 }
 0x4a9   : > { %v4462_v59 = vadd.f32 %v4400_v14, %v4322_v34  ;;  %v4461_v58 = vadd.f32 %v4396_v6, %v4321_v51 }
 0x4ab   : > { %4482 = vst.msk [vmem:[%s8602_s7 + $0x28] sm:$0xff] %vm4296_vm4, %v4462_v59  ;;  %4481 = vst.msk [vmem:[%s8602_s7 + $0x20] sm:$0xff] %vm4296_vm4, %v4461_v58 }
 0x4ac   : > { %v4408_v44 = vpop.xlane.xlu1 %4407  ;;  %v4404_v31 = vpop.xlane.xlu0 %4403 }
 0x4ad   : > { %v4464_v8 = vadd.f32 %v4408_v44, %v4324_v22  ;;  %v4463_v53 = vadd.f32 %v4404_v31, %v4323_v28 }
 0x4af   : > { %4484 = vst.msk [vmem:[%s8602_s7 + $0x38] sm:$0xff] %vm4296_vm4, %v4464_v8  ;;  %4483 = vst.msk [vmem:[%s8602_s7 + $0x30] sm:$0xff] %vm4296_vm4, %v4463_v53 }
 0x4b0   : > { %v4416_v4 = vpop.xlane.xlu1 %4415  ;;  %v4412_v10 = vpop.xlane.xlu0 %4411 }
 0x4b1   : > { %v4466_v46 = vadd.f32 %v4416_v4, %v4326_v57  ;;  %v4465_v56 = vadd.f32 %v4412_v10, %v4325_v18 }
 0x4b3   : > { %4486 = vst.msk [vmem:[%s8602_s7 + $0x48] sm:$0xff] %vm4296_vm4, %v4466_v46  ;;  %4485 = vst.msk [vmem:[%s8602_s7 + $0x40] sm:$0xff] %vm4296_vm4, %v4465_v56 }
 0x4b4   : > { %v4424_v52 = vpop.xlane.xlu1 %4423  ;;  %v4420_v32 = vpop.xlane.xlu0 %4419 }
 0x4b5   : > { %v4468_v24 = vadd.f32 %v4424_v52, %v4328_v19  ;;  %v4467_v61 = vadd.f32 %v4420_v32, %v4327_v47 }
 0x4b7   : > { %4488 = vst.msk [vmem:[%s8602_s7 + $0x58] sm:$0xff] %vm4296_vm4, %v4468_v24  ;;  %4487 = vst.msk [vmem:[%s8602_s7 + $0x50] sm:$0xff] %vm4296_vm4, %v4467_v61 }
 0x4b8   : > { %v4432_v29 = vpop.xlane.xlu1 %4431  ;;  %v4428_v55 = vpop.xlane.xlu0 %4427 }
 0x4b9   : > { %v4470_v38 = vadd.f32 %v4432_v29, %v4330_v36  ;;  %v4469_v23 = vadd.f32 %v4428_v55, %v4329_v40 }
 0x4bb   : > { %4490 = vst.msk [vmem:[%s8602_s7 + $0x68] sm:$0xff] %vm4296_vm4, %v4470_v38  ;;  %4489 = vst.msk [vmem:[%s8602_s7 + $0x60] sm:$0xff] %vm4296_vm4, %v4469_v23 }
 0x4bc   : > { %v4440_v27 = vpop.xlane.xlu1 %4439  ;;  %v4436_v62 = vpop.xlane.xlu0 %4435 }
 0x4bd   : > { %v4472_v30 = vadd.f32 %v4440_v27, %v4332_v50  ;;  %v4471_v20 = vadd.f32 %v4436_v62, %v4331_v54 }
 0x4bf   : > { %4492 = vst.msk [vmem:[%s8602_s7 + $0x78] sm:$0xff] %vm4296_vm4, %v4472_v30  ;;  %4491 = vst.msk [vmem:[%s8602_s7 + $0x70] sm:$0xff] %vm4296_vm4, %v4471_v20 }
 0x4c0   : > { %v4448_v60 = vpop.xlane.xlu1 %4447  ;;  %v4444_v3 = vpop.xlane.xlu0 %4443 }
 0x4c1   : > { %v4474_v7 = vadd.f32 %v4448_v60, %v4334_v17  ;;  %v4473_v9 = vadd.f32 %v4444_v3, %v4333_v16 }
 0x4c3   : > { %4494 = vst.msk [vmem:[%s8602_s7 + $0x88] sm:$0xff] %vm4296_vm4, %v4474_v7  ;;  %4493 = vst.msk [vmem:[%s8602_s7 + $0x80] sm:$0xff] %vm4296_vm4, %v4473_v9 }
 0x4c4   : > { %v4456_v37 = vpop.xlane.xlu1 %4455  ;;  %v4452_v49 = vpop.xlane.xlu0 %4451 }
 0x4c5   : > { %v4476_v21 = vadd.f32 %v4456_v37, %v4336_v39  ;;  %v4475_v0 = vadd.f32 %v4452_v49, %v4335_v5 }
 0x4c7   : > { %4496 = vst.msk [vmem:[%s8602_s7 + $0x98] sm:$0xff] %vm4296_vm4, %v4476_v21  ;;  %4495 = vst.msk [vmem:[%s8602_s7 + $0x90] sm:$0xff] %vm4296_vm4, %v4475_v0 }
 0x4c8 PF: > { %s18_s24 = sadd.s32 1, %s5415_s24  }
 0x4c9   : > { %p15_p5 = scmp.ge.s32.totalorder %s18_s24, 4  }
 0x4cb   :  { %17 = sbr.rel (!%p15_p5) target bundleno = 1 (0x1), region = 93 }

</bundles_post_ra>
